<compile_context>
chip_gen: v7x
topology: tpu7x:2x2x1
jax: 0.10.0
libtpu: 0.0.40
codegen_flags: <defaults>
</compile_context>

<pallas_src>
import jax
import jax.numpy as jnp
from jax import lax
from jax.experimental import pallas as pl
from jax.experimental.pallas import tpu as pltpu

# ---- synthetic (small) CLIP-text-tower hyperparameters ----
VOCAB = 64
CONTEXT_LEN = 8          # L (power of two -> in-kernel block mask uses an XOR test)
D_MODEL = 32             # transformer width D
N_HEADS = 2
HEAD_DIM = D_MODEL // N_HEADS
N_LAYERS = 2
EMBED_DIM = 32           # joint embedding dim E (== image feature dim)
TEMPERATURE = 0.07
LN_EPS = 1e-5

_VMEM = pltpu.MemorySpace.VMEM

# pvec slab row layout (per layer, 8 rows x 128 lanes; vectors live in lanes [0:D]
# except bfc1 which fills [0:4D]):
#   0 ln1_g | 1 ln1_b | 2 ln2_g | 3 ln2_b | 4 bproj | 5 bfc1 | 6 bfc2
#   7: layer 0 -> lnf_g, layer 1 -> lnf_b   (requires N_LAYERS >= 2)
_ROW_LN1G, _ROW_LN1B, _ROW_LN2G, _ROW_LN2B = 0, 1, 2, 3
_ROW_BPROJ, _ROW_BFC1, _ROW_BFC2, _ROW_LNF = 4, 5, 6, 7


def _vmem_specs(n):
    return [pl.BlockSpec(memory_space=_VMEM) for _ in range(n)]


def _out_layout(n_text):
    """Row offsets inside the single [out_rows, 128] output slab."""
    row_logits = ((n_text + 7) // 8) * 8          # 8-aligned start for the logits block
    row_loss = row_logits + n_text
    out_rows = ((row_loss + 1 + 7) // 8) * 8
    return row_logits, row_loss, out_rows


def _layer_norm_2d(x, g, b):
    mu = jnp.mean(x, axis=-1, keepdims=True)
    var = jnp.mean((x - mu) ** 2, axis=-1, keepdims=True)
    return (x - mu) * lax.rsqrt(var + LN_EPS) * g + b


# --------------------------------------------------------------------------
# Fused kernel: text tower + projection + normalize + logits + CLIP loss
# --------------------------------------------------------------------------
def fused_clip_kernel(x_ref, eot_ref, wqkv_ref, bqkv_ref, wproj_ref,
                      wfc1_ref, wfc2_ref, pvec_ref, wtp_ref, imgf_ref,
                      labels_ref, out_ref):
    nl, d = x_ref.shape
    x = x_ref[...]                                   # [NL, D] residual stream (2-D throughout)

    # --- block-diagonal (per-sequence) causal additive mask, generated in-kernel.
    # Same sequence <=> indices agree above bit log2(L)  <=>  (i ^ j) < L  (L power of 2).
    row_id = lax.broadcasted_iota(jnp.int32, (nl, nl), 0)
    col_id = lax.broadcasted_iota(jnp.int32, (nl, nl), 1)
    same_seq = (row_id ^ col_id) < CONTEXT_LEN
    mask = jnp.where(same_seq & (col_id <= row_id), 0.0, -1e9)          # [NL, NL] f32

    for layer in range(N_LAYERS):                    # static layer loop over stacked weights
        pv = pvec_ref[layer]                         # [8, 128] -- one vreg load per layer
        ln1_g, ln1_b = pv[_ROW_LN1G:_ROW_LN1G + 1, :d], pv[_ROW_LN1B:_ROW_LN1B + 1, :d]
        ln2_g, ln2_b = pv[_ROW_LN2G:_ROW_LN2G + 1, :d], pv[_ROW_LN2B:_ROW_LN2B + 1, :d]
        bproj = pv[_ROW_BPROJ:_ROW_BPROJ + 1, :d]
        bfc1 = pv[_ROW_BFC1:_ROW_BFC1 + 1, :]        # full 128 lanes (4*D)
        bfc2 = pv[_ROW_BFC2:_ROW_BFC2 + 1, :d]

        # --- attention branch (pre-LN, causal MHA), per-head weights: each head's
        # q/k/v is produced lane-aligned; head contributions are accumulated via
        # o_h @ wproj_h (no lane-offset slices, no lane concatenate).
        xn = _layer_norm_2d(x, ln1_g, ln1_b)
        attn = None
        for h in range(N_HEADS):                     # static head loop
            base = (layer * N_HEADS + h) * 3
            bh = bqkv_ref[layer * N_HEADS + h]       # [3, Dh]: rows q/k/v (q pre-scaled)
            q = jnp.dot(xn, wqkv_ref[base + 0],
                        preferred_element_type=jnp.float32) + bh[0:1, :]    # [NL, Dh]
            k = jnp.dot(xn, wqkv_ref[base + 1],
                        preferred_element_type=jnp.float32) + bh[1:2, :]
            v = jnp.dot(xn, wqkv_ref[base + 2],
                        preferred_element_type=jnp.float32) + bh[2:3, :]
            s = lax.dot_general(q, k, (((1,), (1,)), ((), ())),
                                preferred_element_type=jnp.float32) + mask   # [NL, NL]
            s = s - jnp.max(s, axis=-1, keepdims=True)
            p = jnp.exp(s)
            p = p * pl.reciprocal(jnp.sum(p, axis=-1, keepdims=True), approx=True)
            o = jnp.dot(p, v, preferred_element_type=jnp.float32)            # [NL, Dh]
            contrib = jnp.dot(o, wproj_ref[layer * N_HEADS + h],
                              preferred_element_type=jnp.float32)            # [NL, D]
            attn = contrib if attn is None else attn + contrib
        x = x + attn + bproj

        # --- MLP branch (QuickGELU) ---
        xn = _layer_norm_2d(x, ln2_g, ln2_b)
        h1 = jnp.dot(xn, wfc1_ref[layer], preferred_element_type=jnp.float32) + bfc1
        h1 = h1 * jax.nn.sigmoid(1.702 * h1)
        x = x + jnp.dot(h1, wfc2_ref[layer], preferred_element_type=jnp.float32) + bfc2

    # --- ln_final + EOT pooling (one-hot matmul) + text projection ---
    lnf_g = pvec_ref[0][_ROW_LNF:_ROW_LNF + 1, :d]
    lnf_b = pvec_ref[1][_ROW_LNF:_ROW_LNF + 1, :d]
    x = _layer_norm_2d(x, lnf_g, lnf_b)
    pooled = jnp.dot(eot_ref[...], x, preferred_element_type=jnp.float32)    # [N, D]
    raw = jnp.dot(pooled, wtp_ref[...], preferred_element_type=jnp.float32)  # [N, E]

    # --- F.normalize (single rsqrt) + logits = text @ image.T / temperature ---
    sumsq = jnp.sum(raw * raw, axis=-1, keepdims=True)
    tf = raw * lax.rsqrt(jnp.maximum(sumsq, 1e-24))
    logits = lax.dot_general(tf, imgf_ref[...], (((1,), (1,)), ((), ())),
                             preferred_element_type=jnp.float32) * (1.0 / TEMPERATURE)

    # --- symmetric cross-entropy on logits_align [3B, B] ---
    n_text, n_img = logits.shape
    b = n_text // 3
    n3 = 3 * b
    la = logits[:n3, :b]
    # loss_img = CE(logits_align.T, labels_text): column-wise
    col_max = jnp.max(la, axis=0, keepdims=True)
    lse_col = jnp.log(jnp.sum(jnp.exp(la - col_max), axis=0, keepdims=True)) + col_max
    rids = lax.broadcasted_iota(jnp.int32, (n3, b), 0)
    cids = lax.broadcasted_iota(jnp.int32, (n3, b), 1)
    pick_img = jnp.sum(jnp.where(rids == labels_ref[...], la, 0.0),
                       axis=0, keepdims=True)                                # [1, B]
    loss_img = jnp.sum(lse_col - pick_img) / b
    # loss_txt = CE(logits_align, arange(B).repeat_interleave(3)): row-wise.
    # label of row i is i // 3, expressed division-free as 3*col <= row < 3*col + 3.
    row_max = jnp.max(la, axis=1, keepdims=True)
    lse_row = jnp.log(jnp.sum(jnp.exp(la - row_max), axis=1, keepdims=True)) + row_max
    pick_mask = (rids >= 3 * cids) & (rids < 3 * cids + 3)
    pick_txt = jnp.sum(jnp.where(pick_mask, la, 0.0), axis=1, keepdims=True) # [3B, 1]
    loss_txt = jnp.sum(lse_row - pick_txt) / n3
    loss = (loss_img + loss_txt) * 0.5

    # --- single lane-dense output slab: one writeback DMA for all three results ---
    row_logits, row_loss, _ = _out_layout(n_text)
    e = raw.shape[1]
    out_ref[...] = jnp.zeros_like(out_ref)                   # deterministic padding
    out_ref[0:n_text, 0:e] = raw
    out_ref[row_logits:row_logits + n_text, 0:n_img] = logits
    out_ref[row_loss:row_loss + 1, 0:1] = jnp.broadcast_to(loss, (1, 1))


# --------------------------------------------------------------------------
# Wrapper (layout plumbing + embedding/EOT gathers stay in JAX glue)
# --------------------------------------------------------------------------
def tng_clip_forward(params, tokens, image_features, labels_text):
    """Pallas equivalent of TNG_CLIP.forward: returns (logits, loss, raw_text_features)."""
    n, l = tokens.shape
    d = D_MODEL
    n_img, _ = image_features.shape
    b = n // 3
    assert n == 3 * b and n_img == b, "TNG-CLIP expects exactly 3 captions per image"
    assert l == CONTEXT_LEN and (l & (l - 1)) == 0, "in-kernel mask assumes power-of-two context"
    assert N_LAYERS >= 2, "pvec row 7 of layers 0/1 hosts ln_final gamma/beta"

    # TODO(synk): clip.load (pretrained ViT-B/32 weights) and clip.tokenize (BPE tokenizer) have
    # no Pallas equivalent; weights/tokens here are synthetic & deterministic. Gathers stay in JAX.
    x = (params['token_embedding'][tokens]
         + params['pos_embedding'][None, :, :]).reshape(n * l, d)            # [NL, D]

    # EOT pooling as a one-hot matmul (CLIP convention: EOT token has the max vocab id)
    eot = jnp.argmax(tokens, axis=-1)
    eot_onehot = jax.nn.one_hot(jnp.arange(n) * l + eot, n * l, dtype=jnp.float32)  # [N, NL]

    scale = HEAD_DIM ** -0.5
    layers = params['layers']

    # per-head Q/K/V weights [L*H*3, D, Dh] (q pre-scaled by 1/sqrt(Dh) -- weights, not activations)
    def per_head_w(p):
        w = p['wqkv'].reshape(d, 3, N_HEADS, HEAD_DIM).transpose(2, 1, 0, 3)  # [H, 3, D, Dh]
        w = w.at[:, 0].multiply(scale)
        return w.reshape(N_HEADS * 3, d, HEAD_DIM)

    def per_head_b(p):
        bv = p['bqkv'].reshape(3, N_HEADS, HEAD_DIM).transpose(1, 0, 2)       # [H, 3, Dh]
        return bv.at[:, 0].multiply(scale)

    wqkv_ph = jnp.concatenate([per_head_w(p) for p in layers], axis=0)        # [L*H*3, D, Dh]
    bqkv_ph = jnp.concatenate([per_head_b(p) for p in layers], axis=0)        # [L*H, 3, Dh]
    wproj_ph = jnp.concatenate(
        [p['wproj'].reshape(N_HEADS, HEAD_DIM, d) for p in layers], axis=0)   # [L*H, Dh, D]
    wfc1 = jnp.stack([p['wfc1'] for p in layers])                             # [L, D, 4D]
    wfc2 = jnp.stack([p['wfc2'] for p in layers])                             # [L, 4D, D]

    # pack ALL small per-layer vectors (+ ln_final g/b) into one [L, 8, 128] slab
    def pad128(v):
        return jnp.pad(v, (0, 128 - v.shape[0]))

    lnf_rows = [params['lnf_g'], params['lnf_b']] + \
               [jnp.zeros((d,), jnp.float32)] * (N_LAYERS - 2)
    pvec = jnp.stack([
        jnp.stack([pad128(p['ln1_g']), pad128(p['ln1_b']),
                   pad128(p['ln2_g']), pad128(p['ln2_b']),
                   pad128(p['bproj']), pad128(p['bfc1']),
                   pad128(p['bfc2']), pad128(t)])
        for p, t in zip(layers, lnf_rows)])                                   # [L, 8, 128]

    row_logits, row_loss, out_rows = _out_layout(n)

    args = (x, eot_onehot, wqkv_ph, bqkv_ph, wproj_ph, wfc1, wfc2, pvec,
            params['text_projection'], image_features,                        # [N_img, E], no transpose
            labels_text.reshape(1, b).astype(jnp.int32))

    out = pl.pallas_call(
        fused_clip_kernel,
        in_specs=_vmem_specs(len(args)),
        out_specs=pl.BlockSpec(memory_space=_VMEM),
        out_shape=jax.ShapeDtypeStruct((out_rows, 128), jnp.float32),
    )(*args)

    raw = out[0:n, 0:EMBED_DIM]
    logits = out[row_logits:row_logits + n, 0:n_img]
    loss = out[row_loss, 0]
    return logits, loss, raw


# --------------------------------------------------------------------------
# Pure-JAX reference (for a correctness check)
# --------------------------------------------------------------------------
def _ref_ln(x, g, b):
    mu = jnp.mean(x, axis=-1, keepdims=True)
    var = jnp.mean((x - mu) ** 2, axis=-1, keepdims=True)
    return (x - mu) * lax.rsqrt(var + LN_EPS) * g + b


def reference_forward(params, tokens, image_features, labels_text):
    n, l = tokens.shape
    x = params['token_embedding'][tokens] + params['pos_embedding'][None, :, :]
    mask = jnp.triu(jnp.full((l, l), -1e9, dtype=jnp.float32), k=1)
    for p in params['layers']:
        xn = _ref_ln(x, p['ln1_g'], p['ln1_b'])
        qkv = xn @ p['wqkv'] + p['bqkv']
        q, k, v = jnp.split(qkv, 3, axis=-1)
        q = q.reshape(n, l, N_HEADS, HEAD_DIM)
        k = k.reshape(n, l, N_HEADS, HEAD_DIM)
        v = v.reshape(n, l, N_HEADS, HEAD_DIM)
        s = jnp.einsum('nqhd,nkhd->nhqk', q, k) / (HEAD_DIM ** 0.5) + mask
        a = jax.nn.softmax(s, axis=-1)
        o = jnp.einsum('nhqk,nkhd->nqhd', a, v).reshape(n, l, D_MODEL)
        x = x + o @ p['wproj'] + p['bproj']
        xn = _ref_ln(x, p['ln2_g'], p['ln2_b'])
        h = xn @ p['wfc1'] + p['bfc1']
        h = h * jax.nn.sigmoid(1.702 * h)
        x = x + h @ p['wfc2'] + p['bfc2']
    x = _ref_ln(x, params['lnf_g'], params['lnf_b'])
    pooled = x[jnp.arange(n), jnp.argmax(tokens, axis=-1)]
    raw = pooled @ params['text_projection']
    tf = raw / jnp.maximum(jnp.linalg.norm(raw, axis=-1, keepdims=True), 1e-12)
    logits = tf @ image_features.T / TEMPERATURE
    b = n // 3
    la = logits[:3 * b, :b]
    labels_rep = jnp.repeat(jnp.arange(b), 3)

    def ce(lg, lbl):
        lse = jax.scipy.special.logsumexp(lg, axis=-1)
        return jnp.mean(lse - lg[jnp.arange(lg.shape[0]), lbl])

    loss = 0.5 * (ce(la.T, labels_text) + ce(la, labels_rep))
    return logits, loss, raw


# --------------------------------------------------------------------------
# Deterministic parameter init
# --------------------------------------------------------------------------
def init_params(key):
    keys = iter(jax.random.split(key, 8 + 8 * N_LAYERS))

    def nrm(shape, scale):
        return (jax.random.normal(next(keys), shape) * scale).astype(jnp.float32)

    layers = []
    for _ in range(N_LAYERS):
        layers.append(dict(
            ln1_g=jnp.ones((D_MODEL,), jnp.float32), ln1_b=jnp.zeros((D_MODEL,), jnp.float32),
            wqkv=nrm((D_MODEL, 3 * D_MODEL), 0.02), bqkv=nrm((3 * D_MODEL,), 0.02),
            wproj=nrm((D_MODEL, D_MODEL), 0.02), bproj=nrm((D_MODEL,), 0.02),
            ln2_g=jnp.ones((D_MODEL,), jnp.float32), ln2_b=jnp.zeros((D_MODEL,), jnp.float32),
            wfc1=nrm((D_MODEL, 4 * D_MODEL), 0.02), bfc1=nrm((4 * D_MODEL,), 0.02),
            wfc2=nrm((4 * D_MODEL, D_MODEL), 0.02), bfc2=nrm((D_MODEL,), 0.02)))
    return dict(
        token_embedding=nrm((VOCAB, D_MODEL), 0.02),
        pos_embedding=nrm((CONTEXT_LEN, D_MODEL), 0.01),
        lnf_g=jnp.ones((D_MODEL,), jnp.float32),
        lnf_b=jnp.zeros((D_MODEL,), jnp.float32),
        text_projection=nrm((D_MODEL, EMBED_DIM), D_MODEL ** -0.5),
        layers=layers)


if __name__ == "__main__":
    key = jax.random.PRNGKey(0)
    kp, kt, ke, ki, kl = jax.random.split(key, 5)
    params = init_params(kp)

    B_IMG = 4                 # images per batch
    N_TEXT = 3 * B_IMG        # 3 captions per image (TNG-CLIP convention)
    L = CONTEXT_LEN

    # synthetic "tokenized" text: body tokens, EOT (= max id, so argmax finds it), then padding
    pos = jnp.arange(L)[None, :]
    eot_pos = jax.random.randint(ke, (N_TEXT, 1), 2, L)
    body = jax.random.randint(kt, (N_TEXT, L), 1, VOCAB - 1)
    tokens = jnp.where(pos < eot_pos, body, 0)
    tokens = jnp.where(pos == eot_pos, VOCAB - 1, tokens).astype(jnp.int32)

    image_features = jax.random.normal(ki, (B_IMG, EMBED_DIM), jnp.float32)
    image_features = image_features / jnp.linalg.norm(image_features, axis=-1, keepdims=True)

    # torch.randperm(3*B)[:B] -> deterministic JAX equivalent
    labels_text = jax.random.permutation(kl, 3 * B_IMG)[:B_IMG].astype(jnp.int32)

    fwd = jax.jit(tng_clip_forward)
    logits, loss, raw_text_features = fwd(params, tokens, image_features, labels_text)
    jax.block_until_ready((logits, loss, raw_text_features))

    ref_logits, ref_loss, ref_raw = reference_forward(params, tokens, image_features, labels_text)
    assert logits.shape == (N_TEXT, B_IMG) and raw_text_features.shape == (N_TEXT, EMBED_DIM)
    assert jnp.allclose(logits, ref_logits, atol=5e-2, rtol=5e-2)
    assert jnp.allclose(raw_text_features, ref_raw, atol=5e-2, rtol=5e-2)
    assert jnp.allclose(loss, ref_loss, atol=5e-2, rtol=5e-2)

    print("KERNEL_OK")
</pallas_src>

<mosaic_0001>
module attributes {stable_mosaic.version = 11 : i64} {
  func.func @fused_clip_kernel(%arg0: memref<96x32xf32, #tpu.memory_space<vmem>>, %arg1: memref<12x96xf32, #tpu.memory_space<vmem>>, %arg2: memref<12x32x16xf32, #tpu.memory_space<vmem>>, %arg3: memref<4x3x16xf32, #tpu.memory_space<vmem>>, %arg4: memref<4x16x32xf32, #tpu.memory_space<vmem>>, %arg5: memref<2x32x128xf32, #tpu.memory_space<vmem>>, %arg6: memref<2x128x32xf32, #tpu.memory_space<vmem>>, %arg7: memref<2x8x128xf32, #tpu.memory_space<vmem>>, %arg8: memref<32x32xf32, #tpu.memory_space<vmem>>, %arg9: memref<4x32xf32, #tpu.memory_space<vmem>>, %arg10: memref<1x4xi32, #tpu.memory_space<vmem>>, %arg11: memref<32x128xf32, #tpu.memory_space<vmem>>) attributes {dimension_semantics = [], scalar_prefetch = 0 : i64, scratch_operands = 0 : i64, tpu.core_type = #tpu.core_type<tc>} {
    %c0 = arith.constant 0 : index
    %c0_0 = arith.constant 0 : index
    %0 = vector.load %arg0[%c0, %c0_0] : memref<96x32xf32, #tpu.memory_space<vmem>>, vector<96x32xf32>
    %1 = tpu.iota {dimensions = array<i32: 0>} : vector<96x96xi32>
    %2 = tpu.iota {dimensions = array<i32: 1>} : vector<96x96xi32>
    %3 = arith.xori %1, %2 : vector<96x96xi32>
    %c8_i32 = arith.constant 8 : i32
    %4 = vector.broadcast %c8_i32 : i32 to vector<96x96xi32>
    %5 = arith.cmpi slt, %3, %4 : vector<96x96xi32>
    %6 = arith.cmpi sle, %2, %1 : vector<96x96xi32>
    %7 = arith.andi %5, %6 : vector<96x96xi1>
    %cst = arith.constant 0.000000e+00 : f32
    %cst_1 = arith.constant -1.000000e+09 : f32
    %8 = vector.broadcast %cst : f32 to vector<96x96xf32>
    %9 = vector.broadcast %cst_1 : f32 to vector<96x96xf32>
    %10 = arith.select %7, %8, %9 : vector<96x96xi1>, vector<96x96xf32>
    %c0_2 = arith.constant 0 : index
    %c0_3 = arith.constant 0 : index
    %c0_4 = arith.constant 0 : index
    %11 = vector.load %arg7[%c0_2, %c0_3, %c0_4] : memref<2x8x128xf32, #tpu.memory_space<vmem>>, vector<1x8x128xf32>
    %12 = vector.shape_cast %11 : vector<1x8x128xf32> to vector<8x128xf32>
    %13 = vector.extract_strided_slice %12 {offsets = [0, 0], sizes = [1, 32], strides = [1, 1]} : vector<8x128xf32> to vector<1x32xf32>
    %14 = vector.extract_strided_slice %12 {offsets = [1, 0], sizes = [1, 32], strides = [1, 1]} : vector<8x128xf32> to vector<1x32xf32>
    %15 = vector.extract_strided_slice %12 {offsets = [2, 0], sizes = [1, 32], strides = [1, 1]} : vector<8x128xf32> to vector<1x32xf32>
    %16 = vector.extract_strided_slice %12 {offsets = [3, 0], sizes = [1, 32], strides = [1, 1]} : vector<8x128xf32> to vector<1x32xf32>
    %17 = vector.extract_strided_slice %12 {offsets = [4, 0], sizes = [1, 32], strides = [1, 1]} : vector<8x128xf32> to vector<1x32xf32>
    %18 = vector.extract_strided_slice %12 {offsets = [5, 0], sizes = [1, 128], strides = [1, 1]} : vector<8x128xf32> to vector<1x128xf32>
    %19 = vector.extract_strided_slice %12 {offsets = [6, 0], sizes = [1, 32], strides = [1, 1]} : vector<8x128xf32> to vector<1x32xf32>
    %cst_5 = arith.constant dense<0.000000e+00> : vector<96xf32>
    %20 = vector.multi_reduction <add>, %0, %cst_5 [1] : vector<96x32xf32> to vector<96xf32>
    %21 = vector.shape_cast %20 : vector<96xf32> to vector<96x1xf32>
    %cst_6 = arith.constant 3.200000e+01 : f32
    %22 = vector.broadcast %cst_6 : f32 to vector<96x1xf32>
    %23 = arith.divf %21, %22 : vector<96x1xf32>
    %24 = vector.broadcast %23 : vector<96x1xf32> to vector<96x32xf32>
    %25 = arith.subf %0, %24 : vector<96x32xf32>
    %26 = arith.mulf %25, %25 : vector<96x32xf32>
    %cst_7 = arith.constant dense<0.000000e+00> : vector<96xf32>
    %27 = vector.multi_reduction <add>, %26, %cst_7 [1] : vector<96x32xf32> to vector<96xf32>
    %28 = vector.shape_cast %27 : vector<96xf32> to vector<96x1xf32>
    %cst_8 = arith.constant 3.200000e+01 : f32
    %29 = vector.broadcast %cst_8 : f32 to vector<96x1xf32>
    %30 = arith.divf %28, %29 : vector<96x1xf32>
    %31 = vector.broadcast %23 : vector<96x1xf32> to vector<96x32xf32>
    %32 = arith.subf %0, %31 : vector<96x32xf32>
    %cst_9 = arith.constant 9.99999974E-6 : f32
    %33 = vector.broadcast %cst_9 : f32 to vector<96x1xf32>
    %34 = arith.addf %30, %33 : vector<96x1xf32>
    %35 = math.rsqrt %34 : vector<96x1xf32>
    %36 = vector.broadcast %35 : vector<96x1xf32> to vector<96x32xf32>
    %37 = arith.mulf %32, %36 : vector<96x32xf32>
    %38 = vector.broadcast %13 : vector<1x32xf32> to vector<96x32xf32>
    %39 = arith.mulf %37, %38 : vector<96x32xf32>
    %40 = vector.broadcast %14 : vector<1x32xf32> to vector<96x32xf32>
    %41 = arith.addf %39, %40 : vector<96x32xf32>
    %c0_10 = arith.constant 0 : index
    %c0_11 = arith.constant 0 : index
    %c0_12 = arith.constant 0 : index
    %42 = vector.load %arg3[%c0_10, %c0_11, %c0_12] : memref<4x3x16xf32, #tpu.memory_space<vmem>>, vector<1x3x16xf32>
    %43 = vector.shape_cast %42 : vector<1x3x16xf32> to vector<3x16xf32>
    %c0_13 = arith.constant 0 : index
    %c0_14 = arith.constant 0 : index
    %c0_15 = arith.constant 0 : index
    %44 = vector.load %arg2[%c0_13, %c0_14, %c0_15] : memref<12x32x16xf32, #tpu.memory_space<vmem>>, vector<1x32x16xf32>
    %45 = vector.shape_cast %44 : vector<1x32x16xf32> to vector<32x16xf32>
    %cst_16 = arith.constant dense<0.000000e+00> : vector<96x16xf32>
    %46 = tpu.matmul %41, %45, %cst_16 {dimension_numbers = #tpu.dot_dimension_numbers<[1], [0], [0], [1], [0, 0, 1, 1], [], []>} : vector<96x32xf32>, vector<32x16xf32>, vector<96x16xf32> -> vector<96x16xf32>
    %47 = vector.extract_strided_slice %43 {offsets = [0, 0], sizes = [1, 16], strides = [1, 1]} : vector<3x16xf32> to vector<1x16xf32>
    %48 = vector.broadcast %47 : vector<1x16xf32> to vector<96x16xf32>
    %49 = arith.addf %46, %48 : vector<96x16xf32>
    %c1 = arith.constant 1 : index
    %c0_17 = arith.constant 0 : index
    %c0_18 = arith.constant 0 : index
    %50 = vector.load %arg2[%c1, %c0_17, %c0_18] : memref<12x32x16xf32, #tpu.memory_space<vmem>>, vector<1x32x16xf32>
    %51 = vector.shape_cast %50 : vector<1x32x16xf32> to vector<32x16xf32>
    %cst_19 = arith.constant dense<0.000000e+00> : vector<96x16xf32>
    %52 = tpu.matmul %41, %51, %cst_19 {dimension_numbers = #tpu.dot_dimension_numbers<[1], [0], [0], [1], [0, 0, 1, 1], [], []>} : vector<96x32xf32>, vector<32x16xf32>, vector<96x16xf32> -> vector<96x16xf32>
    %53 = vector.extract_strided_slice %43 {offsets = [1, 0], sizes = [1, 16], strides = [1, 1]} : vector<3x16xf32> to vector<1x16xf32>
    %54 = vector.broadcast %53 : vector<1x16xf32> to vector<96x16xf32>
    %55 = arith.addf %52, %54 : vector<96x16xf32>
    %c2 = arith.constant 2 : index
    %c0_20 = arith.constant 0 : index
    %c0_21 = arith.constant 0 : index
    %56 = vector.load %arg2[%c2, %c0_20, %c0_21] : memref<12x32x16xf32, #tpu.memory_space<vmem>>, vector<1x32x16xf32>
    %57 = vector.shape_cast %56 : vector<1x32x16xf32> to vector<32x16xf32>
    %cst_22 = arith.constant dense<0.000000e+00> : vector<96x16xf32>
    %58 = tpu.matmul %41, %57, %cst_22 {dimension_numbers = #tpu.dot_dimension_numbers<[1], [0], [0], [1], [0, 0, 1, 1], [], []>} : vector<96x32xf32>, vector<32x16xf32>, vector<96x16xf32> -> vector<96x16xf32>
    %59 = vector.extract_strided_slice %43 {offsets = [2, 0], sizes = [1, 16], strides = [1, 1]} : vector<3x16xf32> to vector<1x16xf32>
    %60 = vector.broadcast %59 : vector<1x16xf32> to vector<96x16xf32>
    %61 = arith.addf %58, %60 : vector<96x16xf32>
    %cst_23 = arith.constant dense<0.000000e+00> : vector<96x96xf32>
    %62 = tpu.matmul %49, %55, %cst_23 {dimension_numbers = #tpu.dot_dimension_numbers<[1], [1], [0], [0], [0, 0, 1, 0], [], []>} : vector<96x16xf32>, vector<96x16xf32>, vector<96x96xf32> -> vector<96x96xf32>
    %63 = arith.addf %62, %10 : vector<96x96xf32>
    %cst_24 = arith.constant dense<0xFF800000> : vector<96xf32>
    %64 = vector.multi_reduction <maximumf>, %63, %cst_24 [1] : vector<96x96xf32> to vector<96xf32>
    %65 = vector.shape_cast %64 : vector<96xf32> to vector<96x1xf32>
    %66 = vector.broadcast %65 : vector<96x1xf32> to vector<96x96xf32>
    %67 = arith.subf %63, %66 : vector<96x96xf32>
    %68 = math.exp %67 : vector<96x96xf32>
    %cst_25 = arith.constant dense<0.000000e+00> : vector<96xf32>
    %69 = vector.multi_reduction <add>, %68, %cst_25 [1] : vector<96x96xf32> to vector<96xf32>
    %70 = vector.shape_cast %69 : vector<96xf32> to vector<96x1xf32>
    %71 = tpu.reciprocal %70 {approx = true} : vector<96x1xf32> -> vector<96x1xf32>
    %72 = vector.broadcast %71 : vector<96x1xf32> to vector<96x96xf32>
    %73 = arith.mulf %68, %72 : vector<96x96xf32>
    %cst_26 = arith.constant dense<0.000000e+00> : vector<96x16xf32>
    %74 = tpu.matmul %73, %61, %cst_26 {dimension_numbers = #tpu.dot_dimension_numbers<[1], [0], [0], [1], [0, 0, 1, 1], [], []>} : vector<96x96xf32>, vector<96x16xf32>, vector<96x16xf32> -> vector<96x16xf32>
    %c0_27 = arith.constant 0 : index
    %c0_28 = arith.constant 0 : index
    %c0_29 = arith.constant 0 : index
    %75 = vector.load %arg4[%c0_27, %c0_28, %c0_29] : memref<4x16x32xf32, #tpu.memory_space<vmem>>, vector<1x16x32xf32>
    %76 = vector.shape_cast %75 : vector<1x16x32xf32> to vector<16x32xf32>
    %cst_30 = arith.constant dense<0.000000e+00> : vector<96x32xf32>
    %77 = tpu.matmul %74, %76, %cst_30 {dimension_numbers = #tpu.dot_dimension_numbers<[1], [0], [0], [1], [0, 0, 1, 1], [], []>} : vector<96x16xf32>, vector<16x32xf32>, vector<96x32xf32> -> vector<96x32xf32>
    %c1_31 = arith.constant 1 : index
    %c0_32 = arith.constant 0 : index
    %c0_33 = arith.constant 0 : index
    %78 = vector.load %arg3[%c1_31, %c0_32, %c0_33] : memref<4x3x16xf32, #tpu.memory_space<vmem>>, vector<1x3x16xf32>
    %79 = vector.shape_cast %78 : vector<1x3x16xf32> to vector<3x16xf32>
    %c3 = arith.constant 3 : index
    %c0_34 = arith.constant 0 : index
    %c0_35 = arith.constant 0 : index
    %80 = vector.load %arg2[%c3, %c0_34, %c0_35] : memref<12x32x16xf32, #tpu.memory_space<vmem>>, vector<1x32x16xf32>
    %81 = vector.shape_cast %80 : vector<1x32x16xf32> to vector<32x16xf32>
    %cst_36 = arith.constant dense<0.000000e+00> : vector<96x16xf32>
    %82 = tpu.matmul %41, %81, %cst_36 {dimension_numbers = #tpu.dot_dimension_numbers<[1], [0], [0], [1], [0, 0, 1, 1], [], []>} : vector<96x32xf32>, vector<32x16xf32>, vector<96x16xf32> -> vector<96x16xf32>
    %83 = vector.extract_strided_slice %79 {offsets = [0, 0], sizes = [1, 16], strides = [1, 1]} : vector<3x16xf32> to vector<1x16xf32>
    %84 = vector.broadcast %83 : vector<1x16xf32> to vector<96x16xf32>
    %85 = arith.addf %82, %84 : vector<96x16xf32>
    %c4 = arith.constant 4 : index
    %c0_37 = arith.constant 0 : index
    %c0_38 = arith.constant 0 : index
    %86 = vector.load %arg2[%c4, %c0_37, %c0_38] : memref<12x32x16xf32, #tpu.memory_space<vmem>>, vector<1x32x16xf32>
    %87 = vector.shape_cast %86 : vector<1x32x16xf32> to vector<32x16xf32>
    %cst_39 = arith.constant dense<0.000000e+00> : vector<96x16xf32>
    %88 = tpu.matmul %41, %87, %cst_39 {dimension_numbers = #tpu.dot_dimension_numbers<[1], [0], [0], [1], [0, 0, 1, 1], [], []>} : vector<96x32xf32>, vector<32x16xf32>, vector<96x16xf32> -> vector<96x16xf32>
    %89 = vector.extract_strided_slice %79 {offsets = [1, 0], sizes = [1, 16], strides = [1, 1]} : vector<3x16xf32> to vector<1x16xf32>
    %90 = vector.broadcast %89 : vector<1x16xf32> to vector<96x16xf32>
    %91 = arith.addf %88, %90 : vector<96x16xf32>
    %c5 = arith.constant 5 : index
    %c0_40 = arith.constant 0 : index
    %c0_41 = arith.constant 0 : index
    %92 = vector.load %arg2[%c5, %c0_40, %c0_41] : memref<12x32x16xf32, #tpu.memory_space<vmem>>, vector<1x32x16xf32>
    %93 = vector.shape_cast %92 : vector<1x32x16xf32> to vector<32x16xf32>
    %cst_42 = arith.constant dense<0.000000e+00> : vector<96x16xf32>
    %94 = tpu.matmul %41, %93, %cst_42 {dimension_numbers = #tpu.dot_dimension_numbers<[1], [0], [0], [1], [0, 0, 1, 1], [], []>} : vector<96x32xf32>, vector<32x16xf32>, vector<96x16xf32> -> vector<96x16xf32>
    %95 = vector.extract_strided_slice %79 {offsets = [2, 0], sizes = [1, 16], strides = [1, 1]} : vector<3x16xf32> to vector<1x16xf32>
    %96 = vector.broadcast %95 : vector<1x16xf32> to vector<96x16xf32>
    %97 = arith.addf %94, %96 : vector<96x16xf32>
    %cst_43 = arith.constant dense<0.000000e+00> : vector<96x96xf32>
    %98 = tpu.matmul %85, %91, %cst_43 {dimension_numbers = #tpu.dot_dimension_numbers<[1], [1], [0], [0], [0, 0, 1, 0], [], []>} : vector<96x16xf32>, vector<96x16xf32>, vector<96x96xf32> -> vector<96x96xf32>
    %99 = arith.addf %98, %10 : vector<96x96xf32>
    %cst_44 = arith.constant dense<0xFF800000> : vector<96xf32>
    %100 = vector.multi_reduction <maximumf>, %99, %cst_44 [1] : vector<96x96xf32> to vector<96xf32>
    %101 = vector.shape_cast %100 : vector<96xf32> to vector<96x1xf32>
    %102 = vector.broadcast %101 : vector<96x1xf32> to vector<96x96xf32>
    %103 = arith.subf %99, %102 : vector<96x96xf32>
    %104 = math.exp %103 : vector<96x96xf32>
    %cst_45 = arith.constant dense<0.000000e+00> : vector<96xf32>
    %105 = vector.multi_reduction <add>, %104, %cst_45 [1] : vector<96x96xf32> to vector<96xf32>
    %106 = vector.shape_cast %105 : vector<96xf32> to vector<96x1xf32>
    %107 = tpu.reciprocal %106 {approx = true} : vector<96x1xf32> -> vector<96x1xf32>
    %108 = vector.broadcast %107 : vector<96x1xf32> to vector<96x96xf32>
    %109 = arith.mulf %104, %108 : vector<96x96xf32>
    %cst_46 = arith.constant dense<0.000000e+00> : vector<96x16xf32>
    %110 = tpu.matmul %109, %97, %cst_46 {dimension_numbers = #tpu.dot_dimension_numbers<[1], [0], [0], [1], [0, 0, 1, 1], [], []>} : vector<96x96xf32>, vector<96x16xf32>, vector<96x16xf32> -> vector<96x16xf32>
    %c1_47 = arith.constant 1 : index
    %c0_48 = arith.constant 0 : index
    %c0_49 = arith.constant 0 : index
    %111 = vector.load %arg4[%c1_47, %c0_48, %c0_49] : memref<4x16x32xf32, #tpu.memory_space<vmem>>, vector<1x16x32xf32>
    %112 = vector.shape_cast %111 : vector<1x16x32xf32> to vector<16x32xf32>
    %cst_50 = arith.constant dense<0.000000e+00> : vector<96x32xf32>
    %113 = tpu.matmul %110, %112, %cst_50 {dimension_numbers = #tpu.dot_dimension_numbers<[1], [0], [0], [1], [0, 0, 1, 1], [], []>} : vector<96x16xf32>, vector<16x32xf32>, vector<96x32xf32> -> vector<96x32xf32>
    %114 = arith.addf %77, %113 : vector<96x32xf32>
    %115 = arith.addf %0, %114 : vector<96x32xf32>
    %116 = vector.broadcast %17 : vector<1x32xf32> to vector<96x32xf32>
    %117 = arith.addf %115, %116 : vector<96x32xf32>
    %cst_51 = arith.constant dense<0.000000e+00> : vector<96xf32>
    %118 = vector.multi_reduction <add>, %117, %cst_51 [1] : vector<96x32xf32> to vector<96xf32>
    %119 = vector.shape_cast %118 : vector<96xf32> to vector<96x1xf32>
    %cst_52 = arith.constant 3.200000e+01 : f32
    %120 = vector.broadcast %cst_52 : f32 to vector<96x1xf32>
    %121 = arith.divf %119, %120 : vector<96x1xf32>
    %122 = vector.broadcast %121 : vector<96x1xf32> to vector<96x32xf32>
    %123 = arith.subf %117, %122 : vector<96x32xf32>
    %124 = arith.mulf %123, %123 : vector<96x32xf32>
    %cst_53 = arith.constant dense<0.000000e+00> : vector<96xf32>
    %125 = vector.multi_reduction <add>, %124, %cst_53 [1] : vector<96x32xf32> to vector<96xf32>
    %126 = vector.shape_cast %125 : vector<96xf32> to vector<96x1xf32>
    %cst_54 = arith.constant 3.200000e+01 : f32
    %127 = vector.broadcast %cst_54 : f32 to vector<96x1xf32>
    %128 = arith.divf %126, %127 : vector<96x1xf32>
    %129 = vector.broadcast %121 : vector<96x1xf32> to vector<96x32xf32>
    %130 = arith.subf %117, %129 : vector<96x32xf32>
    %cst_55 = arith.constant 9.99999974E-6 : f32
    %131 = vector.broadcast %cst_55 : f32 to vector<96x1xf32>
    %132 = arith.addf %128, %131 : vector<96x1xf32>
    %133 = math.rsqrt %132 : vector<96x1xf32>
    %134 = vector.broadcast %133 : vector<96x1xf32> to vector<96x32xf32>
    %135 = arith.mulf %130, %134 : vector<96x32xf32>
    %136 = vector.broadcast %15 : vector<1x32xf32> to vector<96x32xf32>
    %137 = arith.mulf %135, %136 : vector<96x32xf32>
    %138 = vector.broadcast %16 : vector<1x32xf32> to vector<96x32xf32>
    %139 = arith.addf %137, %138 : vector<96x32xf32>
    %c0_56 = arith.constant 0 : index
    %c0_57 = arith.constant 0 : index
    %c0_58 = arith.constant 0 : index
    %140 = vector.load %arg5[%c0_56, %c0_57, %c0_58] : memref<2x32x128xf32, #tpu.memory_space<vmem>>, vector<1x32x128xf32>
    %141 = vector.shape_cast %140 : vector<1x32x128xf32> to vector<32x128xf32>
    %cst_59 = arith.constant dense<0.000000e+00> : vector<96x128xf32>
    %142 = tpu.matmul %139, %141, %cst_59 {dimension_numbers = #tpu.dot_dimension_numbers<[1], [0], [0], [1], [0, 0, 1, 1], [], []>} : vector<96x32xf32>, vector<32x128xf32>, vector<96x128xf32> -> vector<96x128xf32>
    %143 = vector.broadcast %18 : vector<1x128xf32> to vector<96x128xf32>
    %144 = arith.addf %142, %143 : vector<96x128xf32>
    %cst_60 = arith.constant 1.702000e+00 : f32
    %145 = vector.broadcast %cst_60 : f32 to vector<96x128xf32>
    %146 = arith.mulf %145, %144 : vector<96x128xf32>
    %147 = arith.negf %146 : vector<96x128xf32>
    %148 = math.exp %147 : vector<96x128xf32>
    %cst_61 = arith.constant 1.000000e+00 : f32
    %149 = vector.broadcast %cst_61 : f32 to vector<96x128xf32>
    %150 = arith.addf %149, %148 : vector<96x128xf32>
    %151 = arith.divf %149, %150 : vector<96x128xf32>
    %152 = arith.mulf %144, %151 : vector<96x128xf32>
    %c0_62 = arith.constant 0 : index
    %c0_63 = arith.constant 0 : index
    %c0_64 = arith.constant 0 : index
    %153 = vector.load %arg6[%c0_62, %c0_63, %c0_64] : memref<2x128x32xf32, #tpu.memory_space<vmem>>, vector<1x128x32xf32>
    %154 = vector.shape_cast %153 : vector<1x128x32xf32> to vector<128x32xf32>
    %cst_65 = arith.constant dense<0.000000e+00> : vector<96x32xf32>
    %155 = tpu.matmul %152, %154, %cst_65 {dimension_numbers = #tpu.dot_dimension_numbers<[1], [0], [0], [1], [0, 0, 1, 1], [], []>} : vector<96x128xf32>, vector<128x32xf32>, vector<96x32xf32> -> vector<96x32xf32>
    %156 = arith.addf %117, %155 : vector<96x32xf32>
    %157 = vector.broadcast %19 : vector<1x32xf32> to vector<96x32xf32>
    %158 = arith.addf %156, %157 : vector<96x32xf32>
    %c1_66 = arith.constant 1 : index
    %c0_67 = arith.constant 0 : index
    %c0_68 = arith.constant 0 : index
    %159 = vector.load %arg7[%c1_66, %c0_67, %c0_68] : memref<2x8x128xf32, #tpu.memory_space<vmem>>, vector<1x8x128xf32>
    %160 = vector.shape_cast %159 : vector<1x8x128xf32> to vector<8x128xf32>
    %161 = vector.extract_strided_slice %160 {offsets = [0, 0], sizes = [1, 32], strides = [1, 1]} : vector<8x128xf32> to vector<1x32xf32>
    %162 = vector.extract_strided_slice %160 {offsets = [1, 0], sizes = [1, 32], strides = [1, 1]} : vector<8x128xf32> to vector<1x32xf32>
    %163 = vector.extract_strided_slice %160 {offsets = [2, 0], sizes = [1, 32], strides = [1, 1]} : vector<8x128xf32> to vector<1x32xf32>
    %164 = vector.extract_strided_slice %160 {offsets = [3, 0], sizes = [1, 32], strides = [1, 1]} : vector<8x128xf32> to vector<1x32xf32>
    %165 = vector.extract_strided_slice %160 {offsets = [4, 0], sizes = [1, 32], strides = [1, 1]} : vector<8x128xf32> to vector<1x32xf32>
    %166 = vector.extract_strided_slice %160 {offsets = [5, 0], sizes = [1, 128], strides = [1, 1]} : vector<8x128xf32> to vector<1x128xf32>
    %167 = vector.extract_strided_slice %160 {offsets = [6, 0], sizes = [1, 32], strides = [1, 1]} : vector<8x128xf32> to vector<1x32xf32>
    %cst_69 = arith.constant dense<0.000000e+00> : vector<96xf32>
    %168 = vector.multi_reduction <add>, %158, %cst_69 [1] : vector<96x32xf32> to vector<96xf32>
    %169 = vector.shape_cast %168 : vector<96xf32> to vector<96x1xf32>
    %cst_70 = arith.constant 3.200000e+01 : f32
    %170 = vector.broadcast %cst_70 : f32 to vector<96x1xf32>
    %171 = arith.divf %169, %170 : vector<96x1xf32>
    %172 = vector.broadcast %171 : vector<96x1xf32> to vector<96x32xf32>
    %173 = arith.subf %158, %172 : vector<96x32xf32>
    %174 = arith.mulf %173, %173 : vector<96x32xf32>
    %cst_71 = arith.constant dense<0.000000e+00> : vector<96xf32>
    %175 = vector.multi_reduction <add>, %174, %cst_71 [1] : vector<96x32xf32> to vector<96xf32>
    %176 = vector.shape_cast %175 : vector<96xf32> to vector<96x1xf32>
    %cst_72 = arith.constant 3.200000e+01 : f32
    %177 = vector.broadcast %cst_72 : f32 to vector<96x1xf32>
    %178 = arith.divf %176, %177 : vector<96x1xf32>
    %179 = vector.broadcast %171 : vector<96x1xf32> to vector<96x32xf32>
    %180 = arith.subf %158, %179 : vector<96x32xf32>
    %cst_73 = arith.constant 9.99999974E-6 : f32
    %181 = vector.broadcast %cst_73 : f32 to vector<96x1xf32>
    %182 = arith.addf %178, %181 : vector<96x1xf32>
    %183 = math.rsqrt %182 : vector<96x1xf32>
    %184 = vector.broadcast %183 : vector<96x1xf32> to vector<96x32xf32>
    %185 = arith.mulf %180, %184 : vector<96x32xf32>
    %186 = vector.broadcast %161 : vector<1x32xf32> to vector<96x32xf32>
    %187 = arith.mulf %185, %186 : vector<96x32xf32>
    %188 = vector.broadcast %162 : vector<1x32xf32> to vector<96x32xf32>
    %189 = arith.addf %187, %188 : vector<96x32xf32>
    %c2_74 = arith.constant 2 : index
    %c0_75 = arith.constant 0 : index
    %c0_76 = arith.constant 0 : index
    %190 = vector.load %arg3[%c2_74, %c0_75, %c0_76] : memref<4x3x16xf32, #tpu.memory_space<vmem>>, vector<1x3x16xf32>
    %191 = vector.shape_cast %190 : vector<1x3x16xf32> to vector<3x16xf32>
    %c6 = arith.constant 6 : index
    %c0_77 = arith.constant 0 : index
    %c0_78 = arith.constant 0 : index
    %192 = vector.load %arg2[%c6, %c0_77, %c0_78] : memref<12x32x16xf32, #tpu.memory_space<vmem>>, vector<1x32x16xf32>
    %193 = vector.shape_cast %192 : vector<1x32x16xf32> to vector<32x16xf32>
    %cst_79 = arith.constant dense<0.000000e+00> : vector<96x16xf32>
    %194 = tpu.matmul %189, %193, %cst_79 {dimension_numbers = #tpu.dot_dimension_numbers<[1], [0], [0], [1], [0, 0, 1, 1], [], []>} : vector<96x32xf32>, vector<32x16xf32>, vector<96x16xf32> -> vector<96x16xf32>
    %195 = vector.extract_strided_slice %191 {offsets = [0, 0], sizes = [1, 16], strides = [1, 1]} : vector<3x16xf32> to vector<1x16xf32>
    %196 = vector.broadcast %195 : vector<1x16xf32> to vector<96x16xf32>
    %197 = arith.addf %194, %196 : vector<96x16xf32>
    %c7 = arith.constant 7 : index
    %c0_80 = arith.constant 0 : index
    %c0_81 = arith.constant 0 : index
    %198 = vector.load %arg2[%c7, %c0_80, %c0_81] : memref<12x32x16xf32, #tpu.memory_space<vmem>>, vector<1x32x16xf32>
    %199 = vector.shape_cast %198 : vector<1x32x16xf32> to vector<32x16xf32>
    %cst_82 = arith.constant dense<0.000000e+00> : vector<96x16xf32>
    %200 = tpu.matmul %189, %199, %cst_82 {dimension_numbers = #tpu.dot_dimension_numbers<[1], [0], [0], [1], [0, 0, 1, 1], [], []>} : vector<96x32xf32>, vector<32x16xf32>, vector<96x16xf32> -> vector<96x16xf32>
    %201 = vector.extract_strided_slice %191 {offsets = [1, 0], sizes = [1, 16], strides = [1, 1]} : vector<3x16xf32> to vector<1x16xf32>
    %202 = vector.broadcast %201 : vector<1x16xf32> to vector<96x16xf32>
    %203 = arith.addf %200, %202 : vector<96x16xf32>
    %c8 = arith.constant 8 : index
    %c0_83 = arith.constant 0 : index
    %c0_84 = arith.constant 0 : index
    %204 = vector.load %arg2[%c8, %c0_83, %c0_84] : memref<12x32x16xf32, #tpu.memory_space<vmem>>, vector<1x32x16xf32>
    %205 = vector.shape_cast %204 : vector<1x32x16xf32> to vector<32x16xf32>
    %cst_85 = arith.constant dense<0.000000e+00> : vector<96x16xf32>
    %206 = tpu.matmul %189, %205, %cst_85 {dimension_numbers = #tpu.dot_dimension_numbers<[1], [0], [0], [1], [0, 0, 1, 1], [], []>} : vector<96x32xf32>, vector<32x16xf32>, vector<96x16xf32> -> vector<96x16xf32>
    %207 = vector.extract_strided_slice %191 {offsets = [2, 0], sizes = [1, 16], strides = [1, 1]} : vector<3x16xf32> to vector<1x16xf32>
    %208 = vector.broadcast %207 : vector<1x16xf32> to vector<96x16xf32>
    %209 = arith.addf %206, %208 : vector<96x16xf32>
    %cst_86 = arith.constant dense<0.000000e+00> : vector<96x96xf32>
    %210 = tpu.matmul %197, %203, %cst_86 {dimension_numbers = #tpu.dot_dimension_numbers<[1], [1], [0], [0], [0, 0, 1, 0], [], []>} : vector<96x16xf32>, vector<96x16xf32>, vector<96x96xf32> -> vector<96x96xf32>
    %211 = arith.addf %210, %10 : vector<96x96xf32>
    %cst_87 = arith.constant dense<0xFF800000> : vector<96xf32>
    %212 = vector.multi_reduction <maximumf>, %211, %cst_87 [1] : vector<96x96xf32> to vector<96xf32>
    %213 = vector.shape_cast %212 : vector<96xf32> to vector<96x1xf32>
    %214 = vector.broadcast %213 : vector<96x1xf32> to vector<96x96xf32>
    %215 = arith.subf %211, %214 : vector<96x96xf32>
    %216 = math.exp %215 : vector<96x96xf32>
    %cst_88 = arith.constant dense<0.000000e+00> : vector<96xf32>
    %217 = vector.multi_reduction <add>, %216, %cst_88 [1] : vector<96x96xf32> to vector<96xf32>
    %218 = vector.shape_cast %217 : vector<96xf32> to vector<96x1xf32>
    %219 = tpu.reciprocal %218 {approx = true} : vector<96x1xf32> -> vector<96x1xf32>
    %220 = vector.broadcast %219 : vector<96x1xf32> to vector<96x96xf32>
    %221 = arith.mulf %216, %220 : vector<96x96xf32>
    %cst_89 = arith.constant dense<0.000000e+00> : vector<96x16xf32>
    %222 = tpu.matmul %221, %209, %cst_89 {dimension_numbers = #tpu.dot_dimension_numbers<[1], [0], [0], [1], [0, 0, 1, 1], [], []>} : vector<96x96xf32>, vector<96x16xf32>, vector<96x16xf32> -> vector<96x16xf32>
    %c2_90 = arith.constant 2 : index
    %c0_91 = arith.constant 0 : index
    %c0_92 = arith.constant 0 : index
    %223 = vector.load %arg4[%c2_90, %c0_91, %c0_92] : memref<4x16x32xf32, #tpu.memory_space<vmem>>, vector<1x16x32xf32>
    %224 = vector.shape_cast %223 : vector<1x16x32xf32> to vector<16x32xf32>
    %cst_93 = arith.constant dense<0.000000e+00> : vector<96x32xf32>
    %225 = tpu.matmul %222, %224, %cst_93 {dimension_numbers = #tpu.dot_dimension_numbers<[1], [0], [0], [1], [0, 0, 1, 1], [], []>} : vector<96x16xf32>, vector<16x32xf32>, vector<96x32xf32> -> vector<96x32xf32>
    %c3_94 = arith.constant 3 : index
    %c0_95 = arith.constant 0 : index
    %c0_96 = arith.constant 0 : index
    %226 = vector.load %arg3[%c3_94, %c0_95, %c0_96] : memref<4x3x16xf32, #tpu.memory_space<vmem>>, vector<1x3x16xf32>
    %227 = vector.shape_cast %226 : vector<1x3x16xf32> to vector<3x16xf32>
    %c9 = arith.constant 9 : index
    %c0_97 = arith.constant 0 : index
    %c0_98 = arith.constant 0 : index
    %228 = vector.load %arg2[%c9, %c0_97, %c0_98] : memref<12x32x16xf32, #tpu.memory_space<vmem>>, vector<1x32x16xf32>
    %229 = vector.shape_cast %228 : vector<1x32x16xf32> to vector<32x16xf32>
    %cst_99 = arith.constant dense<0.000000e+00> : vector<96x16xf32>
    %230 = tpu.matmul %189, %229, %cst_99 {dimension_numbers = #tpu.dot_dimension_numbers<[1], [0], [0], [1], [0, 0, 1, 1], [], []>} : vector<96x32xf32>, vector<32x16xf32>, vector<96x16xf32> -> vector<96x16xf32>
    %231 = vector.extract_strided_slice %227 {offsets = [0, 0], sizes = [1, 16], strides = [1, 1]} : vector<3x16xf32> to vector<1x16xf32>
    %232 = vector.broadcast %231 : vector<1x16xf32> to vector<96x16xf32>
    %233 = arith.addf %230, %232 : vector<96x16xf32>
    %c10 = arith.constant 10 : index
    %c0_100 = arith.constant 0 : index
    %c0_101 = arith.constant 0 : index
    %234 = vector.load %arg2[%c10, %c0_100, %c0_101] : memref<12x32x16xf32, #tpu.memory_space<vmem>>, vector<1x32x16xf32>
    %235 = vector.shape_cast %234 : vector<1x32x16xf32> to vector<32x16xf32>
    %cst_102 = arith.constant dense<0.000000e+00> : vector<96x16xf32>
    %236 = tpu.matmul %189, %235, %cst_102 {dimension_numbers = #tpu.dot_dimension_numbers<[1], [0], [0], [1], [0, 0, 1, 1], [], []>} : vector<96x32xf32>, vector<32x16xf32>, vector<96x16xf32> -> vector<96x16xf32>
    %237 = vector.extract_strided_slice %227 {offsets = [1, 0], sizes = [1, 16], strides = [1, 1]} : vector<3x16xf32> to vector<1x16xf32>
    %238 = vector.broadcast %237 : vector<1x16xf32> to vector<96x16xf32>
    %239 = arith.addf %236, %238 : vector<96x16xf32>
    %c11 = arith.constant 11 : index
    %c0_103 = arith.constant 0 : index
    %c0_104 = arith.constant 0 : index
    %240 = vector.load %arg2[%c11, %c0_103, %c0_104] : memref<12x32x16xf32, #tpu.memory_space<vmem>>, vector<1x32x16xf32>
    %241 = vector.shape_cast %240 : vector<1x32x16xf32> to vector<32x16xf32>
    %cst_105 = arith.constant dense<0.000000e+00> : vector<96x16xf32>
    %242 = tpu.matmul %189, %241, %cst_105 {dimension_numbers = #tpu.dot_dimension_numbers<[1], [0], [0], [1], [0, 0, 1, 1], [], []>} : vector<96x32xf32>, vector<32x16xf32>, vector<96x16xf32> -> vector<96x16xf32>
    %243 = vector.extract_strided_slice %227 {offsets = [2, 0], sizes = [1, 16], strides = [1, 1]} : vector<3x16xf32> to vector<1x16xf32>
    %244 = vector.broadcast %243 : vector<1x16xf32> to vector<96x16xf32>
    %245 = arith.addf %242, %244 : vector<96x16xf32>
    %cst_106 = arith.constant dense<0.000000e+00> : vector<96x96xf32>
    %246 = tpu.matmul %233, %239, %cst_106 {dimension_numbers = #tpu.dot_dimension_numbers<[1], [1], [0], [0], [0, 0, 1, 0], [], []>} : vector<96x16xf32>, vector<96x16xf32>, vector<96x96xf32> -> vector<96x96xf32>
    %247 = arith.addf %246, %10 : vector<96x96xf32>
    %cst_107 = arith.constant dense<0xFF800000> : vector<96xf32>
    %248 = vector.multi_reduction <maximumf>, %247, %cst_107 [1] : vector<96x96xf32> to vector<96xf32>
    %249 = vector.shape_cast %248 : vector<96xf32> to vector<96x1xf32>
    %250 = vector.broadcast %249 : vector<96x1xf32> to vector<96x96xf32>
    %251 = arith.subf %247, %250 : vector<96x96xf32>
    %252 = math.exp %251 : vector<96x96xf32>
    %cst_108 = arith.constant dense<0.000000e+00> : vector<96xf32>
    %253 = vector.multi_reduction <add>, %252, %cst_108 [1] : vector<96x96xf32> to vector<96xf32>
    %254 = vector.shape_cast %253 : vector<96xf32> to vector<96x1xf32>
    %255 = tpu.reciprocal %254 {approx = true} : vector<96x1xf32> -> vector<96x1xf32>
    %256 = vector.broadcast %255 : vector<96x1xf32> to vector<96x96xf32>
    %257 = arith.mulf %252, %256 : vector<96x96xf32>
    %cst_109 = arith.constant dense<0.000000e+00> : vector<96x16xf32>
    %258 = tpu.matmul %257, %245, %cst_109 {dimension_numbers = #tpu.dot_dimension_numbers<[1], [0], [0], [1], [0, 0, 1, 1], [], []>} : vector<96x96xf32>, vector<96x16xf32>, vector<96x16xf32> -> vector<96x16xf32>
    %c3_110 = arith.constant 3 : index
    %c0_111 = arith.constant 0 : index
    %c0_112 = arith.constant 0 : index
    %259 = vector.load %arg4[%c3_110, %c0_111, %c0_112] : memref<4x16x32xf32, #tpu.memory_space<vmem>>, vector<1x16x32xf32>
    %260 = vector.shape_cast %259 : vector<1x16x32xf32> to vector<16x32xf32>
    %cst_113 = arith.constant dense<0.000000e+00> : vector<96x32xf32>
    %261 = tpu.matmul %258, %260, %cst_113 {dimension_numbers = #tpu.dot_dimension_numbers<[1], [0], [0], [1], [0, 0, 1, 1], [], []>} : vector<96x16xf32>, vector<16x32xf32>, vector<96x32xf32> -> vector<96x32xf32>
    %262 = arith.addf %225, %261 : vector<96x32xf32>
    %263 = arith.addf %158, %262 : vector<96x32xf32>
    %264 = vector.broadcast %165 : vector<1x32xf32> to vector<96x32xf32>
    %265 = arith.addf %263, %264 : vector<96x32xf32>
    %cst_114 = arith.constant dense<0.000000e+00> : vector<96xf32>
    %266 = vector.multi_reduction <add>, %265, %cst_114 [1] : vector<96x32xf32> to vector<96xf32>
    %267 = vector.shape_cast %266 : vector<96xf32> to vector<96x1xf32>
    %cst_115 = arith.constant 3.200000e+01 : f32
    %268 = vector.broadcast %cst_115 : f32 to vector<96x1xf32>
    %269 = arith.divf %267, %268 : vector<96x1xf32>
    %270 = vector.broadcast %269 : vector<96x1xf32> to vector<96x32xf32>
    %271 = arith.subf %265, %270 : vector<96x32xf32>
    %272 = arith.mulf %271, %271 : vector<96x32xf32>
    %cst_116 = arith.constant dense<0.000000e+00> : vector<96xf32>
    %273 = vector.multi_reduction <add>, %272, %cst_116 [1] : vector<96x32xf32> to vector<96xf32>
    %274 = vector.shape_cast %273 : vector<96xf32> to vector<96x1xf32>
    %cst_117 = arith.constant 3.200000e+01 : f32
    %275 = vector.broadcast %cst_117 : f32 to vector<96x1xf32>
    %276 = arith.divf %274, %275 : vector<96x1xf32>
    %277 = vector.broadcast %269 : vector<96x1xf32> to vector<96x32xf32>
    %278 = arith.subf %265, %277 : vector<96x32xf32>
    %cst_118 = arith.constant 9.99999974E-6 : f32
    %279 = vector.broadcast %cst_118 : f32 to vector<96x1xf32>
    %280 = arith.addf %276, %279 : vector<96x1xf32>
    %281 = math.rsqrt %280 : vector<96x1xf32>
    %282 = vector.broadcast %281 : vector<96x1xf32> to vector<96x32xf32>
    %283 = arith.mulf %278, %282 : vector<96x32xf32>
    %284 = vector.broadcast %163 : vector<1x32xf32> to vector<96x32xf32>
    %285 = arith.mulf %283, %284 : vector<96x32xf32>
    %286 = vector.broadcast %164 : vector<1x32xf32> to vector<96x32xf32>
    %287 = arith.addf %285, %286 : vector<96x32xf32>
    %c1_119 = arith.constant 1 : index
    %c0_120 = arith.constant 0 : index
    %c0_121 = arith.constant 0 : index
    %288 = vector.load %arg5[%c1_119, %c0_120, %c0_121] : memref<2x32x128xf32, #tpu.memory_space<vmem>>, vector<1x32x128xf32>
    %289 = vector.shape_cast %288 : vector<1x32x128xf32> to vector<32x128xf32>
    %cst_122 = arith.constant dense<0.000000e+00> : vector<96x128xf32>
    %290 = tpu.matmul %287, %289, %cst_122 {dimension_numbers = #tpu.dot_dimension_numbers<[1], [0], [0], [1], [0, 0, 1, 1], [], []>} : vector<96x32xf32>, vector<32x128xf32>, vector<96x128xf32> -> vector<96x128xf32>
    %291 = vector.broadcast %166 : vector<1x128xf32> to vector<96x128xf32>
    %292 = arith.addf %290, %291 : vector<96x128xf32>
    %cst_123 = arith.constant 1.702000e+00 : f32
    %293 = vector.broadcast %cst_123 : f32 to vector<96x128xf32>
    %294 = arith.mulf %293, %292 : vector<96x128xf32>
    %295 = arith.negf %294 : vector<96x128xf32>
    %296 = math.exp %295 : vector<96x128xf32>
    %cst_124 = arith.constant 1.000000e+00 : f32
    %297 = vector.broadcast %cst_124 : f32 to vector<96x128xf32>
    %298 = arith.addf %297, %296 : vector<96x128xf32>
    %299 = arith.divf %297, %298 : vector<96x128xf32>
    %300 = arith.mulf %292, %299 : vector<96x128xf32>
    %c1_125 = arith.constant 1 : index
    %c0_126 = arith.constant 0 : index
    %c0_127 = arith.constant 0 : index
    %301 = vector.load %arg6[%c1_125, %c0_126, %c0_127] : memref<2x128x32xf32, #tpu.memory_space<vmem>>, vector<1x128x32xf32>
    %302 = vector.shape_cast %301 : vector<1x128x32xf32> to vector<128x32xf32>
    %cst_128 = arith.constant dense<0.000000e+00> : vector<96x32xf32>
    %303 = tpu.matmul %300, %302, %cst_128 {dimension_numbers = #tpu.dot_dimension_numbers<[1], [0], [0], [1], [0, 0, 1, 1], [], []>} : vector<96x128xf32>, vector<128x32xf32>, vector<96x32xf32> -> vector<96x32xf32>
    %304 = arith.addf %265, %303 : vector<96x32xf32>
    %305 = vector.broadcast %167 : vector<1x32xf32> to vector<96x32xf32>
    %306 = arith.addf %304, %305 : vector<96x32xf32>
    %c0_129 = arith.constant 0 : index
    %c0_130 = arith.constant 0 : index
    %c0_131 = arith.constant 0 : index
    %307 = vector.load %arg7[%c0_129, %c0_130, %c0_131] : memref<2x8x128xf32, #tpu.memory_space<vmem>>, vector<1x8x128xf32>
    %308 = vector.shape_cast %307 : vector<1x8x128xf32> to vector<8x128xf32>
    %309 = vector.extract_strided_slice %308 {offsets = [7, 0], sizes = [1, 32], strides = [1, 1]} : vector<8x128xf32> to vector<1x32xf32>
    %c1_132 = arith.constant 1 : index
    %c0_133 = arith.constant 0 : index
    %c0_134 = arith.constant 0 : index
    %310 = vector.load %arg7[%c1_132, %c0_133, %c0_134] : memref<2x8x128xf32, #tpu.memory_space<vmem>>, vector<1x8x128xf32>
    %311 = vector.shape_cast %310 : vector<1x8x128xf32> to vector<8x128xf32>
    %312 = vector.extract_strided_slice %311 {offsets = [7, 0], sizes = [1, 32], strides = [1, 1]} : vector<8x128xf32> to vector<1x32xf32>
    %cst_135 = arith.constant dense<0.000000e+00> : vector<96xf32>
    %313 = vector.multi_reduction <add>, %306, %cst_135 [1] : vector<96x32xf32> to vector<96xf32>
    %314 = vector.shape_cast %313 : vector<96xf32> to vector<96x1xf32>
    %cst_136 = arith.constant 3.200000e+01 : f32
    %315 = vector.broadcast %cst_136 : f32 to vector<96x1xf32>
    %316 = arith.divf %314, %315 : vector<96x1xf32>
    %317 = vector.broadcast %316 : vector<96x1xf32> to vector<96x32xf32>
    %318 = arith.subf %306, %317 : vector<96x32xf32>
    %319 = arith.mulf %318, %318 : vector<96x32xf32>
    %cst_137 = arith.constant dense<0.000000e+00> : vector<96xf32>
    %320 = vector.multi_reduction <add>, %319, %cst_137 [1] : vector<96x32xf32> to vector<96xf32>
    %321 = vector.shape_cast %320 : vector<96xf32> to vector<96x1xf32>
    %cst_138 = arith.constant 3.200000e+01 : f32
    %322 = vector.broadcast %cst_138 : f32 to vector<96x1xf32>
    %323 = arith.divf %321, %322 : vector<96x1xf32>
    %324 = vector.broadcast %316 : vector<96x1xf32> to vector<96x32xf32>
    %325 = arith.subf %306, %324 : vector<96x32xf32>
    %cst_139 = arith.constant 9.99999974E-6 : f32
    %326 = vector.broadcast %cst_139 : f32 to vector<96x1xf32>
    %327 = arith.addf %323, %326 : vector<96x1xf32>
    %328 = math.rsqrt %327 : vector<96x1xf32>
    %329 = vector.broadcast %328 : vector<96x1xf32> to vector<96x32xf32>
    %330 = arith.mulf %325, %329 : vector<96x32xf32>
    %331 = vector.broadcast %309 : vector<1x32xf32> to vector<96x32xf32>
    %332 = arith.mulf %330, %331 : vector<96x32xf32>
    %333 = vector.broadcast %312 : vector<1x32xf32> to vector<96x32xf32>
    %334 = arith.addf %332, %333 : vector<96x32xf32>
    %c0_140 = arith.constant 0 : index
    %c0_141 = arith.constant 0 : index
    %335 = vector.load %arg1[%c0_140, %c0_141] : memref<12x96xf32, #tpu.memory_space<vmem>>, vector<12x96xf32>
    %cst_142 = arith.constant dense<0.000000e+00> : vector<12x32xf32>
    %336 = tpu.matmul %335, %334, %cst_142 {dimension_numbers = #tpu.dot_dimension_numbers<[1], [0], [0], [1], [0, 0, 1, 1], [], []>} : vector<12x96xf32>, vector<96x32xf32>, vector<12x32xf32> -> vector<12x32xf32>
    %c0_143 = arith.constant 0 : index
    %c0_144 = arith.constant 0 : index
    %337 = vector.load %arg8[%c0_143, %c0_144] : memref<32x32xf32, #tpu.memory_space<vmem>>, vector<32x32xf32>
    %cst_145 = arith.constant dense<0.000000e+00> : vector<12x32xf32>
    %338 = tpu.matmul %336, %337, %cst_145 {dimension_numbers = #tpu.dot_dimension_numbers<[1], [0], [0], [1], [0, 0, 1, 1], [], []>} : vector<12x32xf32>, vector<32x32xf32>, vector<12x32xf32> -> vector<12x32xf32>
    %339 = arith.mulf %338, %338 : vector<12x32xf32>
    %cst_146 = arith.constant dense<0.000000e+00> : vector<12xf32>
    %340 = vector.multi_reduction <add>, %339, %cst_146 [1] : vector<12x32xf32> to vector<12xf32>
    %341 = vector.shape_cast %340 : vector<12xf32> to vector<12x1xf32>
    %cst_147 = arith.constant 1.000000e-24 : f32
    %342 = vector.broadcast %cst_147 : f32 to vector<12x1xf32>
    %343 = arith.maximumf %341, %342 : vector<12x1xf32>
    %344 = math.rsqrt %343 : vector<12x1xf32>
    %345 = vector.broadcast %344 : vector<12x1xf32> to vector<12x32xf32>
    %346 = arith.mulf %338, %345 : vector<12x32xf32>
    %c0_148 = arith.constant 0 : index
    %c0_149 = arith.constant 0 : index
    %347 = vector.load %arg9[%c0_148, %c0_149] : memref<4x32xf32, #tpu.memory_space<vmem>>, vector<4x32xf32>
    %cst_150 = arith.constant dense<0.000000e+00> : vector<12x4xf32>
    %348 = tpu.matmul %346, %347, %cst_150 {dimension_numbers = #tpu.dot_dimension_numbers<[1], [1], [0], [0], [0, 0, 1, 0], [], []>} : vector<12x32xf32>, vector<4x32xf32>, vector<12x4xf32> -> vector<12x4xf32>
    %cst_151 = arith.constant 14.2857141 : f32
    %349 = vector.broadcast %cst_151 : f32 to vector<12x4xf32>
    %350 = arith.mulf %348, %349 : vector<12x4xf32>
    %cst_152 = arith.constant dense<0xFF800000> : vector<4xf32>
    %351 = vector.multi_reduction <maximumf>, %350, %cst_152 [0] : vector<12x4xf32> to vector<4xf32>
    %352 = vector.shape_cast %351 : vector<4xf32> to vector<1x4xf32>
    %353 = vector.broadcast %352 : vector<1x4xf32> to vector<12x4xf32>
    %354 = arith.subf %350, %353 : vector<12x4xf32>
    %355 = math.exp %354 : vector<12x4xf32>
    %cst_153 = arith.constant dense<0.000000e+00> : vector<4xf32>
    %356 = vector.multi_reduction <add>, %355, %cst_153 [0] : vector<12x4xf32> to vector<4xf32>
    %357 = vector.shape_cast %356 : vector<4xf32> to vector<1x4xf32>
    %358 = math.log %357 : vector<1x4xf32>
    %359 = arith.addf %358, %352 : vector<1x4xf32>
    %360 = tpu.iota {dimensions = array<i32: 0>} : vector<12x4xi32>
    %361 = tpu.iota {dimensions = array<i32: 1>} : vector<12x4xi32>
    %c0_154 = arith.constant 0 : index
    %c0_155 = arith.constant 0 : index
    %362 = vector.load %arg10[%c0_154, %c0_155] : memref<1x4xi32, #tpu.memory_space<vmem>>, vector<1x4xi32>
    %363 = vector.broadcast %362 : vector<1x4xi32> to vector<12x4xi32>
    %364 = arith.cmpi eq, %360, %363 : vector<12x4xi32>
    %cst_156 = arith.constant 0.000000e+00 : f32
    %365 = vector.broadcast %cst_156 : f32 to vector<12x4xf32>
    %366 = arith.select %364, %350, %365 : vector<12x4xi1>, vector<12x4xf32>
    %cst_157 = arith.constant dense<0.000000e+00> : vector<4xf32>
    %367 = vector.multi_reduction <add>, %366, %cst_157 [0] : vector<12x4xf32> to vector<4xf32>
    %368 = vector.shape_cast %367 : vector<4xf32> to vector<1x4xf32>
    %369 = arith.subf %359, %368 : vector<1x4xf32>
    %370 = vector.shape_cast %369 : vector<1x4xf32> to vector<1x1x4xf32>
    %cst_158 = arith.constant dense<0.000000e+00> : vector<1xf32>
    %371 = vector.multi_reduction <add>, %370, %cst_158 [1, 2] : vector<1x1x4xf32> to vector<1xf32>
    %372 = vector.shape_cast %371 : vector<1xf32> to vector<1x1x1xf32>
    %373 = vector.extract %372[0, 0, 0] : f32 from vector<1x1x1xf32>
    %cst_159 = arith.constant 4.000000e+00 : f32
    %374 = arith.divf %373, %cst_159 : f32
    %cst_160 = arith.constant dense<0xFF800000> : vector<12xf32>
    %375 = vector.multi_reduction <maximumf>, %350, %cst_160 [1] : vector<12x4xf32> to vector<12xf32>
    %376 = vector.shape_cast %375 : vector<12xf32> to vector<12x1xf32>
    %377 = vector.broadcast %376 : vector<12x1xf32> to vector<12x4xf32>
    %378 = arith.subf %350, %377 : vector<12x4xf32>
    %379 = math.exp %378 : vector<12x4xf32>
    %cst_161 = arith.constant dense<0.000000e+00> : vector<12xf32>
    %380 = vector.multi_reduction <add>, %379, %cst_161 [1] : vector<12x4xf32> to vector<12xf32>
    %381 = vector.shape_cast %380 : vector<12xf32> to vector<12x1xf32>
    %382 = math.log %381 : vector<12x1xf32>
    %383 = arith.addf %382, %376 : vector<12x1xf32>
    %c3_i32 = arith.constant 3 : i32
    %384 = vector.broadcast %c3_i32 : i32 to vector<12x4xi32>
    %385 = arith.muli %384, %361 : vector<12x4xi32>
    %386 = arith.cmpi sge, %360, %385 : vector<12x4xi32>
    %c3_i32_162 = arith.constant 3 : i32
    %387 = vector.broadcast %c3_i32_162 : i32 to vector<12x4xi32>
    %388 = arith.muli %387, %361 : vector<12x4xi32>
    %c3_i32_163 = arith.constant 3 : i32
    %389 = vector.broadcast %c3_i32_163 : i32 to vector<12x4xi32>
    %390 = arith.addi %388, %389 : vector<12x4xi32>
    %391 = arith.cmpi slt, %360, %390 : vector<12x4xi32>
    %392 = arith.andi %386, %391 : vector<12x4xi1>
    %cst_164 = arith.constant 0.000000e+00 : f32
    %393 = vector.broadcast %cst_164 : f32 to vector<12x4xf32>
    %394 = arith.select %392, %350, %393 : vector<12x4xi1>, vector<12x4xf32>
    %cst_165 = arith.constant dense<0.000000e+00> : vector<12xf32>
    %395 = vector.multi_reduction <add>, %394, %cst_165 [1] : vector<12x4xf32> to vector<12xf32>
    %396 = vector.shape_cast %395 : vector<12xf32> to vector<12x1xf32>
    %397 = arith.subf %383, %396 : vector<12x1xf32>
    %398 = vector.shape_cast %397 : vector<12x1xf32> to vector<1x12x1xf32>
    %cst_166 = arith.constant dense<0.000000e+00> : vector<1xf32>
    %399 = vector.multi_reduction <add>, %398, %cst_166 [1, 2] : vector<1x12x1xf32> to vector<1xf32>
    %400 = vector.shape_cast %399 : vector<1xf32> to vector<1x1x1xf32>
    %401 = vector.extract %400[0, 0, 0] : f32 from vector<1x1x1xf32>
    %cst_167 = arith.constant 1.200000e+01 : f32
    %402 = arith.divf %401, %cst_167 : f32
    %403 = arith.addf %374, %402 : f32
    %cst_168 = arith.constant 5.000000e-01 : f32
    %404 = arith.mulf %403, %cst_168 : f32
    %cst_169 = arith.constant 0.000000e+00 : f32
    %405 = vector.broadcast %cst_169 : f32 to vector<32x128xf32>
    %c0_170 = arith.constant 0 : index
    %c0_171 = arith.constant 0 : index
    %406 = vector.load %arg11[%c0_170, %c0_171] : memref<32x128xf32, #tpu.memory_space<vmem>>, vector<32x128xf32>
    tpu.vector_store %arg11[%c0_170, %c0_171], %405 {strides = array<i32>} : memref<32x128xf32, #tpu.memory_space<vmem>>, vector<32x128xf32>,
    %c0_172 = arith.constant 0 : index
    %c0_173 = arith.constant 0 : index
    %407 = vector.load %arg11[%c0_172, %c0_173] : memref<32x128xf32, #tpu.memory_space<vmem>>, vector<12x32xf32>
    tpu.vector_store %arg11[%c0_172, %c0_173], %338 {strides = array<i32>} : memref<32x128xf32, #tpu.memory_space<vmem>>, vector<12x32xf32>,
    %c16 = arith.constant 16 : index
    %c0_174 = arith.constant 0 : index
    %408 = vector.load %arg11[%c16, %c0_174] : memref<32x128xf32, #tpu.memory_space<vmem>>, vector<12x4xf32>
    tpu.vector_store %arg11[%c16, %c0_174], %350 {strides = array<i32>} : memref<32x128xf32, #tpu.memory_space<vmem>>, vector<12x4xf32>,
    %409 = vector.broadcast %404 : f32 to vector<1x1xf32>
    %c28 = arith.constant 28 : index
    %c0_175 = arith.constant 0 : index
    %410 = vector.load %arg11[%c28, %c0_175] : memref<32x128xf32, #tpu.memory_space<vmem>>, vector<1x1xf32>
    tpu.vector_store %arg11[%c28, %c0_175], %409 {strides = array<i32>} : memref<32x128xf32, #tpu.memory_space<vmem>>, vector<1x1xf32>,
    return
  }
}

</mosaic_0001>

<bundles_post_ra>
// kernel: tng_clip_forward.1
= control target key start
LH: loop header
LB: loop body
LE: loop exit
PB: predicated region body
PF: predicated region fallthrough
CT: control target
= control target key end

     0   :  { %vm126_vm0 = vcmask 261120   ;;  %vm754_vm1 = vcmask 130048   ;;  %vm952_vm13 = vcmask 785408   ;;  %s12422_s0 = inlined_call_operand.vmem [shape: f32[96,32], index: 0, kind: input, shape index: {}]   ;;  %s12423_s2 = inlined_call_operand.vmem [shape: f32[12,32,16], index: 2, kind: input, shape index: {}]   ;;  %s12424_s7 = inlined_call_operand.vmem [shape: f32[2,8,128], index: 7, kind: input, shape index: {}]   ;;  %s12425_s3 = inlined_call_operand.vmem [shape: f32[4,3,16], index: 3, kind: input, shape index: {}]   ;;  %s12426_s4 = inlined_call_operand.vmem [shape: f32[4,16,32], index: 4, kind: input, shape index: {}]   ;;  %s12427_s5 = inlined_call_operand.vmem [shape: f32[2,32,128], index: 5, kind: input, shape index: {}]   ;;  %s12428_s6 = inlined_call_operand.vmem [shape: f32[2,128,32], index: 6, kind: input, shape index: {}]   ;;  %s12429_s1 = inlined_call_operand.vmem [shape: f32[12,96], index: 1, kind: input, shape index: {}]   ;;  %s12430_s8 = inlined_call_operand.vmem [shape: f32[32,32], index: 8, kind: input, shape index: {}]   ;;  %s12431_s11 = inlined_call_operand.vmem [shape: f32[32,128], index: 11, kind: output, shape index: {}]   ;;  %s12432_s9 = inlined_call_operand.vmem [shape: f32[4,32], index: 9, kind: input, shape index: {}]   ;;  %s12433_s10 = inlined_call_operand.vmem [shape: s32[1,4], index: 10, kind: input, shape index: {}]  }
   0x1   :  { %v38_v0 = vld [vmem:[%s12422_s0] sm:$0xff]  ;;  %v40_v1 = vld [vmem:[%s12422_s0 + $0x10] sm:$0xff]  ;;  %v39_v2 = vld [vmem:[%s12422_s0 + $0x8] sm:$0xff] }
   0x2   :  { %v127_v3 = vsel %vm126_vm0, %v38_v0, 0.0  ;;  %v133_v4 = vsel %vm126_vm0, %v40_v1, 0.0  ;;  %v41_v5 = vld [vmem:[%s12422_s0 + $0x18] sm:$0xff]  ;;  %v130_v6 = vsel %vm126_vm0, %v39_v2, 0.0  ;;  %v42_v8 = vld [vmem:[%s12422_s0 + $0x20] sm:$0xff]  ;;  %v43_v9 = vld [vmem:[%s12422_s0 + $0x28] sm:$0xff] }
   0x3   :  { %128 = vadd.xlane.f32.xlu0 %v127_v3  ;;  %134 = vadd.xlane.f32.xlu1 %v133_v4  ;;  %v136_v7 = vsel %vm126_vm0, %v41_v5, 0.0  ;;  %v139_v10 = vsel %vm126_vm0, %v42_v8, 0.0  ;;  %v142_v11 = vsel %vm126_vm0, %v43_v9, 0.0  ;;  %v44_v12 = vld [vmem:[%s12422_s0 + $0x30] sm:$0xff]  ;;  %v45_v13 = vld [vmem:[%s12422_s0 + $0x38] sm:$0xff]  ;;  %v46_v16 = vld [vmem:[%s12422_s0 + $0x40] sm:$0xff] }
   0x4   :  { %v145_v14 = vsel %vm126_vm0, %v44_v12, 0.0  ;;  %v148_v15 = vsel %vm126_vm0, %v45_v13, 0.0  ;;  %v47_v17 = vld [vmem:[%s12422_s0 + $0x48] sm:$0xff]  ;;  %v151_v18 = vsel %vm126_vm0, %v46_v16, 0.0  ;;  %v9694_v20 = vld [vmem:[%s12422_s0 + $0x50] sm:$0xff]  ;;  %v9699_v21 = vld [vmem:[%s12422_s0 + $0x58] sm:$0xff] }
   0x5   :  { %v154_v19 = vsel %vm126_vm0, %v47_v17, 0.0  ;;  %v157_v22 = vsel %vm126_vm0, %v9694_v20, 0.0  ;;  %v160_v23 = vsel %vm126_vm0, %v9699_v21, 0.0  ;;  %vm9969_vm2 = vmpackc.low %vm754_vm1, %vm754_vm1 }
   0x7   :  { %131 = vadd.xlane.f32.xlu0 %v130_v6  ;;  %137 = vadd.xlane.f32.xlu1 %v136_v7 }
   0xb   :  { %140 = vadd.xlane.f32.xlu0 %v139_v10  ;;  %143 = vadd.xlane.f32.xlu1 %v142_v11 }
   0xf   :  { %146 = vadd.xlane.f32.xlu0 %v145_v14  ;;  %149 = vadd.xlane.f32.xlu1 %v148_v15 }
  0x13   :  { %152 = vadd.xlane.f32.xlu0 %v151_v18  ;;  %155 = vadd.xlane.f32.xlu1 %v154_v19 }
  0x17   :  { %158 = vadd.xlane.f32.xlu0 %v157_v22  ;;  %161 = vadd.xlane.f32.xlu1 %v160_v23  ;;  %v6717_v22 = vld [vmem:[%s12423_s2 + $0x20] sm:$0xff] }
  0x90   :  { %v129_v24 = vpop.xlane.xlu0 %128  ;;  %v135_v25 = vpop.xlane.xlu1 %134 }
  0x91   :  { %v164_v26 = vmul.f32 0.03125, %v129_v24  ;;  %v166_v27 = vmul.f32 0.03125, %v135_v25  ;;  %v6718_v24 = vld [vmem:[%s12423_s2 + $0x28] sm:$0xff] }
  0x92   :  { %v8661_v25 = vpack.c.bf16 %v6718_v24, %v6717_v22 }
  0x93   :  { %v9705_v28 = vsub.f32 %v38_v0, %v164_v26  ;;  %v9707_v29 = vsub.f32 %v40_v1, %v166_v27  ;;  %v319_v26 = vld [vmem:[%s12423_s2 + $0x10] sm:$0xff]  ;;  %v320_v27 = vld [vmem:[%s12423_s2 + $0x18] sm:$0xff] }
  0x94   :  { %v132_v30 = vpop.xlane.xlu0 %131  ;;  %v138_v31 = vpop.xlane.xlu1 %137  ;;  %8662 = vmatprep.subr.bf16.mxu1 %v8661_v25 }
  0x95   :  { %v165_v32 = vmul.f32 0.03125, %v132_v30  ;;  %v167_v33 = vmul.f32 0.03125, %v138_v31  ;;  %v188_v34 = vmul.f32 %v9705_v28, %v9705_v28  ;;  %v190_v35 = vmul.f32 %v9707_v29, %v9707_v29  ;;  %v6719_v30 = vld [vmem:[%s12423_s2 + $0x30] sm:$0xff]  ;;  %8664 = vmatpush3.bf16.msra.mxu1 %v8661_v25 }
  0x96   :  { %v8657_v31 = vpack.c.bf16 %v320_v27, %v319_v26 }
  0x97   :  { %v9713_v36 = vsub.f32 %v39_v2, %v165_v32  ;;  %v9715_v37 = vsub.f32 %v41_v5, %v167_v33  ;;  %v200_v38 = vsel %vm126_vm0, %v188_v34, 0.0  ;;  %v206_v41 = vsel %vm126_vm0, %v190_v35, 0.0  ;;  %v6720_v32 = vld [vmem:[%s12423_s2 + $0x38] sm:$0xff]  ;;  %v6733_v34 = vld [vmem:[%s12423_s2 + $0x40] sm:$0xff]  ;;  %v6734_v35 = vld [vmem:[%s12423_s2 + $0x48] sm:$0xff] }
  0x98   :  { %201 = vadd.xlane.f32.xlu0 %v200_v38  ;;  %v141_v39 = vpop.xlane.xlu0 %140  ;;  %v144_v40 = vpop.xlane.xlu1 %143  ;;  %v8665_v33 = vpack.c.bf16 %v6720_v32, %v6719_v30  ;;  %v9797_v38 = vpack.c.bf16 %v6734_v35, %v6733_v34  ;;  %v6735_v30 = vld [vmem:[%s12423_s2 + $0x50] sm:$0xff] }
  0x99   :  { %v168_v42 = vmul.f32 0.03125, %v141_v39  ;;  %v169_v43 = vmul.f32 0.03125, %v144_v40  ;;  %v189_v44 = vmul.f32 %v9713_v36, %v9713_v36  ;;  %v191_v45 = vmul.f32 %v9715_v37, %v9715_v37 }
  0x9a   :  { %8666 = vmatprep.subr.bf16.mxu1 %v8665_v33 }
  0x9b   :  { %v9723_v46 = vsub.f32 %v42_v8, %v168_v42  ;;  %v9725_v47 = vsub.f32 %v43_v9, %v169_v43  ;;  %v203_v48 = vsel %vm126_vm0, %v189_v44, 0.0  ;;  %v209_v51 = vsel %vm126_vm0, %v191_v45, 0.0  ;;  %8668 = vmatpush3.bf16.msra.mxu1 %v8665_v33 }
  0x9c   :  { %207 = vadd.xlane.f32.xlu0 %v206_v41  ;;  %204 = vadd.xlane.f32.xlu1 %v203_v48  ;;  %v147_v49 = vpop.xlane.xlu0 %146  ;;  %v150_v50 = vpop.xlane.xlu1 %149  ;;  %v50_v41 = vlaneseq }
  0x9d   :  { %v170_v52 = vmul.f32 0.03125, %v147_v49  ;;  %v171_v53 = vmul.f32 0.03125, %v150_v50  ;;  %v192_v54 = vmul.f32 %v9723_v46, %v9723_v46  ;;  %v193_v55 = vmul.f32 %v9725_v47, %v9725_v47 }
  0x9e   :  { %v9801_v49 = vshrl.u32 %v50_v41, 7 }
  0x9f   :  { %v9733_v56 = vsub.f32 %v44_v12, %v170_v52  ;;  %v9735_v57 = vsub.f32 %v45_v13, %v171_v53  ;;  %v212_v58 = vsel %vm126_vm0, %v192_v54, 0.0  ;;  %v215_v61 = vsel %vm126_vm0, %v193_v55, 0.0 }
  0xa0   :  { %210 = vadd.xlane.f32.xlu1 %v209_v51  ;;  %213 = vadd.xlane.f32.xlu0 %v212_v58  ;;  %v153_v59 = vpop.xlane.xlu0 %152  ;;  %v156_v60 = vpop.xlane.xlu1 %155  ;;  %v9804_v58 = vsub.s32 0, %v9801_v49 }
  0xa1   :  { %v172_v62 = vmul.f32 0.03125, %v153_v59  ;;  %v173_v63 = vmul.f32 0.03125, %v156_v60  ;;  %v194_v0 = vmul.f32 %v9733_v56, %v9733_v56  ;;  %v195_v1 = vmul.f32 %v9735_v57, %v9735_v57  ;;  %v125_v59 = vld [vmem:[%s12424_s7] sm:$0xff] }
  0xa3   :  { %v9743_v2 = vsub.f32 %v46_v16, %v172_v62  ;;  %v9745_v3 = vsub.f32 %v47_v17, %v173_v63  ;;  %v218_v4 = vsel %vm126_vm0, %v194_v0, 0.0  ;;  %v221_v7 = vsel %vm126_vm0, %v195_v1, 0.0 }
  0xa4   :  { %216 = vadd.xlane.f32.xlu1 %v215_v61  ;;  %219 = vadd.xlane.f32.xlu0 %v218_v4  ;;  %v159_v5 = vpop.xlane.xlu0 %158  ;;  %v162_v6 = vpop.xlane.xlu1 %161  ;;  %v9810_v0 = vsub.s32 1, %v9801_v49 }
  0xa5   :  { %v174_v8 = vmul.f32 0.03125, %v159_v5  ;;  %v175_v9 = vmul.f32 0.03125, %v162_v6  ;;  %v196_v10 = vmul.f32 %v9743_v2, %v9743_v2  ;;  %v197_v11 = vmul.f32 %v9745_v3, %v9745_v3 }
  0xa6   :  { %v9813_v5 = vrot.slane %v125_v59, %v9804_v58 }
  0xa7   :  { %v9754_v12 = vsub.f32 %v9694_v20, %v174_v8  ;;  %v9757_v13 = vsub.f32 %v9699_v21, %v175_v9  ;;  %v224_v14 = vsel %vm126_vm0, %v196_v10, 0.0  ;;  %v227_v15 = vsel %vm126_vm0, %v197_v11, 0.0  ;;  %v317_v20 = vld [vmem:[%s12423_s2] sm:$0xff]  ;;  %v318_v21 = vld [vmem:[%s12423_s2 + $0x8] sm:$0xff] }
  0xa8   :  { %222 = vadd.xlane.f32.xlu1 %v221_v7  ;;  %225 = vadd.xlane.f32.xlu0 %v224_v14  ;;  %v8653_v23 = vpack.c.bf16 %v318_v21, %v317_v20  ;;  %v9817_v14 = vrot.slane %v125_v59, %v9810_v0 }
  0xa9   :  { %v198_v16 = vmul.f32 %v9754_v12, %v9754_v12  ;;  %v199_v17 = vmul.f32 %v9757_v13, %v9757_v13 }
  0xaa   :  { %8654 = vmatprep.subr.bf16.mxu0 %v8653_v23 }
  0xab   :  { %v230_v18 = vsel %vm126_vm0, %v198_v16, 0.0  ;;  %v233_v19 = vsel %vm126_vm0, %v199_v17, 0.0  ;;  %8656 = vmatpush3.bf16.msra.mxu0 %v8653_v23 }
  0xac   :  { %228 = vadd.xlane.f32.xlu1 %v227_v15  ;;  %231 = vadd.xlane.f32.xlu0 %v230_v18 }
  0xad   :  { %8658 = vmatprep.subr.bf16.mxu0 %v8657_v31 }
  0xaf   :  { %8660 = vmatpush3.bf16.msra.mxu0 %v8657_v31  ;;  %v6736_v31 = vld [vmem:[%s12423_s2 + $0x58] sm:$0xff] }
  0xb0   :  { %234 = vadd.xlane.f32.xlu1 %v233_v19  ;;  %8670 = vmatprep.subr.bf16.mxu0 %v9797_v38 }
 0x125   :  { %v202_v39 = vpop.xlane.xlu0 %201 }
 0x126   :  { %v236_v40 = vmul.f32 0.03125, %v202_v39 }
 0x128   :  { %v248_v42 = vadd.f32 1e-05, %v236_v40 }
 0x129   :  { %v205_v43 = vpop.xlane.xlu1 %204  ;;  %v208_v44 = vpop.xlane.xlu0 %207 }
 0x12a   :  { %9147 = vrsqrt.f32 %v248_v42  ;;  %v237_v45 = vmul.f32 0.03125, %v205_v43  ;;  %v238_v48 = vmul.f32 0.03125, %v208_v44  ;;  %v8673_v43 = vpack.c.bf16 %v6736_v31, %v6735_v30 }
 0x12c   :  { %v249_v50 = vadd.f32 1e-05, %v237_v45  ;;  %v250_v51 = vadd.f32 1e-05, %v238_v48 }
 0x12d   :  { %v211_v52 = vpop.xlane.xlu1 %210  ;;  %v214_v53 = vpop.xlane.xlu0 %213 }
 0x12e   :  { %9149 = vrsqrt.f32 %v249_v50  ;;  %v239_v54 = vmul.f32 0.03125, %v211_v52  ;;  %v240_v55 = vmul.f32 0.03125, %v214_v53 }
 0x12f   :  { %9151 = vrsqrt.f32 %v250_v51 }
 0x130   :  { %v251_v60 = vadd.f32 1e-05, %v239_v54  ;;  %v252_v61 = vadd.f32 1e-05, %v240_v55 }
 0x131   :  { %v217_v62 = vpop.xlane.xlu1 %216  ;;  %v220_v63 = vpop.xlane.xlu0 %219 }
 0x132   :  { %9153 = vrsqrt.f32 %v251_v60  ;;  %v241_v1 = vmul.f32 0.03125, %v217_v62  ;;  %v242_v4 = vmul.f32 0.03125, %v220_v63 }
 0x133   :  { %9155 = vrsqrt.f32 %v252_v61 }
 0x134   :  { %v9148_v6 = vpop.eup %9147  ;;  %v253_v7 = vadd.f32 1e-05, %v241_v1  ;;  %v254_v8 = vadd.f32 1e-05, %v242_v4 }
 0x135   :  { %v272_v9 = vmul.f32 %v9148_v6, %v9705_v28  ;;  %v223_v10 = vpop.xlane.xlu1 %222  ;;  %v226_v11 = vpop.xlane.xlu0 %225 }
 0x136   :  { %9157 = vrsqrt.f32 %v253_v7  ;;  %v243_v15 = vmul.f32 0.03125, %v223_v10  ;;  %v244_v16 = vmul.f32 0.03125, %v226_v11 }
 0x137   :  { %v288_v17 = vmul.f32 %v9813_v5, %v272_v9  ;;  %9159 = vrsqrt.f32 %v254_v8 }
 0x138   :  { %v9150_v18 = vpop.eup %9149  ;;  %v255_v19 = vadd.f32 1e-05, %v243_v15  ;;  %v256_v20 = vadd.f32 1e-05, %v244_v16 }
 0x139   :  { %v9152_v21 = vpop.eup %9151  ;;  %v273_v22 = vmul.f32 %v9150_v18, %v9713_v36  ;;  %v229_v23 = vpop.xlane.xlu1 %228  ;;  %v9822_v28 = vadd.f32 %v9817_v14, %v288_v17 }
 0x13a   :  { %v232_v24 = vpop.xlane.xlu0 %231  ;;  %v274_v25 = vmul.f32 %v9152_v21, %v9707_v29  ;;  %9161 = vrsqrt.f32 %v255_v19  ;;  %v245_v26 = vmul.f32 0.03125, %v229_v23 }
 0x13b   :  { %v246_v27 = vmul.f32 0.03125, %v232_v24  ;;  %v289_v36 = vmul.f32 %v9813_v5, %v273_v22  ;;  %9163 = vrsqrt.f32 %v256_v20  ;;  %7730 = vmatprep.mubr.msk.f32.mxu0 %vm126_vm0, %v9822_v28  ;;  %7756 = vmatprep.mubr.msk.f32.mxu1 %vm126_vm0, %v9822_v28 }
 0x13c   :  { %v9154_v29 = vpop.eup %9153  ;;  %v290_v32 = vmul.f32 %v9813_v5, %v274_v25  ;;  %v257_v33 = vadd.f32 1e-05, %v245_v26 }
 0x13d   :  { %v258_v34 = vadd.f32 1e-05, %v246_v27  ;;  %v9156_v35 = vpop.eup %9155  ;;  %v275_v39 = vmul.f32 %v9154_v29, %v9715_v37  ;;  %v235_v40 = vpop.xlane.xlu1 %234  ;;  %v9839_v42 = vadd.f32 %v9817_v14, %v289_v36 }
 0x13e   :  { %v276_v44 = vmul.f32 %v9156_v35, %v9723_v46  ;;  %9165 = vrsqrt.f32 %v257_v33  ;;  %v247_v45 = vmul.f32 0.03125, %v235_v40  ;;  %v9843_v48 = vadd.f32 %v9817_v14, %v290_v32 }
 0x13f   :  { %v291_v50 = vmul.f32 %v9813_v5, %v275_v39  ;;  %9167 = vrsqrt.f32 %v258_v34  ;;  %7731 = vmatmul.mubr.msk.f32.vlgmr.msra.gmra.mrb[0].mxu0 %vm126_vm0, %v9839_v42  ;;  %7757 = vmatmul.mubr.msk.f32.vlgmr.msra.gmra.mrb[0].mxu1 %vm126_vm0, %v9839_v42 }
 0x140   :  { %v9158_v37 = vpop.eup %9157  ;;  %v292_v51 = vmul.f32 %v9813_v5, %v276_v44  ;;  %v259_v52 = vadd.f32 1e-05, %v247_v45  ;;  %7733 = vmatprep.mubr.msk.f32.mxu0 %vm126_vm0, %v9843_v48  ;;  %7759 = vmatprep.mubr.msk.f32.mxu1 %vm126_vm0, %v9843_v48 }
 0x141   :  { %v9160_v46 = vpop.eup %9159  ;;  %v277_v53 = vmul.f32 %v9158_v37, %v9725_v47  ;;  %v9857_v54 = vadd.f32 %v9817_v14, %v291_v50  ;;  %8672 = vmatpush3.bf16.msra.mxu0 %v9797_v38 }
 0x142   :  { %v278_v55 = vmul.f32 %v9160_v46, %v9733_v56  ;;  %9169 = vrsqrt.f32 %v259_v52  ;;  %v9862_v59 = vadd.f32 %v9817_v14, %v292_v51  ;;  %8674 = vmatprep.subr.bf16.mxu0 %v8673_v43 }
 0x143   :  { %v293_v60 = vmul.f32 %v9813_v5, %v277_v53  ;;  %7734 = vmatmul.mubr.msk.f32.gmra.mrb[2].mxu0 %vm126_vm0, %v9857_v54  ;;  %7760 = vmatmul.mubr.msk.f32.gmra.mrb[2].mxu1 %vm126_vm0, %v9857_v54 }
 0x144   :  { %v9162_v47 = vpop.eup %9161  ;;  %v294_v61 = vmul.f32 %v9813_v5, %v278_v55  ;;  %7736 = vmatprep.mubr.msk.f32.mxu0 %vm126_vm0, %v9862_v59  ;;  %7762 = vmatprep.mubr.msk.f32.mxu1 %vm126_vm0, %v9862_v59 }
 0x145   :  { %v9164_v56 = vpop.eup %9163  ;;  %v279_v38 = vmul.f32 %v9162_v47, %v9735_v57  ;;  %v9876_v62 = vadd.f32 %v9817_v14, %v293_v60  ;;  %8676 = vmatpush3.bf16.msra.mxu0 %v8673_v43 }
 0x146   :  { %v280_v63 = vmul.f32 %v9164_v56, %v9743_v2  ;;  %v9880_v1 = vadd.f32 %v9817_v14, %v294_v61 }
 0x147   :  { %v295_v4 = vmul.f32 %v9813_v5, %v279_v38  ;;  %7737 = vmatmul.mubr.msk.f32.gmra.mrb[4].mxu0 %vm126_vm0, %v9876_v62  ;;  %7763 = vmatmul.mubr.msk.f32.gmra.mrb[4].mxu1 %vm126_vm0, %v9876_v62 }
 0x148   :  { %v9166_v6 = vpop.eup %9165  ;;  %v296_v57 = vmul.f32 %v9813_v5, %v280_v63  ;;  %7739 = vmatprep.mubr.msk.f32.mxu0 %vm126_vm0, %v9880_v1  ;;  %7765 = vmatprep.mubr.msk.f32.mxu1 %vm126_vm0, %v9880_v1 }
 0x149   :  { %v9168_v2 = vpop.eup %9167  ;;  %v281_v7 = vmul.f32 %v9166_v6, %v9745_v3  ;;  %v9894_v8 = vadd.f32 %v9817_v14, %v295_v4 }
 0x14a   :  { %v282_v9 = vmul.f32 %v9168_v2, %v9754_v12  ;;  %v9898_v10 = vadd.f32 %v9817_v14, %v296_v57  ;;  %v10000_v57 = vsub.s32 2, %v9801_v49 }
 0x14b   :  { %v297_v11 = vmul.f32 %v9813_v5, %v281_v7  ;;  %7740 = vmatmul.mubr.msk.f32.gmra.mrb[6].mxu0 %vm126_vm0, %v9894_v8  ;;  %7766 = vmatmul.mubr.msk.f32.gmra.mrb[6].mxu1 %vm126_vm0, %v9894_v8 }
 0x14c   :  { %v9170_v15 = vpop.eup %9169  ;;  %v298_v16 = vmul.f32 %v9813_v5, %v282_v9  ;;  %7742 = vmatprep.mubr.msk.f32.mxu0 %vm126_vm0, %v9898_v10  ;;  %7768 = vmatprep.mubr.msk.f32.mxu1 %vm126_vm0, %v9898_v10 }
 0x14d   :  { %v283_v3 = vmul.f32 %v9170_v15, %v9757_v13  ;;  %v9912_v12 = vadd.f32 %v9817_v14, %v297_v11 }
 0x14e   :  { %v9915_v17 = vadd.f32 %v9817_v14, %v298_v16 }
 0x14f   :  { %v299_v18 = vmul.f32 %v9813_v5, %v283_v3  ;;  %7743 = vmatmul.mubr.msk.f32.gmra.mrb[8].mxu0 %vm126_vm0, %v9912_v12  ;;  %7769 = vmatmul.mubr.msk.f32.gmra.mrb[8].mxu1 %vm126_vm0, %v9912_v12  ;;  %v316_v5 = vld [vmem:[%s12425_s3] sm:$0x7] }
 0x150   :  { %7745 = vmatprep.mubr.msk.f32.mxu0 %vm126_vm0, %v9915_v17  ;;  %7771 = vmatprep.mubr.msk.f32.mxu1 %vm126_vm0, %v9915_v17  ;;  %v9962_v19 = vrot.slane %v316_v5, %v9804_v58 }
 0x151   :  { %v9927_v13 = vadd.f32 %v9817_v14, %v299_v18  ;;  %v494_v14 = vrot.slane %v316_v5, %v9810_v0 }
 0x153   :  { %7746 = vmatmul.mubr.msk.f32.gmra.mrb[10].mxu0 %vm126_vm0, %v9927_v13  ;;  %7772 = vmatmul.mubr.msk.f32.gmra.mrb[10].mxu1 %vm126_vm0, %v9927_v13 }
 0x154   :  { %7782 = vmatprep.mubr.msk.f32.mxu0 %vm126_vm0, %v9822_v28 }
 0x157   :  { %7783 = vmatmul.mubr.msk.f32.vlgmr.msra.gmra.mrb[12].mxu0 %vm126_vm0, %v9839_v42 }
 0x158   :  { %7785 = vmatprep.mubr.msk.f32.mxu0 %vm126_vm0, %v9843_v48 }
 0x15b   :  { %7786 = vmatmul.mubr.msk.f32.gmra.mrb[14].mxu0 %vm126_vm0, %v9857_v54 }
 0x15c   :  { %7788 = vmatprep.mubr.msk.f32.mxu0 %vm126_vm0, %v9862_v59 }
 0x15f   :  { %7789 = vmatmul.mubr.msk.f32.gmra.mrb[16].mxu0 %vm126_vm0, %v9876_v62 }
 0x160   :  { %7791 = vmatprep.mubr.msk.f32.mxu0 %vm126_vm0, %v9880_v1 }
 0x163   :  { %7792 = vmatmul.mubr.msk.f32.gmra.mrb[18].mxu0 %vm126_vm0, %v9894_v8 }
 0x164   :  { %7794 = vmatprep.mubr.msk.f32.mxu0 %vm126_vm0, %v9898_v10 }
 0x167   :  { %7795 = vmatmul.mubr.msk.f32.gmra.mrb[20].mxu0 %vm126_vm0, %v9912_v12 }
 0x168   :  { %7797 = vmatprep.mubr.msk.f32.mxu0 %vm126_vm0, %v9915_v17 }
 0x16b   :  { %7798 = vmatmul.mubr.msk.f32.gmra.mrb[22].mxu0 %vm126_vm0, %v9927_v13 }
 0x212   :  { %v9964_v20 = vpop.f32.mrb[0].mxu0  ;;  %v7758_v21 = vpop.f32.mrb[0].mxu1 }
 0x213   :  { %v567_v22 = vadd.f32 %v7758_v21, %v494_v14  ;;  %v427_v23 = vpop.f32.mrb[1].mxu0  ;;  %v561_v24 = vpop.f32.mrb[1].mxu1 }
 0x214   :  { %v428_v25 = vadd.f32 %v427_v23, %v9962_v19  ;;  %v562_v26 = vadd.f32 %v561_v24, %v494_v14 }
 0x216   :  { %v8677_v30 = vpack.c.bf16 %v567_v22, %v562_v26  ;;  %v9973_v31 = vpop.f32.mrb[2].mxu0  ;;  %v7761_v36 = vpop.f32.mrb[2].mxu1  ;;  %7824 = vmatprep.mubr.msk.f32.mxu1 %vm754_vm1, %v428_v25  ;;  %v628_v22 = vrot.slane %v316_v5, %v10000_v57 }
 0x217   :  { %v577_v29 = vadd.f32 %v7761_v36, %v494_v14  ;;  %v9976_v32 = vpop.f32.mrb[3].mxu0  ;;  %v571_v33 = vpop.f32.mrb[3].mxu1 }
 0x218   :  { %v572_v34 = vadd.f32 %v571_v33, %v494_v14  ;;  %8679 = vmatprep.subr.msk.bf16.mxu1 %vm9969_vm2, %v8677_v30 }
 0x219   :  { %8682 = vmatpush3.bf16.xpose.msk.msra.mxu1 %vm9969_vm2, %v8677_v30 }
 0x21a   :  { %v8683_v35 = vpack.c.bf16 %v577_v29, %v572_v34  ;;  %v9982_v39 = vpop.f32.mrb[4].mxu0  ;;  %v7764_v40 = vpop.f32.mrb[4].mxu1 }
 0x21b   :  { %v587_v43 = vadd.f32 %v7764_v40, %v494_v14  ;;  %v9984_v44 = vpop.f32.mrb[5].mxu0  ;;  %v581_v45 = vpop.f32.mrb[5].mxu1 }
 0x21c   :  { %v582_v50 = vadd.f32 %v581_v45, %v494_v14  ;;  %8685 = vmatprep.subr.msk.bf16.mxu1 %vm9969_vm2, %v8683_v35 }
 0x21e   :  { %v8689_v37 = vpack.c.bf16 %v587_v43, %v582_v50  ;;  %v9988_v51 = vpop.f32.mrb[6].mxu0  ;;  %v7767_v52 = vpop.f32.mrb[6].mxu1 }
 0x21f   :  { %v597_v46 = vadd.f32 %v7767_v52, %v494_v14  ;;  %v9990_v53 = vpop.f32.mrb[7].mxu0  ;;  %v591_v55 = vpop.f32.mrb[7].mxu1 }
 0x220   :  { %v592_v60 = vadd.f32 %v591_v55, %v494_v14 }
 0x221   :  { %8688 = vmatpush3.bf16.xpose.msk.msra.mxu1 %vm9969_vm2, %v8683_v35 }
 0x222   :  { %v8695_v47 = vpack.c.bf16 %v597_v46, %v592_v60  ;;  %v7744_v61 = vpop.f32.mrb[8].mxu0  ;;  %v7770_v56 = vpop.f32.mrb[8].mxu1  ;;  %8691 = vmatprep.subr.msk.bf16.mxu1 %vm9969_vm2, %v8689_v37 }
 0x223   :  { %v9997_v38 = vadd.f32 %v7744_v61, %v9962_v19  ;;  %v607_v63 = vadd.f32 %v7770_v56, %v494_v14  ;;  %v467_v4 = vpop.f32.mrb[9].mxu0  ;;  %v601_v6 = vpop.f32.mrb[9].mxu1 }
 0x224   :  { %v10003_v2 = vadd.f32 %v467_v4, %v9962_v19  ;;  %v602_v7 = vadd.f32 %v601_v6, %v494_v14  ;;  %v6802_v6 = vld [vmem:[%s12423_s2 + $0x80] sm:$0xff] }
 0x226   :  { %v8701_v9 = vpack.c.bf16 %v607_v63, %v602_v7  ;;  %v7747_v11 = vpop.f32.mrb[10].mxu0  ;;  %v7773_v15 = vpop.f32.mrb[10].mxu1  ;;  %v6803_v7 = vld [vmem:[%s12423_s2 + $0x88] sm:$0xff] }
 0x227   :  { %v10006_v16 = vadd.f32 %v7747_v11, %v9962_v19  ;;  %v617_v3 = vadd.f32 %v7773_v15, %v494_v14  ;;  %v477_v18 = vpop.f32.mrb[11].mxu0  ;;  %v611_v21 = vpop.f32.mrb[11].mxu1 }
 0x228   :  { %v10010_v23 = vadd.f32 %v477_v18, %v9962_v19  ;;  %v612_v24 = vadd.f32 %v611_v21, %v494_v14 }
 0x229   :  { %8694 = vmatpush3.bf16.xpose.msk.msra.mxu1 %vm9969_vm2, %v8689_v37 }
 0x22a   :  { %v8707_v25 = vpack.c.bf16 %v617_v3, %v612_v24  ;;  %v7784_v26 = vpop.f32.mrb[12].mxu0  ;;  %8697 = vmatprep.subr.msk.bf16.mxu1 %vm9969_vm2, %v8695_v47  ;;  %v8745_v3 = vpack.c.bf16 %v6803_v7, %v6802_v6 }
 0x22b   :  { %v701_v30 = vadd.f32 %v7784_v26, %v628_v22  ;;  %v695_v36 = vpop.f32.mrb[13].mxu0 }
 0x22c   :  { %v696_v29 = vadd.f32 %v695_v36, %v628_v22  ;;  %v6805_v36 = vld [vmem:[%s12423_s2 + $0x98] sm:$0xff] }
 0x22e   :  { %v8713_v33 = vpack.c.bf16 %v701_v30, %v696_v29  ;;  %v7787_v34 = vpop.f32.mrb[14].mxu0  ;;  %v6804_v30 = vld [vmem:[%s12423_s2 + $0x90] sm:$0xff] }
 0x22f   :  { %v711_v35 = vadd.f32 %v7787_v34, %v628_v22  ;;  %v705_v40 = vpop.f32.mrb[15].mxu0  ;;  %v8749_v29 = vpack.c.bf16 %v6805_v36, %v6804_v30  ;;  %v448_v34 = vadd.f32 %v9984_v44, %v9962_v19  ;;  %v61_v36 = vadd.s32 80, %v9801_v49 }
 0x230   :  { %v706_v5 = vadd.f32 %v705_v40, %v628_v22  ;;  %8714 = vmatprep.subr.bf16.mxu0 %v8713_v33 }
 0x231   :  { %8700 = vmatpush3.bf16.xpose.msk.msra.mxu1 %vm9969_vm2, %v8695_v47  ;;  %8716 = vmatpush3.bf16.msra.mxu0 %v8713_v33  ;;  %v443_v33 = vadd.f32 %v9973_v31, %v9962_v19  ;;  %v463_v31 = vadd.f32 %v9988_v51, %v9962_v19  ;;  %v54_v51 = vadd.s32 24, %v9801_v49 }
 0x232   :  { %v8717_v14 = vpack.c.bf16 %v711_v35, %v706_v5  ;;  %v7790_v43 = vpop.f32.mrb[16].mxu0  ;;  %8703 = vmatprep.subr.msk.bf16.mxu1 %vm9969_vm2, %v8701_v9  ;;  %v58_v35 = vadd.s32 56, %v9801_v49  ;;  %v57_v5 = vadd.s32 48, %v9801_v49 }
 0x233   :  { %v721_v45 = vadd.f32 %v7790_v43, %v628_v22  ;;  %v715_v50 = vpop.f32.mrb[17].mxu0  ;;  %v9589_v43 = vmov -1e+09  }
 0x234   :  { %v716_v37 = vadd.f32 %v715_v50, %v628_v22  ;;  %8718 = vmatprep.subr.bf16.mxu0 %v8717_v14 }
 0x235   :  { %8720 = vmatpush3.bf16.msra.mxu0 %v8717_v14 }
 0x236   :  { %v8721_v52 = vpack.c.bf16 %v721_v45, %v716_v37  ;;  %v7793_v46 = vpop.f32.mrb[18].mxu0 }
 0x237   :  { %v731_v55 = vadd.f32 %v7793_v46, %v628_v22  ;;  %v725_v60 = vpop.f32.mrb[19].mxu0 }
 0x238   :  { %v726_v61 = vadd.f32 %v725_v60, %v628_v22  ;;  %8722 = vmatprep.subr.bf16.mxu0 %v8721_v52 }
 0x239   :  { %8706 = vmatpush3.bf16.xpose.msk.msra.mxu1 %vm9969_vm2, %v8701_v9  ;;  %8724 = vmatpush3.bf16.msra.mxu0 %v8721_v52 }
 0x23a   :  { %v8725_v47 = vpack.c.bf16 %v731_v55, %v726_v61  ;;  %v7796_v56 = vpop.f32.mrb[20].mxu0  ;;  %8709 = vmatprep.subr.msk.bf16.mxu1 %vm9969_vm2, %v8707_v25  ;;  %v60_v55 = vadd.s32 72, %v9801_v49 }
 0x23b   :  { %v741_v63 = vadd.f32 %v7796_v56, %v628_v22  ;;  %v735_v4 = vpop.f32.mrb[21].mxu0 }
 0x23c   :  { %v736_v11 = vadd.f32 %v735_v4, %v628_v22  ;;  %8726 = vmatprep.subr.bf16.mxu0 %v8725_v47 }
 0x23d   :  { %8728 = vmatpush3.bf16.msra.mxu0 %v8725_v47  ;;  %v59_v47 = vadd.s32 64, %v9801_v49 }
 0x23e   :  { %v8729_v9 = vpack.c.bf16 %v741_v63, %v736_v11  ;;  %v7799_v15 = vpop.f32.mrb[22].mxu0  ;;  %v10237_v11 = vld [vmem:[%s12425_s3 + $0x4] sm:$0x7] }
 0x23f   :  { %v751_v18 = vadd.f32 %v7799_v15, %v628_v22  ;;  %v745_v21 = vpop.f32.mrb[23].mxu0 }
 0x240   :  { %v746_v24 = vadd.f32 %v745_v21, %v628_v22  ;;  %8730 = vmatprep.subr.bf16.mxu0 %v8729_v9  ;;  %v433_v22 = vadd.f32 %v9964_v20, %v9962_v19  ;;  %v453_v20 = vadd.f32 %v9982_v39, %v9962_v19  ;;  %v10095_v39 = vand.u32 127, %v50_v41 }
 0x241   :  { %8712 = vmatpush3.bf16.xpose.msk.msra.mxu1 %vm9969_vm2, %v8707_v25  ;;  %8732 = vmatpush3.bf16.msra.mxu0 %v8729_v9  ;;  %v438_v25 = vadd.f32 %v9976_v32, %v9962_v19  ;;  %v458_v32 = vadd.f32 %v9990_v53, %v9962_v19  ;;  %v10092_v19 = vadd.s32 8, %v9801_v49  ;;  %v62_v21 = vadd.s32 88, %v9801_v49 }
 0x242   :  { %v8733_v26 = vpack.c.bf16 %v751_v18, %v746_v24  ;;  %8746 = vmatprep.subr.bf16.mxu1 %v8745_v3  ;;  %12452 = vst [vmem:[#allocation3_spill] sm:$0xff] %v10095_v39  ;;  %v65_v53 = vxor.u32 %v10095_v39, %v9801_v49  ;;  %vm89_vm6 = vcmp.le.s32.totalorder %v10095_v39, %v9801_v49 }
 0x243   :  { %12451 = vst [vmem:[#allocation2_spill] sm:$0xff] %v10092_v19  ;;  %v66_v44 = vxor.u32 %v10095_v39, %v10092_v19  ;;  %vm90_vm4 = vcmp.le.s32.totalorder %v10095_v39, %v10092_v19  ;;  %vm92_vm10 = vcmp.le.s32.totalorder %v10095_v39, %v54_v51  ;;  %v72_v37 = vxor.u32 %v10095_v39, %v58_v35 }
 0x244   :  { %8734 = vmatprep.subr.bf16.mxu0 %v8733_v26  ;;  %vm77_vm5 = vcmp.lt.s32.totalorder %v65_v53, 8  ;;  %v71_v46 = vxor.u32 %v10095_v39, %v57_v5  ;;  %v74_v18 = vxor.u32 %v10095_v39, %v60_v55  ;;  %v73_v30 = vxor.u32 %v10095_v39, %v59_v47 }
 0x245   :  { %8736 = vmatpush3.bf16.msra.mxu0 %v8733_v26  ;;  %vm78_vm3 = vcmp.lt.s32.totalorder %v66_v44, 8  ;;  %vm101_vm8 = vmand %vm77_vm5, %vm89_vm6 }
 0x246   :  { %vm102_vm7 = vmand %vm78_vm3, %vm90_vm4  ;;  %v10121_v50 = vsel %vm101_vm8, 0.0, %v9589_v43  ;;  %vm10147_vm8 = vcmp.lt.s32.totalorder %v72_v37, 8 }
 0x247   :  { %v10118_v45 = vsel %vm102_vm7, 0.0, %v9589_v43 }
 0x248   :  { %7825 = vmatmul.mubr.msk.f32.vlgmr.msra.gmra.mrb[12].mxu1 %vm754_vm1, %v433_v22 }
 0x249   :  { %7827 = vmatprep.mubr.msk.f32.mxu1 %vm754_vm1, %v438_v25  ;;  %8748 = vmatpush3.bf16.msra.mxu1 %v8745_v3 }
 0x24a   :  { %8750 = vmatprep.subr.bf16.mxu1 %v8749_v29 }
 0x24c   :  { %7828 = vmatmul.mubr.msk.f32.gmra.mrb[14].mxu1 %vm754_vm1, %v443_v33 }
 0x24d   :  { %7830 = vmatprep.mubr.msk.f32.mxu1 %vm754_vm1, %v448_v34  ;;  %8752 = vmatpush3.bf16.msra.mxu1 %v8749_v29 }
 0x250   :  { %7831 = vmatmul.mubr.msk.f32.gmra.mrb[16].mxu1 %vm754_vm1, %v453_v20 }
 0x251   :  { %7833 = vmatprep.mubr.msk.f32.mxu1 %vm754_vm1, %v458_v32  ;;  %v76_v32 = vxor.u32 %v10095_v39, %v62_v21 }
 0x254   :  { %7834 = vmatmul.mubr.msk.f32.gmra.mrb[18].mxu1 %vm754_vm1, %v463_v31 }
 0x255   :  { %7836 = vmatprep.mubr.msk.f32.mxu1 %vm754_vm1, %v10003_v2  ;;  %v68_v2 = vxor.u32 %v10095_v39, %v54_v51  ;;  %v75_v51 = vxor.u32 %v10095_v39, %v61_v36 }
 0x257   :  { %vm80_vm9 = vcmp.lt.s32.totalorder %v68_v2, 8 }
 0x258   :  { %7837 = vmatmul.mubr.msk.f32.gmra.mrb[20].mxu1 %vm754_vm1, %v9997_v38  ;;  %v53_v38 = vadd.s32 16, %v9801_v49  ;;  %vm104_vm14 = vmand %vm80_vm9, %vm92_vm10  ;;  %vm96_vm9 = vcmp.le.s32.totalorder %v10095_v39, %v58_v35 }
 0x259   :  { %7839 = vmatprep.mubr.msk.f32.mxu1 %vm754_vm1, %v10010_v23  ;;  %v55_v23 = vadd.s32 32, %v9801_v49  ;;  %v10136_v63 = vsel %vm104_vm14, 0.0, %v9589_v43  ;;  %vm108_vm14 = vmand %vm10147_vm8, %vm96_vm9  ;;  %vm88_vm9 = vcmp.lt.s32.totalorder %v76_v32, 8 }
 0x25a   :  { %v67_v41 = vxor.u32 %v10095_v39, %v53_v38  ;;  %vm91_vm12 = vcmp.le.s32.totalorder %v10095_v39, %v53_v38  ;;  %v10198_v38 = vsel %vm108_vm14, 0.0, %v9589_v43 }
 0x25b   :  { %v69_v14 = vxor.u32 %v10095_v39, %v55_v23  ;;  %vm93_vm6 = vcmp.le.s32.totalorder %v10095_v39, %v55_v23 }
 0x25c   :  { %7840 = vmatmul.mubr.msk.f32.gmra.mrb[22].mxu1 %vm754_vm1, %v10006_v16  ;;  %v56_v16 = vadd.s32 40, %v9801_v49  ;;  %vm79_vm11 = vcmp.lt.s32.totalorder %v67_v41, 8 }
 0x25d   :  { %7918 = vmatprep.mubr.msk.f32.mxu1 %vm126_vm0, %v9822_v28  ;;  %vm103_vm15 = vmand %vm79_vm11, %vm91_vm12  ;;  %vm81_vm5 = vcmp.lt.s32.totalorder %v69_v14, 8  ;;  %vm10154_vm11 = vcmp.lt.s32.totalorder %v71_v46, 8  ;;  %vm95_vm12 = vcmp.le.s32.totalorder %v10095_v39, %v57_v5 }
 0x25e   :  { %v70_v40 = vxor.u32 %v10095_v39, %v56_v16  ;;  %vm94_vm4 = vcmp.le.s32.totalorder %v10095_v39, %v56_v16  ;;  %v10141_v6 = vsel %vm103_vm15, 0.0, %v9589_v43  ;;  %vm105_vm10 = vmand %vm81_vm5, %vm93_vm6  ;;  %vm85_vm5 = vcmp.lt.s32.totalorder %v73_v30, 8 }
 0x25f   :  { %v10177_v33 = vsel %vm105_vm10, 0.0, %v9589_v43  ;;  %vm107_vm15 = vmand %vm10154_vm11, %vm95_vm12  ;;  %vm97_vm6 = vcmp.le.s32.totalorder %v10095_v39, %v59_v47  ;;  %vm100_vm10 = vcmp.le.s32.totalorder %v10095_v39, %v62_v21  ;;  %vm87_vm11 = vcmp.lt.s32.totalorder %v75_v51, 8 }
 0x260   :  { %7919 = vmatmul.mubr.msk.f32.vlgmr.msra.gmra.mrb[24].mxu1 %vm126_vm0, %v9839_v42  ;;  %vm82_vm3 = vcmp.lt.s32.totalorder %v70_v40, 8  ;;  %v10203_v16 = vsel %vm107_vm15, 0.0, %v9589_v43  ;;  %vm109_vm8 = vmand %vm85_vm5, %vm97_vm6  ;;  %vm99_vm12 = vcmp.le.s32.totalorder %v10095_v39, %v61_v36  ;;  %v1392_v30 = vrot.slane %v10237_v11, %v9810_v0 }
 0x261   :  { %7921 = vmatprep.mubr.msk.f32.mxu1 %vm126_vm0, %v9843_v48  ;;  %vm10143_vm7 = vmand %vm82_vm3, %vm94_vm4  ;;  %vm86_vm3 = vcmp.lt.s32.totalorder %v74_v18, 8  ;;  %vm98_vm4 = vcmp.le.s32.totalorder %v10095_v39, %v60_v55 }
 0x262   :  { %v10172_v29 = vsel %vm10143_vm7, 0.0, %v9589_v43  ;;  %vm110_vm7 = vmand %vm86_vm3, %vm98_vm4 }
 0x263   :  { %v10216_v14 = vsel %vm110_vm7, 0.0, %v9589_v43  ;;  %vm112_vm14 = vmand %vm88_vm9, %vm100_vm10  ;;  %vm6617_vm10 = vcmask 24576  }
 0x264   :  { %7922 = vmatmul.mubr.msk.f32.gmra.mrb[26].mxu1 %vm126_vm0, %v9857_v54  ;;  %vm111_vm15 = vmand %vm87_vm11, %vm99_vm12  ;;  %v10232_v7 = vsel %vm112_vm14, 0.0, %v9589_v43  ;;  %vm6673_vm11 = vcmask 3072   ;;  %vm6671_vm12 = vcmask 7168   ;;  %vm6699_vm14 = vcmask 0  }
 0x265   :  { %7924 = vmatprep.mubr.msk.f32.mxu1 %vm126_vm0, %v9862_v59 }
 0x268   :  { %7925 = vmatmul.mubr.msk.f32.gmra.mrb[28].mxu1 %vm126_vm0, %v9876_v62 }
 0x269   :  { %7927 = vmatprep.mubr.msk.f32.mxu1 %vm126_vm0, %v9880_v1 }
 0x26c   :  { %7928 = vmatmul.mubr.msk.f32.gmra.mrb[30].mxu1 %vm126_vm0, %v9894_v8 }
 0x26d   :  { %7930 = vmatprep.mubr.msk.f32.mxu1 %vm126_vm0, %v9898_v10 }
 0x270   :  { %7931 = vmatmul.mubr.msk.f32.gmra.mrb[32].mxu1 %vm126_vm0, %v9912_v12 }
 0x271   :  { %7933 = vmatprep.mubr.msk.f32.mxu1 %vm126_vm0, %v9915_v17 }
 0x274   :  { %7934 = vmatmul.mubr.msk.f32.gmra.mrb[34].mxu1 %vm126_vm0, %v9927_v13 }
 0x31b   :  { %v7826_v52 = vpop.f32.mrb[12].mxu1 }
 0x31c   :  { %v10128_v60 = vadd.f32 %v7826_v52, %v10118_v45  ;;  %v893_v61 = vpop.f32.mrb[13].mxu1  ;;  %v10221_v52 = vsel %vm109_vm8, 0.0, %v9589_v43 }
 0x31d   :  { %v10133_v56 = vadd.f32 %v893_v61, %v10121_v50 }
 0x31e   :  { %v956_v4 = vsel %vm952_vm13, %v10128_v60, -inf }
 0x31f   :  { %957 = vmax.xlane.f32.xlu1 %v956_v4  ;;  %v7829_v9 = vpop.f32.mrb[14].mxu1  ;;  %v953_v15 = vsel %vm952_vm13, %v10133_v56, -inf }
 0x320   :  { %v10161_v24 = vadd.f32 %v7829_v9, %v10136_v63  ;;  %v903_v26 = vpop.f32.mrb[15].mxu1  ;;  %954 = vmax.xlane.f32.xlu0 %v953_v15  ;;  %v10242_v15 = vsel %vm111_vm15, 0.0, %v9589_v43 }
 0x321   :  { %v10167_v22 = vadd.f32 %v903_v26, %v10141_v6 }
 0x322   :  { %v962_v25 = vsel %vm952_vm13, %v10161_v24, -inf }
 0x323   :  { %963 = vmax.xlane.f32.xlu1 %v962_v25  ;;  %v7832_v34 = vpop.f32.mrb[16].mxu1  ;;  %v959_v20 = vsel %vm952_vm13, %v10167_v22, -inf }
 0x324   :  { %v10190_v31 = vadd.f32 %v7832_v34, %v10172_v29  ;;  %v913_v44 = vpop.f32.mrb[17].mxu1  ;;  %960 = vmax.xlane.f32.xlu0 %v959_v20 }
 0x325   :  { %v10195_v53 = vadd.f32 %v913_v44, %v10177_v33 }
 0x326   :  { %v968_v2 = vsel %vm952_vm13, %v10190_v31, -inf }
 0x327   :  { %969 = vmax.xlane.f32.xlu1 %v968_v2  ;;  %v7835_v41 = vpop.f32.mrb[18].mxu1  ;;  %v965_v23 = vsel %vm952_vm13, %v10195_v53, -inf }
 0x328   :  { %v10209_v35 = vadd.f32 %v7835_v41, %v10198_v38  ;;  %v923_v40 = vpop.f32.mrb[19].mxu1  ;;  %966 = vmax.xlane.f32.xlu0 %v965_v23 }
 0x329   :  { %v10213_v5 = vadd.f32 %v923_v40, %v10203_v16 }
 0x32a   :  { %v974_v37 = vsel %vm952_vm13, %v10209_v35, -inf }
 0x32b   :  { %975 = vmax.xlane.f32.xlu1 %v974_v37  ;;  %v7838_v46 = vpop.f32.mrb[20].mxu1  ;;  %v971_v55 = vsel %vm952_vm13, %v10213_v5, -inf }
 0x32c   :  { %v10226_v61 = vadd.f32 %v7838_v46, %v10216_v14  ;;  %v933_v47 = vpop.f32.mrb[21].mxu1  ;;  %972 = vmax.xlane.f32.xlu0 %v971_v55 }
 0x32d   :  { %v10229_v4 = vadd.f32 %v933_v47, %v10221_v52 }
 0x32e   :  { %v980_v9 = vsel %vm952_vm13, %v10226_v61, -inf }
 0x32f   :  { %981 = vmax.xlane.f32.xlu1 %v980_v9  ;;  %v7841_v3 = vpop.f32.mrb[22].mxu1  ;;  %v977_v18 = vsel %vm952_vm13, %v10229_v4, -inf }
 0x330   :  { %v10247_v21 = vadd.f32 %v7841_v3, %v10232_v7  ;;  %978 = vmax.xlane.f32.xlu0 %v977_v18  ;;  %v943_v26 = vpop.f32.mrb[23].mxu1 }
 0x331   :  { %v10252_v36 = vadd.f32 %v943_v26, %v10242_v15 }
 0x332   :  { %v986_v43 = vsel %vm952_vm13, %v10247_v21, -inf }
 0x333   :  { %987 = vmax.xlane.f32.xlu1 %v986_v43  ;;  %v7920_v25 = vpop.f32.mrb[24].mxu1  ;;  %v983_v34 = vsel %vm952_vm13, %v10252_v36, -inf }
 0x334   :  { %v1465_v20 = vadd.f32 %v7920_v25, %v1392_v30  ;;  %v1459_v32 = vpop.f32.mrb[25].mxu1  ;;  %984 = vmax.xlane.f32.xlu0 %v983_v34 }
 0x335   :  { %v1460_v44 = vadd.f32 %v1459_v32, %v1392_v30 }
 0x337   :  { %v8761_v51 = vpack.c.bf16 %v1465_v20, %v1460_v44  ;;  %v7923_v2 = vpop.f32.mrb[26].mxu1 }
 0x338   :  { %v1475_v41 = vadd.f32 %v7923_v2, %v1392_v30  ;;  %v1469_v23 = vpop.f32.mrb[27].mxu1 }
 0x339   :  { %v1470_v40 = vadd.f32 %v1469_v23, %v1392_v30  ;;  %8763 = vmatprep.subr.msk.bf16.mxu1 %vm9969_vm2, %v8761_v51 }
 0x33a   :  { %8766 = vmatpush3.bf16.xpose.msk.msra.mxu1 %vm9969_vm2, %v8761_v51 }
 0x33b   :  { %v8767_v37 = vpack.c.bf16 %v1475_v41, %v1470_v40  ;;  %v7926_v46 = vpop.f32.mrb[28].mxu1 }
 0x33c   :  { %v1485_v55 = vadd.f32 %v7926_v46, %v1392_v30  ;;  %v1479_v47 = vpop.f32.mrb[29].mxu1 }
 0x33d   :  { %v1480_v9 = vadd.f32 %v1479_v47, %v1392_v30  ;;  %8769 = vmatprep.subr.msk.bf16.mxu1 %vm9969_vm2, %v8767_v37 }
 0x33f   :  { %v8773_v3 = vpack.c.bf16 %v1485_v55, %v1480_v9  ;;  %v7929_v18 = vpop.f32.mrb[30].mxu1 }
 0x340   :  { %v1495_v26 = vadd.f32 %v7929_v18, %v1392_v30  ;;  %v1489_v43 = vpop.f32.mrb[31].mxu1 }
 0x341   :  { %v1490_v25 = vadd.f32 %v1489_v43, %v1392_v30 }
 0x342   :  { %8772 = vmatpush3.bf16.xpose.msk.msra.mxu1 %vm9969_vm2, %v8767_v37 }
 0x343   :  { %v8779_v34 = vpack.c.bf16 %v1495_v26, %v1490_v25  ;;  %v7932_v20 = vpop.f32.mrb[32].mxu1  ;;  %8775 = vmatprep.subr.msk.bf16.mxu1 %vm9969_vm2, %v8773_v3 }
 0x344   :  { %v1505_v32 = vadd.f32 %v7932_v20, %v1392_v30  ;;  %v1499_v44 = vpop.f32.mrb[33].mxu1 }
 0x345   :  { %v1500_v51 = vadd.f32 %v1499_v44, %v1392_v30 }
 0x347   :  { %v8785_v2 = vpack.c.bf16 %v1505_v32, %v1500_v51  ;;  %v7935_v41 = vpop.f32.mrb[34].mxu1 }
 0x348   :  { %v1515_v23 = vadd.f32 %v7935_v41, %v1392_v30  ;;  %v1509_v40 = vpop.f32.mrb[35].mxu1 }
 0x349   :  { %v1510_v46 = vadd.f32 %v1509_v40, %v1392_v30 }
 0x34a   :  { %8778 = vmatpush3.bf16.xpose.msk.msra.mxu1 %vm9969_vm2, %v8773_v3 }
 0x34b   :  { %v8791_v55 = vpack.c.bf16 %v1515_v23, %v1510_v46  ;;  %8781 = vmatprep.subr.msk.bf16.mxu1 %vm9969_vm2, %v8779_v34 }
 0x352   :  { %8784 = vmatpush3.bf16.xpose.msk.msra.mxu1 %vm9969_vm2, %v8779_v34 }
 0x353   :  { %8787 = vmatprep.subr.msk.bf16.mxu1 %vm9969_vm2, %v8785_v2 }
 0x35a   :  { %8790 = vmatpush3.bf16.xpose.msk.msra.mxu1 %vm9969_vm2, %v8785_v2 }
 0x35b   :  { %8793 = vmatprep.subr.msk.bf16.mxu1 %vm9969_vm2, %v8791_v55 }
 0x362   :  { %8796 = vmatpush3.bf16.xpose.msk.msra.mxu1 %vm9969_vm2, %v8791_v55 }
 0x3ac   :  { %v958_v30 = vpop.xlane.xlu1 %957 }
 0x3ad   :  { %v990_v37 = vsub.f32 %v10128_v60, %v958_v30  ;;  %v955_v47 = vpop.xlane.xlu0 %954 }
 0x3ae   :  { %v989_v9 = vsub.f32 %v10133_v56, %v955_v47 }
 0x3af   :  { %v1003_v3 = vmul.f32 1.442695, %v990_v37 }
 0x3b0   :  { %v1001_v18 = vmul.f32 1.442695, %v989_v9  ;;  %v964_v26 = vpop.xlane.xlu1 %963 }
 0x3b1   :  { %9171 = vpow2.f32 %v1003_v3  ;;  %v992_v43 = vsub.f32 %v10161_v24, %v964_v26  ;;  %v961_v25 = vpop.xlane.xlu0 %960 }
 0x3b2   :  { %9173 = vpow2.f32 %v1001_v18  ;;  %v991_v34 = vsub.f32 %v10167_v22, %v961_v25 }
 0x3b3   :  { %v1007_v20 = vmul.f32 1.442695, %v992_v43 }
 0x3b4   :  { %v1005_v32 = vmul.f32 1.442695, %v991_v34  ;;  %v970_v44 = vpop.xlane.xlu1 %969 }
 0x3b5   :  { %9175 = vpow2.f32 %v1007_v20  ;;  %v994_v51 = vsub.f32 %v10190_v31, %v970_v44  ;;  %v967_v60 = vpop.xlane.xlu0 %966 }
 0x3b6   :  { %9177 = vpow2.f32 %v1005_v32  ;;  %v993_v56 = vsub.f32 %v10195_v53, %v967_v60 }
 0x3b7   :  { %v1011_v2 = vmul.f32 1.442695, %v994_v51 }
 0x3b8   :  { %v1009_v41 = vmul.f32 1.442695, %v993_v56  ;;  %v976_v23 = vpop.xlane.xlu1 %975 }
 0x3b9   :  { %9179 = vpow2.f32 %v1011_v2  ;;  %v996_v24 = vsub.f32 %v10209_v35, %v976_v23  ;;  %v973_v40 = vpop.xlane.xlu0 %972 }
 0x3ba   :  { %9181 = vpow2.f32 %v1009_v41  ;;  %v995_v22 = vsub.f32 %v10213_v5, %v973_v40 }
 0x3bb   :  { %v10290_v46 = vpop.eup %9171  ;;  %v1015_v55 = vmul.f32 1.442695, %v996_v24 }
 0x3bc   :  { %v10292_v30 = vpop.eup %9173  ;;  %v1013_v31 = vmul.f32 1.442695, %v995_v22  ;;  %v982_v37 = vpop.xlane.xlu1 %981  ;;  %v1028_v53 = vsel %vm952_vm13, %v10290_v46, 0.0 }
 0x3bd   :  { %9183 = vpow2.f32 %v1015_v55  ;;  %v998_v47 = vsub.f32 %v10226_v61, %v982_v37  ;;  %v979_v9 = vpop.xlane.xlu0 %978  ;;  %1029 = vadd.xlane.f32.xlu1 %v1028_v53  ;;  %v1025_v35 = vsel %vm952_vm13, %v10292_v30, 0.0 }
 0x3be   :  { %9185 = vpow2.f32 %v1013_v31  ;;  %v997_v5 = vsub.f32 %v10229_v4, %v979_v9  ;;  %1026 = vadd.xlane.f32.xlu0 %v1025_v35  ;;  %v6786_v35 = vld [vmem:[%s12423_s2 + $0x60] sm:$0xff] }
 0x3bf   :  { %v10300_v3 = vpop.eup %9175  ;;  %v1019_v18 = vmul.f32 1.442695, %v998_v47 }
 0x3c0   :  { %v10302_v26 = vpop.eup %9177  ;;  %v1017_v43 = vmul.f32 1.442695, %v997_v5  ;;  %v988_v25 = vpop.xlane.xlu1 %987  ;;  %v1034_v34 = vsel %vm952_vm13, %v10300_v3, 0.0  ;;  %v6787_v5 = vld [vmem:[%s12423_s2 + $0x68] sm:$0xff] }
 0x3c1   :  { %9187 = vpow2.f32 %v1019_v18  ;;  %v1000_v61 = vsub.f32 %v10247_v21, %v988_v25  ;;  %1035 = vadd.xlane.f32.xlu1 %v1034_v34  ;;  %v985_v20 = vpop.xlane.xlu0 %984  ;;  %v1031_v32 = vsel %vm952_vm13, %v10302_v26, 0.0  ;;  %v8737_v18 = vpack.c.bf16 %v6787_v5, %v6786_v35  ;;  %v6819_v35 = vld [vmem:[%s12423_s2 + $0xa8] sm:$0xff] }
 0x3c2   :  { %9189 = vpow2.f32 %v1017_v43  ;;  %v999_v4 = vsub.f32 %v10252_v36, %v985_v20  ;;  %1032 = vadd.xlane.f32.xlu0 %v1031_v32 }
 0x3c3   :  { %v10310_v44 = vpop.eup %9179  ;;  %v1023_v51 = vmul.f32 1.442695, %v1000_v61  ;;  %8738 = vmatprep.subr.bf16.mxu0 %v8737_v18 }
 0x3c4   :  { %v10312_v60 = vpop.eup %9181  ;;  %v1021_v56 = vmul.f32 1.442695, %v999_v4  ;;  %v1040_v2 = vsel %vm952_vm13, %v10310_v44, 0.0 }
 0x3c5   :  { %9191 = vpow2.f32 %v1023_v51  ;;  %1041 = vadd.xlane.f32.xlu1 %v1040_v2  ;;  %v1037_v21 = vsel %vm952_vm13, %v10312_v60, 0.0  ;;  %v6788_v51 = vld [vmem:[%s12423_s2 + $0x70] sm:$0xff] }
 0x3c6   :  { %9193 = vpow2.f32 %v1021_v56  ;;  %1038 = vadd.xlane.f32.xlu0 %v1037_v21  ;;  %v6789_v56 = vld [vmem:[%s12423_s2 + $0x78] sm:$0xff] }
 0x3c7   :  { %v10318_v41 = vpop.eup %9183 }
 0x3c8   :  { %v10320_v36 = vpop.eup %9185  ;;  %v1046_v23 = vsel %vm952_vm13, %v10318_v41, 0.0 }
 0x3c9   :  { %1047 = vadd.xlane.f32.xlu1 %v1046_v23  ;;  %v1043_v24 = vsel %vm952_vm13, %v10320_v36, 0.0 }
 0x3ca   :  { %1044 = vadd.xlane.f32.xlu0 %v1043_v24 }
 0x3cb   :  { %v10326_v40 = vpop.eup %9187 }
 0x3cc   :  { %v10328_v22 = vpop.eup %9189  ;;  %v1052_v55 = vsel %vm952_vm13, %v10326_v40, 0.0 }
 0x3cd   :  { %1053 = vadd.xlane.f32.xlu1 %v1052_v55  ;;  %v1049_v31 = vsel %vm952_vm13, %v10328_v22, 0.0 }
 0x3ce   :  { %1050 = vadd.xlane.f32.xlu0 %v1049_v31  ;;  %v8741_v31 = vpack.c.bf16 %v6789_v56, %v6788_v51 }
 0x3cf   :  { %v10334_v37 = vpop.eup %9191 }
 0x3d0   :  { %v10336_v53 = vpop.eup %9193  ;;  %v1058_v47 = vsel %vm952_vm13, %v10334_v37, 0.0 }
 0x3d1   :  { %1059 = vadd.xlane.f32.xlu1 %v1058_v47  ;;  %v1055_v9 = vsel %vm952_vm13, %v10336_v53, 0.0 }
 0x3d2   :  { %1056 = vadd.xlane.f32.xlu0 %v1055_v9  ;;  %v6818_v9 = vld [vmem:[%s12423_s2 + $0xa0] sm:$0xff] }
 0x44a   :  { %v1030_v43 = vpop.xlane.xlu1 %1029 }
 0x44b   :  { %9195 = vrcp.f32 %v1030_v43  ;;  %v1027_v25 = vpop.xlane.xlu0 %1026 }
 0x44c   :  { %9197 = vrcp.f32 %v1027_v25 }
 0x44e   :  { %v1036_v34 = vpop.xlane.xlu1 %1035 }
 0x44f   :  { %9199 = vrcp.f32 %v1036_v34  ;;  %v1033_v61 = vpop.xlane.xlu0 %1032  ;;  %v8753_v34 = vpack.c.bf16 %v6819_v35, %v6818_v9 }
 0x450   :  { %9201 = vrcp.f32 %v1033_v61 }
 0x452   :  { %v1042_v20 = vpop.xlane.xlu1 %1041 }
 0x453   :  { %9203 = vrcp.f32 %v1042_v20  ;;  %v1039_v32 = vpop.xlane.xlu0 %1038 }
 0x454   :  { %9205 = vrcp.f32 %v1039_v32 }
 0x455   :  { %v9196_v4 = vpop.eup %9195 }
 0x456   :  { %v9198_v2 = vpop.eup %9197  ;;  %v1048_v21 = vpop.xlane.xlu1 %1047  ;;  %v1074_v55 = vmul.f32 %v9196_v4, %v10290_v46 }
 0x457   :  { %9207 = vrcp.f32 %v1048_v21  ;;  %v1045_v23 = vpop.xlane.xlu0 %1044  ;;  %v1073_v24 = vmul.f32 %v9198_v2, %v10292_v30 }
 0x458   :  { %9209 = vrcp.f32 %v1045_v23 }
 0x459   :  { %v9200_v47 = vpop.eup %9199  ;;  %7866 = vmatprep.mubr.msk.f32.mxu0 %vm952_vm13, %v1073_v24 }
 0x45a   :  { %v9202_v5 = vpop.eup %9201  ;;  %v1054_v43 = vpop.xlane.xlu1 %1053  ;;  %7867 = vmatmul.mubr.msk.f32.vlgmr.msra.gmra.mrb[24].mxu0 %vm952_vm13, %v1074_v55  ;;  %v1076_v25 = vmul.f32 %v9200_v47, %v10300_v3 }
 0x45b   :  { %9211 = vrcp.f32 %v1054_v43  ;;  %8740 = vmatpush3.bf16.msra.mxu0 %v8737_v18  ;;  %v1051_v46 = vpop.xlane.xlu0 %1050  ;;  %v1075_v30 = vmul.f32 %v9202_v5, %v10302_v26 }
 0x45c   :  { %9213 = vrcp.f32 %v1051_v46  ;;  %8742 = vmatprep.subr.bf16.mxu0 %v8741_v31 }
 0x45d   :  { %v9204_v61 = vpop.eup %9203  ;;  %7869 = vmatprep.mubr.msk.f32.mxu0 %vm952_vm13, %v1075_v30 }
 0x45e   :  { %v9206_v20 = vpop.eup %9205  ;;  %v1060_v32 = vpop.xlane.xlu1 %1059  ;;  %7870 = vmatmul.mubr.msk.f32.gmra.mrb[26].mxu0 %vm952_vm13, %v1076_v25  ;;  %v1078_v26 = vmul.f32 %v9204_v61, %v10310_v44 }
 0x45f   :  { %9215 = vrcp.f32 %v1060_v32  ;;  %v1057_v4 = vpop.xlane.xlu0 %1056  ;;  %v1077_v51 = vmul.f32 %v9206_v20, %v10312_v60  ;;  %8744 = vmatpush3.bf16.msra.mxu0 %v8741_v31  ;;  %v6820_v31 = vld [vmem:[%s12423_s2 + $0xb0] sm:$0xff] }
 0x460   :  { %9217 = vrcp.f32 %v1057_v4  ;;  %8754 = vmatprep.subr.bf16.mxu0 %v8753_v34 }
 0x461   :  { %v9208_v18 = vpop.eup %9207  ;;  %7872 = vmatprep.mubr.msk.f32.mxu0 %vm952_vm13, %v1077_v51 }
 0x462   :  { %v9210_v3 = vpop.eup %9209  ;;  %7873 = vmatmul.mubr.msk.f32.gmra.mrb[28].mxu0 %vm952_vm13, %v1078_v26  ;;  %v1080_v2 = vmul.f32 %v9208_v18, %v10318_v41 }
 0x463   :  { %v1079_v56 = vmul.f32 %v9210_v3, %v10320_v36 }
 0x465   :  { %v9212_v21 = vpop.eup %9211  ;;  %7875 = vmatprep.mubr.msk.f32.mxu0 %vm952_vm13, %v1079_v56 }
 0x466   :  { %v9214_v23 = vpop.eup %9213  ;;  %7876 = vmatmul.mubr.msk.f32.gmra.mrb[30].mxu0 %vm952_vm13, %v1080_v2  ;;  %v1082_v44 = vmul.f32 %v9212_v21, %v10326_v40  ;;  %v6821_v40 = vld [vmem:[%s12423_s2 + $0xb8] sm:$0xff] }
 0x467   :  { %v1081_v60 = vmul.f32 %v9214_v23, %v10328_v22  ;;  %v8757_v22 = vpack.c.bf16 %v6821_v40, %v6820_v31 }
 0x469   :  { %v9216_v24 = vpop.eup %9215  ;;  %7878 = vmatprep.mubr.msk.f32.mxu0 %vm952_vm13, %v1081_v60  ;;  %v1526_v60 = vrot.slane %v10237_v11, %v10000_v57 }
 0x46a   :  { %v9218_v55 = vpop.eup %9217  ;;  %7879 = vmatmul.mubr.msk.f32.gmra.mrb[32].mxu0 %vm952_vm13, %v1082_v44  ;;  %v1084_v41 = vmul.f32 %v9216_v24, %v10334_v37  ;;  %v1258_v37 = vrot.slane %v10237_v11, %v9804_v58 }
 0x46b   :  { %v1083_v36 = vmul.f32 %v9218_v55, %v10336_v53 }
 0x46d   :  { %7881 = vmatprep.mubr.msk.f32.mxu0 %vm952_vm13, %v1083_v36 }
 0x46e   :  { %7882 = vmatmul.mubr.msk.f32.gmra.mrb[34].mxu0 %vm952_vm13, %v1084_v41 }
 0x46f   :  { %7892 = vmatprep.mubr.msk.f32.mxu0 %vm126_vm0, %v9822_v28 }
 0x472   :  { %7893 = vmatmul.mubr.msk.f32.vlgmr.msra.gmra.mrb[36].mxu0 %vm126_vm0, %v9839_v42 }
 0x473   :  { %7895 = vmatprep.mubr.msk.f32.mxu0 %vm126_vm0, %v9843_v48  ;;  %8756 = vmatpush3.bf16.msra.mxu0 %v8753_v34 }
 0x474   :  { %8758 = vmatprep.subr.bf16.mxu0 %v8757_v22 }
 0x476   :  { %7896 = vmatmul.mubr.msk.f32.gmra.mrb[38].mxu0 %vm126_vm0, %v9857_v54 }
 0x477   :  { %7898 = vmatprep.mubr.msk.f32.mxu0 %vm126_vm0, %v9862_v59  ;;  %8760 = vmatpush3.bf16.msra.mxu0 %v8757_v22 }
 0x47a   :  { %7899 = vmatmul.mubr.msk.f32.gmra.mrb[40].mxu0 %vm126_vm0, %v9876_v62 }
 0x47b   :  { %7901 = vmatprep.mubr.msk.f32.mxu0 %vm126_vm0, %v9880_v1 }
 0x47e   :  { %7902 = vmatmul.mubr.msk.f32.gmra.mrb[42].mxu0 %vm126_vm0, %v9894_v8 }
 0x47f   :  { %7904 = vmatprep.mubr.msk.f32.mxu0 %vm126_vm0, %v9898_v10 }
 0x482   :  { %7905 = vmatmul.mubr.msk.f32.gmra.mrb[44].mxu0 %vm126_vm0, %v9912_v12 }
 0x483   :  { %7907 = vmatprep.mubr.msk.f32.mxu0 %vm126_vm0, %v9915_v17 }
 0x486   :  { %7908 = vmatmul.mubr.msk.f32.gmra.mrb[46].mxu0 %vm126_vm0, %v9927_v13 }
 0x487   :  { %7944 = vmatprep.mubr.msk.f32.mxu0 %vm126_vm0, %v9822_v28 }
 0x48a   :  { %7945 = vmatmul.mubr.msk.f32.vlgmr.msra.gmra.mrb[48].mxu0 %vm126_vm0, %v9839_v42 }
 0x48b   :  { %7947 = vmatprep.mubr.msk.f32.mxu0 %vm126_vm0, %v9843_v48 }
 0x48e   :  { %7948 = vmatmul.mubr.msk.f32.gmra.mrb[50].mxu0 %vm126_vm0, %v9857_v54 }
 0x48f   :  { %7950 = vmatprep.mubr.msk.f32.mxu0 %vm126_vm0, %v9862_v59 }
 0x492   :  { %7951 = vmatmul.mubr.msk.f32.gmra.mrb[52].mxu0 %vm126_vm0, %v9876_v62 }
 0x493   :  { %7953 = vmatprep.mubr.msk.f32.mxu0 %vm126_vm0, %v9880_v1 }
 0x496   :  { %7954 = vmatmul.mubr.msk.f32.gmra.mrb[54].mxu0 %vm126_vm0, %v9894_v8 }
 0x497   :  { %7956 = vmatprep.mubr.msk.f32.mxu0 %vm126_vm0, %v9898_v10 }
 0x49a   :  { %7957 = vmatmul.mubr.msk.f32.gmra.mrb[56].mxu0 %vm126_vm0, %v9912_v12 }
 0x49b   :  { %7959 = vmatprep.mubr.msk.f32.mxu0 %vm126_vm0, %v9915_v17 }
 0x49e   :  { %7960 = vmatmul.mubr.msk.f32.gmra.mrb[58].mxu0 %vm126_vm0, %v9927_v13 }
 0x52d   :  { %v10438_v28 = vpop.f32.mrb[24].mxu0 }
 0x52e   :  { %v10440_v42 = vpop.f32.mrb[25].mxu0 }
 0x531   :  { %v10442_v48 = vpop.f32.mrb[26].mxu0 }
 0x532   :  { %v10444_v54 = vpop.f32.mrb[27].mxu0 }
 0x535   :  { %v10446_v59 = vpop.f32.mrb[28].mxu0 }
 0x536   :  { %v10448_v62 = vpop.f32.mrb[29].mxu0 }
 0x539   :  { %v10450_v1 = vpop.f32.mrb[30].mxu0 }
 0x53a   :  { %v10452_v8 = vpop.f32.mrb[31].mxu0 }
 0x53d   :  { %v10454_v10 = vpop.f32.mrb[32].mxu0 }
 0x53e   :  { %v10456_v12 = vpop.f32.mrb[33].mxu0 }
 0x541   :  { %v10458_v17 = vpop.f32.mrb[34].mxu0 }
 0x542   :  { %v10460_v13 = vpop.f32.mrb[35].mxu0 }
 0x545   :  { %v7894_v53 = vpop.f32.mrb[36].mxu0 }
 0x546   :  { %v1325_v47 = vpop.f32.mrb[37].mxu0  ;;  %v1331_v35 = vadd.f32 %v7894_v53, %v1258_v37 }
 0x547   :  { %v1326_v9 = vadd.f32 %v1325_v47, %v1258_v37 }
 0x549   :  { %v7897_v5 = vpop.f32.mrb[38].mxu0  ;;  %7986 = vmatprep.mubr.msk.f32.mxu1 %vm754_vm1, %v1326_v9 }
 0x54a   :  { %v1335_v43 = vpop.f32.mrb[39].mxu0  ;;  %7987 = vmatmul.mubr.msk.f32.vlgmr.msra.gmra.mrb[36].mxu1 %vm754_vm1, %v1331_v35  ;;  %v1341_v30 = vadd.f32 %v7897_v5, %v1258_v37 }
 0x54b   :  { %v1336_v46 = vadd.f32 %v1335_v43, %v1258_v37 }
 0x54d   :  { %v7900_v25 = vpop.f32.mrb[40].mxu0  ;;  %7989 = vmatprep.mubr.msk.f32.mxu1 %vm754_vm1, %v1336_v46 }
 0x54e   :  { %v1345_v34 = vpop.f32.mrb[41].mxu0  ;;  %7990 = vmatmul.mubr.msk.f32.gmra.mrb[38].mxu1 %vm754_vm1, %v1341_v30  ;;  %v1351_v20 = vadd.f32 %v7900_v25, %v1258_v37 }
 0x54f   :  { %v1346_v61 = vadd.f32 %v1345_v34, %v1258_v37 }
 0x551   :  { %v7903_v32 = vpop.f32.mrb[42].mxu0  ;;  %7992 = vmatprep.mubr.msk.f32.mxu1 %vm754_vm1, %v1346_v61 }
 0x552   :  { %v1355_v4 = vpop.f32.mrb[43].mxu0  ;;  %7993 = vmatmul.mubr.msk.f32.gmra.mrb[40].mxu1 %vm754_vm1, %v1351_v20  ;;  %v1361_v26 = vadd.f32 %v7903_v32, %v1258_v37 }
 0x553   :  { %v1356_v51 = vadd.f32 %v1355_v4, %v1258_v37 }
 0x555   :  { %v7906_v18 = vpop.f32.mrb[44].mxu0  ;;  %7995 = vmatprep.mubr.msk.f32.mxu1 %vm754_vm1, %v1356_v51 }
 0x556   :  { %v1365_v3 = vpop.f32.mrb[45].mxu0  ;;  %7996 = vmatmul.mubr.msk.f32.gmra.mrb[42].mxu1 %vm754_vm1, %v1361_v26  ;;  %v1371_v2 = vadd.f32 %v7906_v18, %v1258_v37 }
 0x557   :  { %v1366_v56 = vadd.f32 %v1365_v3, %v1258_v37 }
 0x559   :  { %v7909_v21 = vpop.f32.mrb[46].mxu0  ;;  %7998 = vmatprep.mubr.msk.f32.mxu1 %vm754_vm1, %v1366_v56 }
 0x55a   :  { %v1375_v23 = vpop.f32.mrb[47].mxu0  ;;  %7999 = vmatmul.mubr.msk.f32.gmra.mrb[44].mxu1 %vm754_vm1, %v1371_v2  ;;  %v1381_v24 = vadd.f32 %v7909_v21, %v1258_v37 }
 0x55b   :  { %v1376_v44 = vadd.f32 %v1375_v23, %v1258_v37 }
 0x55d   :  { %v7946_v55 = vpop.f32.mrb[48].mxu0  ;;  %8001 = vmatprep.mubr.msk.f32.mxu1 %vm754_vm1, %v1376_v44 }
 0x55e   :  { %v1599_v36 = vadd.f32 %v7946_v55, %v1526_v60  ;;  %v1593_v41 = vpop.f32.mrb[49].mxu0  ;;  %8002 = vmatmul.mubr.msk.f32.gmra.mrb[46].mxu1 %vm754_vm1, %v1381_v24 }
 0x55f   :  { %v1594_v31 = vadd.f32 %v1593_v41, %v1526_v60 }
 0x561   :  { %v8797_v40 = vpack.c.bf16 %v1599_v36, %v1594_v31  ;;  %v7949_v22 = vpop.f32.mrb[50].mxu0 }
 0x562   :  { %v1609_v53 = vadd.f32 %v7949_v22, %v1526_v60  ;;  %v1603_v47 = vpop.f32.mrb[51].mxu0 }
 0x563   :  { %v1604_v9 = vadd.f32 %v1603_v47, %v1526_v60  ;;  %8798 = vmatprep.subr.bf16.mxu0 %v8797_v40 }
 0x564   :  { %8800 = vmatpush3.bf16.msra.mxu0 %v8797_v40 }
 0x565   :  { %v8801_v35 = vpack.c.bf16 %v1609_v53, %v1604_v9  ;;  %v7952_v5 = vpop.f32.mrb[52].mxu0 }
 0x566   :  { %v1619_v11 = vadd.f32 %v7952_v5, %v1526_v60  ;;  %v1613_v43 = vpop.f32.mrb[53].mxu0 }
 0x567   :  { %v1614_v37 = vadd.f32 %v1613_v43, %v1526_v60  ;;  %8802 = vmatprep.subr.bf16.mxu0 %v8801_v35 }
 0x568   :  { %8804 = vmatpush3.bf16.msra.mxu0 %v8801_v35 }
 0x569   :  { %v8805_v46 = vpack.c.bf16 %v1619_v11, %v1614_v37  ;;  %v7955_v30 = vpop.f32.mrb[54].mxu0 }
 0x56a   :  { %v1629_v25 = vadd.f32 %v7955_v30, %v1526_v60  ;;  %v1623_v34 = vpop.f32.mrb[55].mxu0 }
 0x56b   :  { %v1624_v61 = vadd.f32 %v1623_v34, %v1526_v60  ;;  %8806 = vmatprep.subr.bf16.mxu0 %v8805_v46 }
 0x56c   :  { %8808 = vmatpush3.bf16.msra.mxu0 %v8805_v46 }
 0x56d   :  { %v8809_v20 = vpack.c.bf16 %v1629_v25, %v1624_v61  ;;  %v7958_v32 = vpop.f32.mrb[56].mxu0 }
 0x56e   :  { %v1639_v4 = vadd.f32 %v7958_v32, %v1526_v60  ;;  %v1633_v51 = vpop.f32.mrb[57].mxu0 }
 0x56f   :  { %v1634_v26 = vadd.f32 %v1633_v51, %v1526_v60  ;;  %8810 = vmatprep.subr.bf16.mxu0 %v8809_v20 }
 0x570   :  { %8812 = vmatpush3.bf16.msra.mxu0 %v8809_v20 }
 0x571   :  { %v8813_v18 = vpack.c.bf16 %v1639_v4, %v1634_v26  ;;  %v7961_v3 = vpop.f32.mrb[58].mxu0 }
 0x572   :  { %v1649_v56 = vadd.f32 %v7961_v3, %v1526_v60  ;;  %v1643_v2 = vpop.f32.mrb[59].mxu0 }
 0x573   :  { %v1644_v21 = vadd.f32 %v1643_v2, %v1526_v60  ;;  %8814 = vmatprep.subr.bf16.mxu0 %v8813_v18 }
 0x574   :  { %8816 = vmatpush3.bf16.msra.mxu0 %v8813_v18 }
 0x575   :  { %v8817_v23 = vpack.c.bf16 %v1649_v56, %v1644_v21 }
 0x577   :  { %8818 = vmatprep.subr.bf16.mxu0 %v8817_v23 }
 0x578   :  { %8820 = vmatpush3.bf16.msra.mxu0 %v8817_v23 }
 0x61d   :  { %v7988_v44 = vpop.f32.mrb[36].mxu1 }
 0x61e   :  { %v1796_v24 = vadd.f32 %v7988_v44, %v10118_v45  ;;  %v1790_v55 = vpop.f32.mrb[37].mxu1 }
 0x61f   :  { %v1791_v36 = vadd.f32 %v1790_v55, %v10121_v50 }
 0x620   :  { %v1852_v41 = vsel %vm952_vm13, %v1796_v24, -inf }
 0x621   :  { %1853 = vmax.xlane.f32.xlu1 %v1852_v41  ;;  %v7991_v31 = vpop.f32.mrb[38].mxu1  ;;  %v1849_v40 = vsel %vm952_vm13, %v1791_v36, -inf }
 0x622   :  { %v1806_v22 = vadd.f32 %v7991_v31, %v10136_v63  ;;  %v1800_v60 = vpop.f32.mrb[39].mxu1  ;;  %1850 = vmax.xlane.f32.xlu0 %v1849_v40 }
 0x623   :  { %v1801_v53 = vadd.f32 %v1800_v60, %v10141_v6 }
 0x624   :  { %v1858_v47 = vsel %vm952_vm13, %v1806_v22, -inf }
 0x625   :  { %1859 = vmax.xlane.f32.xlu1 %v1858_v47  ;;  %v7994_v9 = vpop.f32.mrb[40].mxu1  ;;  %v1855_v35 = vsel %vm952_vm13, %v1801_v53, -inf }
 0x626   :  { %v1816_v5 = vadd.f32 %v7994_v9, %v10172_v29  ;;  %v1810_v11 = vpop.f32.mrb[41].mxu1  ;;  %1856 = vmax.xlane.f32.xlu0 %v1855_v35 }
 0x627   :  { %v1811_v43 = vadd.f32 %v1810_v11, %v10177_v33 }
 0x628   :  { %v1864_v37 = vsel %vm952_vm13, %v1816_v5, -inf }
 0x629   :  { %1865 = vmax.xlane.f32.xlu1 %v1864_v37  ;;  %v7997_v46 = vpop.f32.mrb[42].mxu1  ;;  %v1861_v30 = vsel %vm952_vm13, %v1811_v43, -inf }
 0x62a   :  { %v1826_v25 = vadd.f32 %v7997_v46, %v10198_v38  ;;  %v1820_v34 = vpop.f32.mrb[43].mxu1  ;;  %1862 = vmax.xlane.f32.xlu0 %v1861_v30 }
 0x62b   :  { %v1821_v61 = vadd.f32 %v1820_v34, %v10203_v16 }
 0x62c   :  { %v1870_v20 = vsel %vm952_vm13, %v1826_v25, -inf }
 0x62d   :  { %1871 = vmax.xlane.f32.xlu1 %v1870_v20  ;;  %v8000_v32 = vpop.f32.mrb[44].mxu1  ;;  %v1867_v4 = vsel %vm952_vm13, %v1821_v61, -inf }
 0x62e   :  { %v1836_v51 = vadd.f32 %v8000_v32, %v10216_v14  ;;  %v1830_v26 = vpop.f32.mrb[45].mxu1  ;;  %1868 = vmax.xlane.f32.xlu0 %v1867_v4 }
 0x62f   :  { %v1831_v18 = vadd.f32 %v1830_v26, %v10221_v52 }
 0x630   :  { %v1876_v3 = vsel %vm952_vm13, %v1836_v51, -inf }
 0x631   :  { %1877 = vmax.xlane.f32.xlu1 %v1876_v3  ;;  %v8003_v56 = vpop.f32.mrb[46].mxu1  ;;  %v1873_v2 = vsel %vm952_vm13, %v1831_v18, -inf }
 0x632   :  { %v10499_v21 = vadd.f32 %v8003_v56, %v10232_v7  ;;  %v1840_v23 = vpop.f32.mrb[47].mxu1  ;;  %1874 = vmax.xlane.f32.xlu0 %v1873_v2 }
 0x633   :  { %v10502_v44 = vadd.f32 %v1840_v23, %v10242_v15 }
 0x634   :  { %v1882_v55 = vsel %vm952_vm13, %v10499_v21, -inf }
 0x635   :  { %1883 = vmax.xlane.f32.xlu1 %v1882_v55  ;;  %v1879_v41 = vsel %vm952_vm13, %v10502_v44, -inf }
 0x636   :  { %1880 = vmax.xlane.f32.xlu0 %v1879_v41 }
 0x6ae   :  { %v1854_v31 = vpop.xlane.xlu1 %1853 }
 0x6af   :  { %v1886_v40 = vsub.f32 %v1796_v24, %v1854_v31  ;;  %v1851_v60 = vpop.xlane.xlu0 %1850 }
 0x6b0   :  { %v1885_v47 = vsub.f32 %v1791_v36, %v1851_v60 }
 0x6b1   :  { %v1899_v9 = vmul.f32 1.442695, %v1886_v40 }
 0x6b2   :  { %v1897_v35 = vmul.f32 1.442695, %v1885_v47  ;;  %v1860_v11 = vpop.xlane.xlu1 %1859 }
 0x6b3   :  { %9219 = vpow2.f32 %v1899_v9  ;;  %v1888_v37 = vsub.f32 %v1806_v22, %v1860_v11  ;;  %v1857_v46 = vpop.xlane.xlu0 %1856 }
 0x6b4   :  { %9221 = vpow2.f32 %v1897_v35  ;;  %v1887_v30 = vsub.f32 %v1801_v53, %v1857_v46 }
 0x6b5   :  { %v1903_v34 = vmul.f32 1.442695, %v1888_v37 }
 0x6b6   :  { %v1901_v20 = vmul.f32 1.442695, %v1887_v30  ;;  %v1866_v32 = vpop.xlane.xlu1 %1865 }
 0x6b7   :  { %9223 = vpow2.f32 %v1903_v34  ;;  %v1890_v4 = vsub.f32 %v1816_v5, %v1866_v32  ;;  %v1863_v26 = vpop.xlane.xlu0 %1862 }
 0x6b8   :  { %9225 = vpow2.f32 %v1901_v20  ;;  %v1889_v3 = vsub.f32 %v1811_v43, %v1863_v26 }
 0x6b9   :  { %v1907_v56 = vmul.f32 1.442695, %v1890_v4 }
 0x6ba   :  { %v1905_v24 = vmul.f32 1.442695, %v1889_v3  ;;  %v1872_v2 = vpop.xlane.xlu1 %1871 }
 0x6bb   :  { %9227 = vpow2.f32 %v1907_v56  ;;  %v1892_v36 = vsub.f32 %v1826_v25, %v1872_v2  ;;  %v1869_v23 = vpop.xlane.xlu0 %1868 }
 0x6bc   :  { %9229 = vpow2.f32 %v1905_v24  ;;  %v1891_v55 = vsub.f32 %v1821_v61, %v1869_v23 }
 0x6bd   :  { %v10508_v22 = vpop.eup %9219  ;;  %v1911_v41 = vmul.f32 1.442695, %v1892_v36 }
 0x6be   :  { %v10510_v53 = vpop.eup %9221  ;;  %v1909_v31 = vmul.f32 1.442695, %v1891_v55  ;;  %v1878_v40 = vpop.xlane.xlu1 %1877  ;;  %v1924_v5 = vsel %vm952_vm13, %v10508_v22, 0.0 }
 0x6bf   :  { %9231 = vpow2.f32 %v1911_v41  ;;  %v1894_v43 = vsub.f32 %v1836_v51, %v1878_v40  ;;  %1925 = vadd.xlane.f32.xlu1 %v1924_v5  ;;  %v1875_v60 = vpop.xlane.xlu0 %1874  ;;  %v1921_v25 = vsel %vm952_vm13, %v10510_v53, 0.0 }
 0x6c0   :  { %9233 = vpow2.f32 %v1909_v31  ;;  %v1893_v47 = vsub.f32 %v1831_v18, %v1875_v60  ;;  %1922 = vadd.xlane.f32.xlu0 %v1921_v25  ;;  %v6870_v60 = vld [vmem:[%s12426_s4 + $0x10] sm:$0xff]  ;;  %v6871_v25 = vld [vmem:[%s12426_s4 + $0x18] sm:$0xff] }
 0x6c1   :  { %v10516_v61 = vpop.eup %9223  ;;  %v1915_v9 = vmul.f32 1.442695, %v1894_v43 }
 0x6c2   :  { %v10518_v35 = vpop.eup %9225  ;;  %v1913_v11 = vmul.f32 1.442695, %v1893_v47  ;;  %v1884_v37 = vpop.xlane.xlu1 %1883  ;;  %v1930_v46 = vsel %vm952_vm13, %v10516_v61, 0.0  ;;  %v8821_v47 = vpack.c.bf16 %v6871_v25, %v6870_v60 }
 0x6c3   :  { %9235 = vpow2.f32 %v1915_v9  ;;  %v1896_v51 = vsub.f32 %v10499_v21, %v1884_v37  ;;  %1931 = vadd.xlane.f32.xlu1 %v1930_v46  ;;  %v1881_v30 = vpop.xlane.xlu0 %1880  ;;  %v1927_v34 = vsel %vm952_vm13, %v10518_v35, 0.0 }
 0x6c4   :  { %9237 = vpow2.f32 %v1913_v11  ;;  %v1895_v18 = vsub.f32 %v10502_v44, %v1881_v30  ;;  %1928 = vadd.xlane.f32.xlu0 %v1927_v34  ;;  %8822 = vmatprep.subr.bf16.mxu0 %v8821_v47 }
 0x6c5   :  { %v10526_v20 = vpop.eup %9227  ;;  %v1919_v32 = vmul.f32 1.442695, %v1896_v51 }
 0x6c6   :  { %v10528_v4 = vpop.eup %9229  ;;  %v1917_v26 = vmul.f32 1.442695, %v1895_v18  ;;  %v1936_v3 = vsel %vm952_vm13, %v10526_v20, 0.0 }
 0x6c7   :  { %9239 = vpow2.f32 %v1919_v32  ;;  %1937 = vadd.xlane.f32.xlu1 %v1936_v3  ;;  %v1933_v21 = vsel %vm952_vm13, %v10528_v4, 0.0 }
 0x6c8   :  { %9241 = vpow2.f32 %v1917_v26  ;;  %1934 = vadd.xlane.f32.xlu0 %v1933_v21 }
 0x6c9   :  { %v10534_v56 = vpop.eup %9231 }
 0x6ca   :  { %v10536_v44 = vpop.eup %9233  ;;  %v1942_v24 = vsel %vm952_vm13, %v10534_v56, 0.0 }
 0x6cb   :  { %1943 = vadd.xlane.f32.xlu1 %v1942_v24  ;;  %v1939_v2 = vsel %vm952_vm13, %v10536_v44, 0.0 }
 0x6cc   :  { %1940 = vadd.xlane.f32.xlu0 %v1939_v2 }
 0x6cd   :  { %v10542_v36 = vpop.eup %9235 }
 0x6ce   :  { %v10544_v23 = vpop.eup %9237  ;;  %v1948_v55 = vsel %vm952_vm13, %v10542_v36, 0.0 }
 0x6cf   :  { %1949 = vadd.xlane.f32.xlu1 %v1948_v55  ;;  %v1945_v41 = vsel %vm952_vm13, %v10544_v23, 0.0 }
 0x6d0   :  { %1946 = vadd.xlane.f32.xlu0 %v1945_v41 }
 0x6d1   :  { %v10550_v31 = vpop.eup %9239 }
 0x6d2   :  { %v10552_v40 = vpop.eup %9241  ;;  %v1954_v5 = vsel %vm952_vm13, %v10550_v31, 0.0 }
 0x6d3   :  { %1955 = vadd.xlane.f32.xlu1 %v1954_v5  ;;  %v1951_v43 = vsel %vm952_vm13, %v10552_v40, 0.0 }
 0x6d4   :  { %1952 = vadd.xlane.f32.xlu0 %v1951_v43 }
 0x74c   :  { %v1926_v9 = vpop.xlane.xlu1 %1925 }
 0x74d   :  { %9243 = vrcp.f32 %v1926_v9  ;;  %v1923_v11 = vpop.xlane.xlu0 %1922 }
 0x74e   :  { %9245 = vrcp.f32 %v1923_v11 }
 0x750   :  { %v1932_v37 = vpop.xlane.xlu1 %1931 }
 0x751   :  { %9247 = vrcp.f32 %v1932_v37  ;;  %v1929_v46 = vpop.xlane.xlu0 %1928 }
 0x752   :  { %9249 = vrcp.f32 %v1929_v46 }
 0x754   :  { %v1938_v51 = vpop.xlane.xlu1 %1937 }
 0x755   :  { %9251 = vrcp.f32 %v1938_v51  ;;  %v1935_v30 = vpop.xlane.xlu0 %1934 }
 0x756   :  { %9253 = vrcp.f32 %v1935_v30 }
 0x757   :  { %v9244_v34 = vpop.eup %9243 }
 0x758   :  { %v9246_v18 = vpop.eup %9245  ;;  %v1944_v32 = vpop.xlane.xlu1 %1943  ;;  %v1970_v21 = vmul.f32 %v9244_v34, %v10508_v22 }
 0x759   :  { %9255 = vrcp.f32 %v1944_v32  ;;  %v1941_v26 = vpop.xlane.xlu0 %1940  ;;  %v1969_v3 = vmul.f32 %v9246_v18, %v10510_v53 }
 0x75a   :  { %9257 = vrcp.f32 %v1941_v26 }
 0x75b   :  { %v9248_v24 = vpop.eup %9247  ;;  %8028 = vmatprep.mubr.msk.f32.mxu0 %vm952_vm13, %v1969_v3 }
 0x75c   :  { %v9250_v2 = vpop.eup %9249  ;;  %v1950_v55 = vpop.xlane.xlu1 %1949  ;;  %8029 = vmatmul.mubr.msk.f32.vlgmr.msra.gmra.mrb[60].mxu0 %vm952_vm13, %v1970_v21  ;;  %v1972_v43 = vmul.f32 %v9248_v24, %v10516_v61 }
 0x75d   :  { %9259 = vrcp.f32 %v1950_v55  ;;  %v1947_v41 = vpop.xlane.xlu0 %1946  ;;  %v1971_v5 = vmul.f32 %v9250_v2, %v10518_v35  ;;  %8824 = vmatpush3.bf16.msra.mxu0 %v8821_v47 }
 0x75e   :  { %9261 = vrcp.f32 %v1947_v41 }
 0x75f   :  { %v9252_v60 = vpop.eup %9251  ;;  %8031 = vmatprep.mubr.msk.f32.mxu0 %vm952_vm13, %v1971_v5 }
 0x760   :  { %v9254_v22 = vpop.eup %9253  ;;  %v1956_v53 = vpop.xlane.xlu1 %1955  ;;  %8032 = vmatmul.mubr.msk.f32.gmra.mrb[62].mxu0 %vm952_vm13, %v1972_v43  ;;  %v1974_v11 = vmul.f32 %v9252_v60, %v10526_v20  ;;  %v9576_v60 = vld [vmem:[%s12422_s0 + $0x18] sm:$0xff] }
 0x761   :  { %9263 = vrcp.f32 %v1956_v53  ;;  %v1953_v25 = vpop.xlane.xlu0 %1952  ;;  %v1973_v9 = vmul.f32 %v9254_v22, %v10528_v4 }
 0x762   :  { %9265 = vrcp.f32 %v1953_v25 }
 0x763   :  { %v9256_v37 = vpop.eup %9255  ;;  %8034 = vmatprep.mubr.msk.f32.mxu0 %vm952_vm13, %v1973_v9  ;;  %v9577_v9 = vld [vmem:[%s12422_s0 + $0x10] sm:$0xff] }
 0x764   :  { %v9258_v35 = vpop.eup %9257  ;;  %8035 = vmatmul.mubr.msk.f32.gmra.mrb[64].mxu0 %vm952_vm13, %v1974_v11  ;;  %v1976_v47 = vmul.f32 %v9256_v37, %v10534_v56 }
 0x765   :  { %v1975_v61 = vmul.f32 %v9258_v35, %v10536_v44 }
 0x767   :  { %v9260_v46 = vpop.eup %9259  ;;  %8037 = vmatprep.mubr.msk.f32.mxu0 %vm952_vm13, %v1975_v61 }
 0x768   :  { %v9262_v51 = vpop.eup %9261  ;;  %8038 = vmatmul.mubr.msk.f32.gmra.mrb[66].mxu0 %vm952_vm13, %v1976_v47  ;;  %v1978_v20 = vmul.f32 %v9260_v46, %v10542_v36  ;;  %v1247_v36 = vld [vmem:[%s12426_s4 + $0x8] sm:$0xff] }
 0x769   :  { %v1977_v4 = vmul.f32 %v9262_v51, %v10544_v23  ;;  %v1246_v23 = vld [vmem:[%s12426_s4] sm:$0xff]  ;;  %v9578_v46 = vld [vmem:[%s12422_s0 + $0x28] sm:$0xff] }
 0x76a   :  { %v8825_v18 = vpack.c.bf16 %v1247_v36, %v1246_v23 }
 0x76b   :  { %v9264_v30 = vpop.eup %9263  ;;  %8040 = vmatprep.mubr.msk.f32.mxu0 %vm952_vm13, %v1977_v4 }
 0x76c   :  { %v9266_v34 = vpop.eup %9265  ;;  %8041 = vmatmul.mubr.msk.f32.gmra.mrb[68].mxu0 %vm952_vm13, %v1978_v20  ;;  %v1980_v56 = vmul.f32 %v9264_v30, %v10550_v31  ;;  %8826 = vmatprep.subr.bf16.mxu0 %v8825_v18  ;;  %v9579_v30 = vld [vmem:[%s12422_s0 + $0x20] sm:$0xff] }
 0x76d   :  { %v1979_v44 = vmul.f32 %v9266_v34, %v10552_v40 }
 0x76f   :  { %8043 = vmatprep.mubr.msk.f32.mxu0 %vm952_vm13, %v1979_v44 }
 0x770   :  { %8044 = vmatmul.mubr.msk.f32.gmra.mrb[70].mxu0 %vm952_vm13, %v1980_v56 }
 0x82f   :  { %v8030_v32 = vpop.f32.mrb[60].mxu0 }
 0x830   :  { %v2083_v26 = vpop.f32.mrb[61].mxu0 }
 0x831   :  { %8050 = vmatprep.mubr.msk.f32.mxu0 %vm754_vm1, %v2083_v26 }
 0x832   :  { %8051 = vmatmul.mubr.msk.f32.vlgmr.msra.gmra.mrb[72].mxu0 %vm754_vm1, %v8030_v32 }
 0x833   :  { %v8033_v31 = vpop.f32.mrb[62].mxu0  ;;  %8828 = vmatpush3.bf16.msra.mxu0 %v8825_v18  ;;  %v9580_v18 = vld [vmem:[%s12422_s0 + $0x38] sm:$0xff] }
 0x834   :  { %v2093_v40 = vpop.f32.mrb[63].mxu0 }
 0x835   :  { %8053 = vmatprep.mubr.msk.f32.mxu0 %vm754_vm1, %v2093_v40  ;;  %v9581_v40 = vld [vmem:[%s12422_s0 + $0x30] sm:$0xff] }
 0x836   :  { %8054 = vmatmul.mubr.msk.f32.gmra.mrb[74].mxu0 %vm754_vm1, %v8033_v31 }
 0x837   :  { %v8036_v3 = vpop.f32.mrb[64].mxu0 }
 0x838   :  { %v2103_v21 = vpop.f32.mrb[65].mxu0 }
 0x839   :  { %8056 = vmatprep.mubr.msk.f32.mxu0 %vm754_vm1, %v2103_v21 }
 0x83a   :  { %8057 = vmatmul.mubr.msk.f32.gmra.mrb[76].mxu0 %vm754_vm1, %v8036_v3 }
 0x83b   :  { %v8039_v24 = vpop.f32.mrb[66].mxu0 }
 0x83c   :  { %v2113_v2 = vpop.f32.mrb[67].mxu0 }
 0x83d   :  { %8059 = vmatprep.mubr.msk.f32.mxu0 %vm754_vm1, %v2113_v2 }
 0x83e   :  { %8060 = vmatmul.mubr.msk.f32.gmra.mrb[78].mxu0 %vm754_vm1, %v8039_v24 }
 0x83f   :  { %v8042_v55 = vpop.f32.mrb[68].mxu0 }
 0x840   :  { %v2123_v41 = vpop.f32.mrb[69].mxu0 }
 0x841   :  { %8062 = vmatprep.mubr.msk.f32.mxu0 %vm754_vm1, %v2123_v41  ;;  %v9582_v41 = vld [vmem:[%s12422_s0 + $0x48] sm:$0xff] }
 0x842   :  { %8063 = vmatmul.mubr.msk.f32.gmra.mrb[80].mxu0 %vm754_vm1, %v8042_v55 }
 0x843   :  { %v8045_v5 = vpop.f32.mrb[70].mxu0 }
 0x844   :  { %v2133_v43 = vpop.f32.mrb[71].mxu0 }
 0x845   :  { %8065 = vmatprep.mubr.msk.f32.mxu0 %vm754_vm1, %v2133_v43 }
 0x846   :  { %8066 = vmatmul.mubr.msk.f32.gmra.mrb[82].mxu0 %vm754_vm1, %v8045_v5 }
 0x847   :  { %8072 = vmatprep.mubr.msk.f32.mxu0 %vm754_vm1, %v10440_v42  ;;  %v10634_v42 = vld [vmem:[%s12424_s7] sm:$0xff] }
 0x84a   :  { %8073 = vmatmul.mubr.msk.f32.vlgmr.msra.gmra.mrb[72].mxu0 %vm754_vm1, %v10438_v28  ;;  %v12437_v28 = vsub.s32 4, %v9801_v49 }
 0x84b   :  { %8075 = vmatprep.mubr.msk.f32.mxu0 %vm754_vm1, %v10444_v54 }
 0x84e   :  { %8076 = vmatmul.mubr.msk.f32.gmra.mrb[74].mxu0 %vm754_vm1, %v10442_v48  ;;  %v10639_v48 = vrot.slane %v10634_v42, %v12437_v28 }
 0x84f   :  { %8078 = vmatprep.mubr.msk.f32.mxu0 %vm754_vm1, %v10448_v62 }
 0x852   :  { %8079 = vmatmul.mubr.msk.f32.gmra.mrb[76].mxu0 %vm754_vm1, %v10446_v59  ;;  %v9574_v59 = vld [vmem:[%s12422_s0 + $0x8] sm:$0xff] }
 0x853   :  { %8081 = vmatprep.mubr.msk.f32.mxu0 %vm754_vm1, %v10452_v8  ;;  %v9575_v8 = vld [vmem:[%s12422_s0] sm:$0xff] }
 0x856   :  { %8082 = vmatmul.mubr.msk.f32.gmra.mrb[78].mxu0 %vm754_vm1, %v10450_v1 }
 0x857   :  { %8084 = vmatprep.mubr.msk.f32.mxu0 %vm754_vm1, %v10456_v12 }
 0x85a   :  { %8085 = vmatmul.mubr.msk.f32.gmra.mrb[80].mxu0 %vm754_vm1, %v10454_v10 }
 0x85b   :  { %8087 = vmatprep.mubr.msk.f32.mxu0 %vm754_vm1, %v10460_v13 }
 0x85e   :  { %8088 = vmatmul.mubr.msk.f32.gmra.mrb[82].mxu0 %vm754_vm1, %v10458_v17 }
 0x91d   :  { %v8074_v54 = vpop.f32.mrb[72].mxu0 }
 0x91e   :  { %v2468_v62 = vadd.f32 %v9574_v59, %v8074_v54  ;;  %v2408_v1 = vpop.f32.mrb[73].mxu0  ;;  %v9583_v59 = vld [vmem:[%s12422_s0 + $0x40] sm:$0xff] }
 0x91f   :  { %v2467_v10 = vadd.f32 %v9575_v8, %v2408_v1 }
 0x920   :  { %v10648_v12 = vadd.f32 %v10639_v48, %v2468_v62 }
 0x921   :  { %v10651_v17 = vadd.f32 %v10639_v48, %v2467_v10  ;;  %v8077_v13 = vpop.f32.mrb[74].mxu0 }
 0x922   :  { %v2470_v22 = vadd.f32 %v9576_v60, %v8077_v13  ;;  %v2418_v53 = vpop.f32.mrb[75].mxu0  ;;  %v2498_v25 = vsel %vm126_vm0, %v10648_v12, 0.0  ;;  %v9584_v60 = vld [vmem:[%s12422_s0 + $0x58] sm:$0xff] }
 0x923   :  { %v2469_v11 = vadd.f32 %v9577_v9, %v2418_v53  ;;  %2499 = vadd.xlane.f32.xlu1 %v2498_v25  ;;  %v2495_v37 = vsel %vm126_vm0, %v10651_v17, 0.0  ;;  %v9585_v9 = vld [vmem:[%s12422_s0 + $0x50] sm:$0xff] }
 0x924   :  { %v10664_v35 = vadd.f32 %v10639_v48, %v2470_v22  ;;  %2496 = vadd.xlane.f32.xlu0 %v2495_v37 }
 0x925   :  { %v10667_v61 = vadd.f32 %v10639_v48, %v2469_v11  ;;  %v8080_v47 = vpop.f32.mrb[76].mxu0 }
 0x926   :  { %v2472_v51 = vadd.f32 %v9578_v46, %v8080_v47  ;;  %v2428_v4 = vpop.f32.mrb[77].mxu0  ;;  %v2504_v20 = vsel %vm126_vm0, %v10664_v35, 0.0 }
 0x927   :  { %v2471_v34 = vadd.f32 %v9579_v30, %v2428_v4  ;;  %2505 = vadd.xlane.f32.xlu1 %v2504_v20  ;;  %v2501_v44 = vsel %vm126_vm0, %v10667_v61, 0.0  ;;  %v2683_v20 = vld [vmem:[%s12427_s5] sm:$0xff]  ;;  %v2684_v30 = vld [vmem:[%s12427_s5 + $0x8] sm:$0xff] }
 0x928   :  { %v10680_v56 = vadd.f32 %v10639_v48, %v2472_v51  ;;  %2502 = vadd.xlane.f32.xlu0 %v2501_v44 }
 0x929   :  { %v10683_v23 = vadd.f32 %v10639_v48, %v2471_v34  ;;  %v8083_v36 = vpop.f32.mrb[78].mxu0  ;;  %v8829_v34 = vpack.c.bf16 %v2684_v30, %v2683_v20 }
 0x92a   :  { %v2474_v32 = vadd.f32 %v9580_v18, %v8083_v36  ;;  %v2438_v26 = vpop.f32.mrb[79].mxu0  ;;  %v2510_v31 = vsel %vm126_vm0, %v10680_v56, 0.0 }
 0x92b   :  { %v2473_v3 = vadd.f32 %v9581_v40, %v2438_v26  ;;  %2511 = vadd.xlane.f32.xlu1 %v2510_v31  ;;  %v2507_v21 = vsel %vm126_vm0, %v10683_v23, 0.0  ;;  %8830 = vmatprep.subr.bf16.mxu1 %v8829_v34 }
 0x92c   :  { %v10696_v24 = vadd.f32 %v10639_v48, %v2474_v32  ;;  %2508 = vadd.xlane.f32.xlu0 %v2507_v21  ;;  %8832 = vmatpush3.bf16.msra.mxu1 %v8829_v34 }
 0x92d   :  { %v10699_v2 = vadd.f32 %v10639_v48, %v2473_v3  ;;  %v8086_v55 = vpop.f32.mrb[80].mxu0 }
 0x92e   :  { %v2476_v5 = vadd.f32 %v9582_v41, %v8086_v55  ;;  %v2448_v43 = vpop.f32.mrb[81].mxu0  ;;  %v2516_v54 = vsel %vm126_vm0, %v10696_v24, 0.0 }
 0x92f   :  { %v2475_v62 = vadd.f32 %v9583_v59, %v2448_v43  ;;  %2517 = vadd.xlane.f32.xlu1 %v2516_v54  ;;  %v2513_v1 = vsel %vm126_vm0, %v10699_v2, 0.0 }
 0x930   :  { %v10712_v8 = vadd.f32 %v10639_v48, %v2476_v5  ;;  %2514 = vadd.xlane.f32.xlu0 %v2513_v1 }
 0x931   :  { %v10715_v10 = vadd.f32 %v10639_v48, %v2475_v62  ;;  %v8089_v13 = vpop.f32.mrb[82].mxu0 }
 0x932   :  { %v2478_v22 = vadd.f32 %v9584_v60, %v8089_v13  ;;  %v2458_v53 = vpop.f32.mrb[83].mxu0  ;;  %v2522_v25 = vsel %vm126_vm0, %v10712_v8, 0.0 }
 0x933   :  { %v2477_v11 = vadd.f32 %v9585_v9, %v2458_v53  ;;  %2523 = vadd.xlane.f32.xlu1 %v2522_v25  ;;  %v2519_v37 = vsel %vm126_vm0, %v10715_v10, 0.0 }
 0x934   :  { %v10728_v47 = vadd.f32 %v10639_v48, %v2478_v22  ;;  %2520 = vadd.xlane.f32.xlu0 %v2519_v37 }
 0x935   :  { %v10731_v46 = vadd.f32 %v10639_v48, %v2477_v11 }
 0x936   :  { %v2528_v51 = vsel %vm126_vm0, %v10728_v47, 0.0 }
 0x937   :  { %2529 = vadd.xlane.f32.xlu1 %v2528_v51  ;;  %v2525_v4 = vsel %vm126_vm0, %v10731_v46, 0.0 }
 0x938   :  { %2526 = vadd.xlane.f32.xlu0 %v2525_v4 }
 0x9b0   :  { %v2500_v48 = vpop.xlane.xlu1 %2499 }
 0x9b1   :  { %v2532_v44 = vmul.f32 0.03125, %v2500_v48  ;;  %v2497_v36 = vpop.xlane.xlu0 %2496 }
 0x9b2   :  { %v2531_v18 = vmul.f32 0.03125, %v2497_v36 }
 0x9b3   :  { %v10744_v32 = vsub.f32 %v10648_v12, %v2532_v44 }
 0x9b4   :  { %v10747_v26 = vsub.f32 %v10651_v17, %v2531_v18  ;;  %v2506_v31 = vpop.xlane.xlu1 %2505 }
 0x9b5   :  { %v2534_v40 = vmul.f32 0.03125, %v2506_v31  ;;  %v2503_v3 = vpop.xlane.xlu0 %2502  ;;  %v2556_v21 = vmul.f32 %v10744_v32, %v10744_v32 }
 0x9b6   :  { %v2533_v55 = vmul.f32 0.03125, %v2503_v3  ;;  %v2555_v41 = vmul.f32 %v10747_v26, %v10747_v26 }
 0x9b7   :  { %v10754_v5 = vsub.f32 %v10664_v35, %v2534_v40  ;;  %v2570_v43 = vsel %vm126_vm0, %v2556_v21, 0.0 }
 0x9b8   :  { %v10758_v54 = vsub.f32 %v10667_v61, %v2533_v55  ;;  %v2512_v59 = vpop.xlane.xlu1 %2511  ;;  %2571 = vadd.xlane.f32.xlu1 %v2570_v43  ;;  %v2567_v62 = vsel %vm126_vm0, %v2555_v41, 0.0 }
 0x9b9   :  { %v2536_v1 = vmul.f32 0.03125, %v2512_v59  ;;  %v2509_v13 = vpop.xlane.xlu0 %2508  ;;  %2568 = vadd.xlane.f32.xlu0 %v2567_v62  ;;  %v2558_v60 = vmul.f32 %v10754_v5, %v10754_v5 }
 0x9ba   :  { %v2535_v22 = vmul.f32 0.03125, %v2509_v13  ;;  %v2557_v53 = vmul.f32 %v10758_v54, %v10758_v54 }
 0x9bb   :  { %v10766_v25 = vsub.f32 %v10680_v56, %v2536_v1  ;;  %v2576_v9 = vsel %vm126_vm0, %v2558_v60, 0.0 }
 0x9bc   :  { %v10770_v11 = vsub.f32 %v10683_v23, %v2535_v22  ;;  %v2518_v37 = vpop.xlane.xlu1 %2517  ;;  %2577 = vadd.xlane.f32.xlu1 %v2576_v9  ;;  %v2573_v51 = vsel %vm126_vm0, %v2557_v53, 0.0 }
 0x9bd   :  { %v2538_v4 = vmul.f32 0.03125, %v2518_v37  ;;  %v2515_v20 = vpop.xlane.xlu0 %2514  ;;  %2574 = vadd.xlane.f32.xlu0 %v2573_v51  ;;  %v2560_v30 = vmul.f32 %v10766_v25, %v10766_v25 }
 0x9be   :  { %v2537_v34 = vmul.f32 0.03125, %v2515_v20  ;;  %v2559_v48 = vmul.f32 %v10770_v11, %v10770_v11 }
 0x9bf   :  { %v10778_v44 = vsub.f32 %v10696_v24, %v2538_v4  ;;  %v2582_v36 = vsel %vm126_vm0, %v2560_v30, 0.0 }
 0x9c0   :  { %v10782_v18 = vsub.f32 %v10699_v2, %v2537_v34  ;;  %v2524_v31 = vpop.xlane.xlu1 %2523  ;;  %2583 = vadd.xlane.f32.xlu1 %v2582_v36  ;;  %v2579_v40 = vsel %vm126_vm0, %v2559_v48, 0.0 }
 0x9c1   :  { %v2540_v3 = vmul.f32 0.03125, %v2524_v31  ;;  %v2521_v21 = vpop.xlane.xlu0 %2520  ;;  %2580 = vadd.xlane.f32.xlu0 %v2579_v40  ;;  %v2562_v55 = vmul.f32 %v10778_v44, %v10778_v44 }
 0x9c2   :  { %v2539_v41 = vmul.f32 0.03125, %v2521_v21  ;;  %v2561_v43 = vmul.f32 %v10782_v18, %v10782_v18  ;;  %v2686_v21 = vld [vmem:[%s12427_s5 + $0x18] sm:$0xff] }
 0x9c3   :  { %v10790_v59 = vsub.f32 %v10712_v8, %v2540_v3  ;;  %v2588_v62 = vsel %vm126_vm0, %v2562_v55, 0.0  ;;  %v2685_v3 = vld [vmem:[%s12427_s5 + $0x10] sm:$0xff] }
 0x9c4   :  { %v10794_v1 = vsub.f32 %v10715_v10, %v2539_v41  ;;  %2589 = vadd.xlane.f32.xlu1 %v2588_v62  ;;  %v2530_v13 = vpop.xlane.xlu1 %2529  ;;  %v2585_v60 = vsel %vm126_vm0, %v2561_v43, 0.0  ;;  %v8833_v55 = vpack.c.bf16 %v2686_v21, %v2685_v3 }
 0x9c5   :  { %v2542_v22 = vmul.f32 0.03125, %v2530_v13  ;;  %2586 = vadd.xlane.f32.xlu0 %v2585_v60  ;;  %v2527_v53 = vpop.xlane.xlu0 %2526  ;;  %v2564_v9 = vmul.f32 %v10790_v59, %v10790_v59 }
 0x9c6   :  { %v2541_v37 = vmul.f32 0.03125, %v2527_v53  ;;  %v2563_v51 = vmul.f32 %v10794_v1, %v10794_v1  ;;  %8834 = vmatprep.subr.bf16.mxu1 %v8833_v55 }
 0x9c7   :  { %v10802_v4 = vsub.f32 %v10728_v47, %v2542_v22  ;;  %v2594_v20 = vsel %vm126_vm0, %v2564_v9, 0.0  ;;  %8836 = vmatpush3.bf16.msra.mxu1 %v8833_v55 }
 0x9c8   :  { %v10806_v30 = vsub.f32 %v10731_v46, %v2541_v37  ;;  %2595 = vadd.xlane.f32.xlu1 %v2594_v20  ;;  %v2591_v34 = vsel %vm126_vm0, %v2563_v51, 0.0 }
 0x9c9   :  { %2592 = vadd.xlane.f32.xlu0 %v2591_v34  ;;  %v2566_v48 = vmul.f32 %v10802_v4, %v10802_v4 }
 0x9ca   :  { %v2565_v36 = vmul.f32 %v10806_v30, %v10806_v30 }
 0x9cb   :  { %v2600_v31 = vsel %vm126_vm0, %v2566_v48, 0.0 }
 0x9cc   :  { %2601 = vadd.xlane.f32.xlu1 %v2600_v31  ;;  %v2597_v40 = vsel %vm126_vm0, %v2565_v36, 0.0 }
 0x9cd   :  { %2598 = vadd.xlane.f32.xlu0 %v2597_v40 }
 0xa45   :  { %v2572_v41 = vpop.xlane.xlu1 %2571 }
 0xa46   :  { %v2604_v43 = vmul.f32 0.03125, %v2572_v41  ;;  %v2569_v62 = vpop.xlane.xlu0 %2568 }
 0xa47   :  { %v2603_v13 = vmul.f32 0.03125, %v2569_v62  ;;  %v12436_v62 = vsub.s32 3, %v9801_v49 }
 0xa48   :  { %v2616_v60 = vadd.f32 1e-05, %v2604_v43 }
 0xa49   :  { %v2615_v22 = vadd.f32 1e-05, %v2603_v13  ;;  %v2578_v53 = vpop.xlane.xlu1 %2577  ;;  %v10824_v13 = vrot.slane %v10634_v42, %v10000_v57 }
 0xa4a   :  { %9267 = vrsqrt.f32 %v2616_v60  ;;  %v2606_v9 = vmul.f32 0.03125, %v2578_v53  ;;  %v2575_v37 = vpop.xlane.xlu0 %2574 }
 0xa4b   :  { %9269 = vrsqrt.f32 %v2615_v22  ;;  %v2605_v51 = vmul.f32 0.03125, %v2575_v37 }
 0xa4c   :  { %v2618_v20 = vadd.f32 1e-05, %v2606_v9 }
 0xa4d   :  { %v2617_v34 = vadd.f32 1e-05, %v2605_v51  ;;  %v2584_v48 = vpop.xlane.xlu1 %2583 }
 0xa4e   :  { %9271 = vrsqrt.f32 %v2618_v20  ;;  %v2608_v36 = vmul.f32 0.03125, %v2584_v48  ;;  %v2581_v31 = vpop.xlane.xlu0 %2580 }
 0xa4f   :  { %9273 = vrsqrt.f32 %v2617_v34  ;;  %v2607_v40 = vmul.f32 0.03125, %v2581_v31  ;;  %v10831_v31 = vrot.slane %v10634_v42, %v12436_v62 }
 0xa50   :  { %v2620_v3 = vadd.f32 1e-05, %v2608_v36 }
 0xa51   :  { %v2619_v21 = vadd.f32 1e-05, %v2607_v40  ;;  %v2590_v55 = vpop.xlane.xlu1 %2589 }
 0xa52   :  { %9275 = vrsqrt.f32 %v2620_v3  ;;  %v2610_v41 = vmul.f32 0.03125, %v2590_v55  ;;  %v2587_v43 = vpop.xlane.xlu0 %2586 }
 0xa53   :  { %9277 = vrsqrt.f32 %v2619_v21  ;;  %v2609_v60 = vmul.f32 0.03125, %v2587_v43 }
 0xa54   :  { %v9268_v22 = vpop.eup %9267  ;;  %v2622_v53 = vadd.f32 1e-05, %v2610_v41 }
 0xa55   :  { %v9270_v9 = vpop.eup %9269  ;;  %v2640_v37 = vmul.f32 %v9268_v22, %v10744_v32  ;;  %v2621_v51 = vadd.f32 1e-05, %v2609_v60  ;;  %v2596_v20 = vpop.xlane.xlu1 %2595 }
 0xa56   :  { %9279 = vrsqrt.f32 %v2622_v53  ;;  %v2612_v34 = vmul.f32 0.03125, %v2596_v20  ;;  %v2593_v48 = vpop.xlane.xlu0 %2592  ;;  %v2639_v36 = vmul.f32 %v9270_v9, %v10747_v26 }
 0xa57   :  { %v2656_v40 = vmul.f32 %v10824_v13, %v2640_v37  ;;  %9281 = vrsqrt.f32 %v2621_v51  ;;  %v2611_v3 = vmul.f32 0.03125, %v2593_v48 }
 0xa58   :  { %v9272_v21 = vpop.eup %9271  ;;  %v2624_v55 = vadd.f32 1e-05, %v2612_v34  ;;  %v2655_v32 = vmul.f32 %v10824_v13, %v2639_v36 }
 0xa59   :  { %v9274_v41 = vpop.eup %9273  ;;  %v2623_v43 = vadd.f32 1e-05, %v2611_v3  ;;  %v2602_v60 = vpop.xlane.xlu1 %2601  ;;  %v2642_v22 = vmul.f32 %v9272_v21, %v10754_v5  ;;  %v2672_v51 = vadd.f32 %v10831_v31, %v2656_v40 }
 0xa5a   :  { %9283 = vrsqrt.f32 %v2624_v55  ;;  %v2614_v26 = vmul.f32 0.03125, %v2602_v60  ;;  %v2599_v53 = vpop.xlane.xlu0 %2598  ;;  %v2671_v9 = vadd.f32 %v10831_v31, %v2655_v32  ;;  %v2641_v20 = vmul.f32 %v9274_v41, %v10758_v54 }
 0xa5b   :  { %9285 = vrsqrt.f32 %v2623_v43  ;;  %v2613_v37 = vmul.f32 0.03125, %v2599_v53  ;;  %v2658_v34 = vmul.f32 %v10824_v13, %v2642_v22 }
 0xa5c   :  { %v9276_v48 = vpop.eup %9275  ;;  %v2626_v36 = vadd.f32 1e-05, %v2614_v26  ;;  %8098 = vmatprep.mubr.msk.f32.mxu1 %vm126_vm0, %v2671_v9  ;;  %v2657_v3 = vmul.f32 %v10824_v13, %v2641_v20 }
 0xa5d   :  { %v9278_v5 = vpop.eup %9277  ;;  %v2625_v21 = vadd.f32 1e-05, %v2613_v37  ;;  %8099 = vmatmul.mubr.msk.f32.vlgmr.msra.gmra.mrb[48].mxu1 %vm126_vm0, %v2672_v51  ;;  %v2644_v55 = vmul.f32 %v9276_v48, %v10766_v25  ;;  %v2674_v40 = vadd.f32 %v10831_v31, %v2658_v34 }
 0xa5e   :  { %9287 = vrsqrt.f32 %v2626_v36  ;;  %v2673_v54 = vadd.f32 %v10831_v31, %v2657_v3  ;;  %v2643_v32 = vmul.f32 %v9278_v5, %v10770_v11 }
 0xa5f   :  { %9289 = vrsqrt.f32 %v2625_v21  ;;  %v2660_v41 = vmul.f32 %v10824_v13, %v2644_v55 }
 0xa60   :  { %v9280_v43 = vpop.eup %9279  ;;  %8101 = vmatprep.mubr.msk.f32.mxu1 %vm126_vm0, %v2673_v54  ;;  %v2659_v60 = vmul.f32 %v10824_v13, %v2643_v32 }
 0xa61   :  { %v9282_v22 = vpop.eup %9281  ;;  %8102 = vmatmul.mubr.msk.f32.gmra.mrb[50].mxu1 %vm126_vm0, %v2674_v40  ;;  %v2646_v25 = vmul.f32 %v9280_v43, %v10778_v44  ;;  %v2676_v11 = vadd.f32 %v10831_v31, %v2660_v41 }
 0xa62   :  { %v2675_v26 = vadd.f32 %v10831_v31, %v2659_v60  ;;  %v2645_v53 = vmul.f32 %v9282_v22, %v10782_v18 }
 0xa63   :  { %v2662_v9 = vmul.f32 %v10824_v13, %v2646_v25  ;;  %v2952_v25 = vld [vmem:[%s12428_s6 + $0x20] sm:$0xff] }
 0xa64   :  { %v9284_v20 = vpop.eup %9283  ;;  %8104 = vmatprep.mubr.msk.f32.mxu1 %vm126_vm0, %v2675_v26  ;;  %v2661_v37 = vmul.f32 %v10824_v13, %v2645_v53  ;;  %v2953_v26 = vld [vmem:[%s12428_s6 + $0x28] sm:$0xff] }
 0xa65   :  { %v9286_v51 = vpop.eup %9285  ;;  %8105 = vmatmul.mubr.msk.f32.gmra.mrb[52].mxu1 %vm126_vm0, %v2676_v11  ;;  %v2648_v34 = vmul.f32 %v9284_v20, %v10790_v59  ;;  %v2678_v18 = vadd.f32 %v10831_v31, %v2662_v9  ;;  %v8845_v53 = vpack.c.bf16 %v2953_v26, %v2952_v25  ;;  %v2954_v11 = vld [vmem:[%s12428_s6 + $0x30] sm:$0xff]  ;;  %v2955_v9 = vld [vmem:[%s12428_s6 + $0x38] sm:$0xff] }
 0xa66   :  { %v2677_v44 = vadd.f32 %v10831_v31, %v2661_v37  ;;  %v2647_v48 = vmul.f32 %v9286_v51, %v10794_v1  ;;  %v8849_v20 = vpack.c.bf16 %v2955_v9, %v2954_v11  ;;  %v2956_v37 = vld [vmem:[%s12428_s6 + $0x40] sm:$0xff]  ;;  %v2957_v51 = vld [vmem:[%s12428_s6 + $0x48] sm:$0xff] }
 0xa67   :  { %v2664_v36 = vmul.f32 %v10824_v13, %v2648_v34  ;;  %v8853_v34 = vpack.c.bf16 %v2957_v51, %v2956_v37 }
 0xa68   :  { %v9288_v3 = vpop.eup %9287  ;;  %8107 = vmatprep.mubr.msk.f32.mxu1 %vm126_vm0, %v2677_v44  ;;  %v2663_v5 = vmul.f32 %v10824_v13, %v2647_v48  ;;  %v2958_v44 = vld [vmem:[%s12428_s6 + $0x50] sm:$0xff]  ;;  %v2959_v48 = vld [vmem:[%s12428_s6 + $0x58] sm:$0xff] }
 0xa69   :  { %v9290_v21 = vpop.eup %9289  ;;  %8108 = vmatmul.mubr.msk.f32.gmra.mrb[54].mxu1 %vm126_vm0, %v2678_v18  ;;  %v2650_v55 = vmul.f32 %v9288_v3, %v10802_v4  ;;  %v2680_v1 = vadd.f32 %v10831_v31, %v2664_v36  ;;  %v2948_v4 = vld [vmem:[%s12428_s6] sm:$0xff]  ;;  %v8857_v18 = vpack.c.bf16 %v2959_v48, %v2958_v44  ;;  %v2961_v3 = vld [vmem:[%s12428_s6 + $0x68] sm:$0xff] }
 0xa6a   :  { %v2679_v59 = vadd.f32 %v10831_v31, %v2663_v5  ;;  %v2649_v54 = vmul.f32 %v9290_v21, %v10806_v30  ;;  %v2949_v30 = vld [vmem:[%s12428_s6 + $0x8] sm:$0xff]  ;;  %v2960_v36 = vld [vmem:[%s12428_s6 + $0x60] sm:$0xff]  ;;  %v2962_v21 = vld [vmem:[%s12428_s6 + $0x70] sm:$0xff] }
 0xa6b   :  { %v2666_v32 = vmul.f32 %v10824_v13, %v2650_v55  ;;  %v8837_v60 = vpack.c.bf16 %v2949_v30, %v2948_v4  ;;  %v8861_v5 = vpack.c.bf16 %v2961_v3, %v2960_v36  ;;  %v2963_v55 = vld [vmem:[%s12428_s6 + $0x78] sm:$0xff] }
 0xa6c   :  { %8110 = vmatprep.mubr.msk.f32.mxu1 %vm126_vm0, %v2679_v59  ;;  %v2665_v40 = vmul.f32 %v10824_v13, %v2649_v54  ;;  %v2950_v13 = vld [vmem:[%s12428_s6 + $0x10] sm:$0xff]  ;;  %v8865_v59 = vpack.c.bf16 %v2963_v55, %v2962_v21  ;;  %v12434_v54 = vsub.s32 5, %v9801_v49 }
 0xa6d   :  { %8111 = vmatmul.mubr.msk.f32.gmra.mrb[56].mxu1 %vm126_vm0, %v2680_v1  ;;  %v2682_v43 = vadd.f32 %v10831_v31, %v2666_v32  ;;  %8838 = vmatprep.subr.bf16.mxu1 %v8837_v60 }
 0xa6e   :  { %v2681_v41 = vadd.f32 %v10831_v31, %v2665_v40  ;;  %8840 = vmatpush3.bf16.msra.mxu1 %v8837_v60  ;;  %v2951_v31 = vld [vmem:[%s12428_s6 + $0x18] sm:$0xff]  ;;  %v2690_v1 = vrot.slane %v10634_v42, %v12434_v54 }
 0xa6f   :  { %v8841_v22 = vpack.c.bf16 %v2951_v31, %v2950_v13 }
 0xa70   :  { %8113 = vmatprep.mubr.msk.f32.mxu1 %vm126_vm0, %v2681_v41 }
 0xa71   :  { %8114 = vmatmul.mubr.msk.f32.gmra.mrb[58].mxu1 %vm126_vm0, %v2682_v43  ;;  %8842 = vmatprep.subr.bf16.mxu1 %v8841_v22 }
 0xa72   :  { %8844 = vmatpush3.bf16.msra.mxu1 %v8841_v22 }
 0xa73   :  { %8846 = vmatprep.subr.bf16.mxu1 %v8845_v53 }
 0xa76   :  { %8848 = vmatpush3.bf16.msra.mxu1 %v8845_v53 }
 0xa77   :  { %8850 = vmatprep.subr.bf16.mxu1 %v8849_v20 }
 0xa7a   :  { %8852 = vmatpush3.bf16.msra.mxu1 %v8849_v20 }
 0xa7b   :  { %8854 = vmatprep.subr.bf16.mxu1 %v8853_v34 }
 0xa7e   :  { %8856 = vmatpush3.bf16.msra.mxu1 %v8853_v34 }
 0xa7f   :  { %8858 = vmatprep.subr.bf16.mxu1 %v8857_v18 }
 0xa82   :  { %8860 = vmatpush3.bf16.msra.mxu1 %v8857_v18 }
 0xa83   :  { %8862 = vmatprep.subr.bf16.mxu1 %v8861_v5 }
 0xa86   :  { %8864 = vmatpush3.bf16.msra.mxu1 %v8861_v5 }
 0xa87   :  { %8866 = vmatprep.subr.bf16.mxu1 %v8865_v59 }
 0xa8a   :  { %8868 = vmatpush3.bf16.msra.mxu1 %v8865_v59 }
 0xb30   :  { %v8100_v32 = vpop.f32.mrb[48].mxu1 }
 0xb31   :  { %v10931_v40 = vadd.f32 %v8100_v32, %v2690_v1  ;;  %v2793_v41 = vpop.f32.mrb[49].mxu1 }
 0xb32   :  { %v10933_v43 = vadd.f32 %v2793_v41, %v2690_v1 }
 0xb33   :  { %v6909_v4 = vmul.f32 -1.702, %v10931_v40 }
 0xb34   :  { %v6908_v30 = vmul.f32 -1.702, %v10933_v43  ;;  %v8103_v60 = vpop.f32.mrb[50].mxu1 }
 0xb35   :  { %v2878_v13 = vmul.f32 1.442695, %v6909_v4  ;;  %v10937_v31 = vadd.f32 %v8103_v60, %v2690_v1  ;;  %v2803_v22 = vpop.f32.mrb[51].mxu1 }
 0xb36   :  { %v2876_v25 = vmul.f32 1.442695, %v6908_v30  ;;  %v10939_v26 = vadd.f32 %v2803_v22, %v2690_v1 }
 0xb37   :  { %9291 = vpow2.f32 %v2878_v13  ;;  %v6911_v53 = vmul.f32 -1.702, %v10937_v31 }
 0xb38   :  { %9293 = vpow2.f32 %v2876_v25  ;;  %v6910_v11 = vmul.f32 -1.702, %v10939_v26  ;;  %v8106_v9 = vpop.f32.mrb[52].mxu1 }
 0xb39   :  { %v2882_v20 = vmul.f32 1.442695, %v6911_v53  ;;  %v10943_v37 = vadd.f32 %v8106_v9, %v2690_v1  ;;  %v2813_v51 = vpop.f32.mrb[53].mxu1 }
 0xb3a   :  { %v2880_v34 = vmul.f32 1.442695, %v6910_v11  ;;  %v10945_v44 = vadd.f32 %v2813_v51, %v2690_v1 }
 0xb3b   :  { %9295 = vpow2.f32 %v2882_v20  ;;  %v6913_v48 = vmul.f32 -1.702, %v10943_v37 }
 0xb3c   :  { %9297 = vpow2.f32 %v2880_v34  ;;  %v6912_v18 = vmul.f32 -1.702, %v10945_v44  ;;  %v8109_v36 = vpop.f32.mrb[54].mxu1 }
 0xb3d   :  { %v2886_v3 = vmul.f32 1.442695, %v6913_v48  ;;  %v10949_v5 = vadd.f32 %v8109_v36, %v2690_v1  ;;  %v2823_v21 = vpop.f32.mrb[55].mxu1 }
 0xb3e   :  { %v2884_v55 = vmul.f32 1.442695, %v6912_v18  ;;  %v10951_v59 = vadd.f32 %v2823_v21, %v2690_v1 }
 0xb3f   :  { %9299 = vpow2.f32 %v2886_v3  ;;  %v6915_v32 = vmul.f32 -1.702, %v10949_v5 }
 0xb40   :  { %9301 = vpow2.f32 %v2884_v55  ;;  %v6914_v41 = vmul.f32 -1.702, %v10951_v59  ;;  %v8112_v4 = vpop.f32.mrb[56].mxu1 }
 0xb41   :  { %v9292_v30 = vpop.eup %9291  ;;  %v2890_v60 = vmul.f32 1.442695, %v6915_v32  ;;  %v10955_v13 = vadd.f32 %v8112_v4, %v2690_v1  ;;  %v2833_v22 = vpop.f32.mrb[57].mxu1 }
 0xb42   :  { %v9294_v25 = vpop.eup %9293  ;;  %v2901_v53 = vadd.f32 1.0, %v9292_v30  ;;  %v2888_v11 = vmul.f32 1.442695, %v6914_v41  ;;  %v10957_v9 = vadd.f32 %v2833_v22, %v2690_v1 }
 0xb43   :  { %v2900_v20 = vadd.f32 1.0, %v9294_v25  ;;  %9303 = vpow2.f32 %v2890_v60  ;;  %v6917_v51 = vmul.f32 -1.702, %v10955_v13 }
 0xb44   :  { %9305 = vrcp.f32 %v2901_v53  ;;  %v6916_v34 = vmul.f32 -1.702, %v10957_v9  ;;  %v8115_v48 = vpop.f32.mrb[58].mxu1 }
 0xb45   :  { %v9296_v18 = vpop.eup %9295  ;;  %9307 = vrcp.f32 %v2900_v20  ;;  %v2894_v36 = vmul.f32 1.442695, %v6917_v51  ;;  %v10961_v3 = vadd.f32 %v8115_v48, %v2690_v1  ;;  %v2843_v21 = vpop.f32.mrb[59].mxu1 }
 0xb46   :  { %v9298_v55 = vpop.eup %9297  ;;  %v2903_v32 = vadd.f32 1.0, %v9296_v18  ;;  %9309 = vpow2.f32 %v2888_v11  ;;  %v2892_v41 = vmul.f32 1.442695, %v6916_v34  ;;  %v10963_v4 = vadd.f32 %v2843_v21, %v2690_v1 }
 0xb47   :  { %v2902_v30 = vadd.f32 1.0, %v9298_v55  ;;  %9311 = vpow2.f32 %v2894_v36  ;;  %v6919_v60 = vmul.f32 -1.702, %v10961_v3 }
 0xb48   :  { %9313 = vrcp.f32 %v2903_v32  ;;  %v6918_v22 = vmul.f32 -1.702, %v10963_v4 }
 0xb49   :  { %v9300_v25 = vpop.eup %9299  ;;  %9315 = vrcp.f32 %v2902_v30  ;;  %v2898_v53 = vmul.f32 1.442695, %v6919_v60 }
 0xb4a   :  { %v9302_v20 = vpop.eup %9301  ;;  %v2905_v51 = vadd.f32 1.0, %v9300_v25  ;;  %9317 = vpow2.f32 %v2892_v41  ;;  %v2896_v48 = vmul.f32 1.442695, %v6918_v22 }
 0xb4b   :  { %v2904_v54 = vadd.f32 1.0, %v9302_v20  ;;  %9319 = vpow2.f32 %v2898_v53 }
 0xb4c   :  { %9321 = vrcp.f32 %v2905_v51 }
 0xb4d   :  { %v9304_v11 = vpop.eup %9303  ;;  %9323 = vrcp.f32 %v2904_v54 }
 0xb4e   :  { %v9306_v1 = vpop.eup %9305  ;;  %v2907_v34 = vadd.f32 1.0, %v9304_v11  ;;  %9325 = vpow2.f32 %v2896_v48 }
 0xb4f   :  { %v9308_v18 = vpop.eup %9307  ;;  %v2937_v32 = vmul.f32 %v9306_v1, %v10931_v40 }
 0xb50   :  { %v9310_v36 = vpop.eup %9309  ;;  %v2936_v21 = vmul.f32 %v9308_v18, %v10933_v43  ;;  %9327 = vrcp.f32 %v2907_v34 }
 0xb51   :  { %v9312_v55 = vpop.eup %9311  ;;  %v2906_v30 = vadd.f32 1.0, %v9310_v36 }
 0xb52   :  { %v9314_v60 = vpop.eup %9313  ;;  %v2909_v41 = vadd.f32 1.0, %v9312_v55  ;;  %8148 = vmatprep.mubr.f32.mxu1 %v2936_v21 }
 0xb53   :  { %v9316_v22 = vpop.eup %9315  ;;  %9329 = vrcp.f32 %v2906_v30  ;;  %8149 = vmatmul.mubr.f32.vlgmr.msra.gmra.mrb[60].mxu1 %v2937_v32  ;;  %v2939_v20 = vmul.f32 %v9314_v60, %v10937_v31 }
 0xb54   :  { %v9318_v25 = vpop.eup %9317  ;;  %v2938_v54 = vmul.f32 %v9316_v22, %v10939_v26  ;;  %9331 = vrcp.f32 %v2909_v41 }
 0xb55   :  { %v9320_v53 = vpop.eup %9319  ;;  %v2908_v51 = vadd.f32 1.0, %v9318_v25 }
 0xb56   :  { %v9322_v48 = vpop.eup %9321  ;;  %v2911_v43 = vadd.f32 1.0, %v9320_v53  ;;  %8151 = vmatprep.mubr.f32.mxu1 %v2938_v54 }
 0xb57   :  { %v9324_v40 = vpop.eup %9323  ;;  %9333 = vrcp.f32 %v2908_v51  ;;  %8152 = vmatmul.mubr.f32.gmra.mrb[62].mxu1 %v2939_v20  ;;  %v2941_v34 = vmul.f32 %v9322_v48, %v10943_v37 }
 0xb58   :  { %v9326_v11 = vpop.eup %9325  ;;  %v2940_v1 = vmul.f32 %v9324_v40, %v10945_v44  ;;  %9335 = vrcp.f32 %v2911_v43 }
 0xb59   :  { %v2910_v18 = vadd.f32 1.0, %v9326_v11 }
 0xb5a   :  { %8154 = vmatprep.mubr.f32.mxu1 %v2940_v1  ;;  %v9328_v26 = vpop.eup %9327 }
 0xb5b   :  { %9337 = vrcp.f32 %v2910_v18  ;;  %8155 = vmatmul.mubr.f32.gmra.mrb[64].mxu1 %v2941_v34  ;;  %v2943_v21 = vmul.f32 %v9328_v26, %v10949_v5  ;;  %v12435_v5 = vsub.s32 6, %v9801_v49 }
 0xb5d   :  { %v9330_v31 = vpop.eup %9329 }
 0xb5e   :  { %v2942_v36 = vmul.f32 %v9330_v31, %v10951_v59  ;;  %v9332_v55 = vpop.eup %9331  ;;  %v3104_v59 = vrot.slane %v10634_v42, %v12435_v5 }
 0xb5f   :  { %v2945_v44 = vmul.f32 %v9332_v55, %v10955_v13 }
 0xb60   :  { %8157 = vmatprep.mubr.f32.mxu1 %v2942_v36 }
 0xb61   :  { %v9334_v32 = vpop.eup %9333  ;;  %8158 = vmatmul.mubr.f32.gmra.mrb[66].mxu1 %v2943_v21 }
 0xb62   :  { %v2944_v30 = vmul.f32 %v9334_v32, %v10957_v9  ;;  %v9336_v37 = vpop.eup %9335 }
 0xb63   :  { %v2947_v22 = vmul.f32 %v9336_v37, %v10961_v3 }
 0xb64   :  { %8160 = vmatprep.mubr.f32.mxu1 %v2944_v30 }
 0xb65   :  { %v9338_v60 = vpop.eup %9337  ;;  %8161 = vmatmul.mubr.f32.gmra.mrb[68].mxu1 %v2945_v44 }
 0xb66   :  { %v2946_v41 = vmul.f32 %v9338_v60, %v10963_v4 }
 0xb68   :  { %8163 = vmatprep.mubr.f32.mxu1 %v2946_v41 }
 0xb69   :  { %8164 = vmatmul.mubr.f32.gmra.mrb[70].mxu1 %v2947_v22 }
 0xc26   :  { %v8150_v25 = vpop.f32.mrb[60].mxu1 }
 0xc27   :  { %v3090_v9 = vadd.f32 %v8150_v25, %v10648_v12  ;;  %v3030_v13 = vpop.f32.mrb[61].mxu1 }
 0xc28   :  { %v3089_v54 = vadd.f32 %v3030_v13, %v10651_v17 }
 0xc29   :  { %v10985_v53 = vadd.f32 %v3104_v59, %v3090_v9 }
 0xc2a   :  { %v10987_v20 = vadd.f32 %v3104_v59, %v3089_v54  ;;  %v8153_v4 = vpop.f32.mrb[62].mxu1 }
 0xc2b   :  { %v3092_v3 = vadd.f32 %v8153_v4, %v10664_v35  ;;  %v3040_v51 = vpop.f32.mrb[63].mxu1  ;;  %v3122_v48 = vsel %vm126_vm0, %v10985_v53, 0.0 }
 0xc2c   :  { %v3091_v43 = vadd.f32 %v3040_v51, %v10667_v61  ;;  %3123 = vadd.xlane.f32.xlu1 %v3122_v48  ;;  %v3119_v42 = vsel %vm126_vm0, %v10987_v20, 0.0 }
 0xc2d   :  { %v10995_v12 = vadd.f32 %v3104_v59, %v3092_v3  ;;  %3120 = vadd.xlane.f32.xlu0 %v3119_v42 }
 0xc2e   :  { %v10997_v17 = vadd.f32 %v3104_v59, %v3091_v43  ;;  %v8156_v40 = vpop.f32.mrb[64].mxu1  ;;  %v6939_v43 = vld [vmem:[%s12423_s2 + $0xe8] sm:$0xff] }
 0xc2f   :  { %v3094_v11 = vadd.f32 %v8156_v40, %v10680_v56  ;;  %v3050_v1 = vpop.f32.mrb[65].mxu1  ;;  %v3128_v35 = vsel %vm126_vm0, %v10995_v12, 0.0 }
 0xc30   :  { %v3093_v34 = vadd.f32 %v3050_v1, %v10683_v23  ;;  %3129 = vadd.xlane.f32.xlu1 %v3128_v35  ;;  %v3125_v61 = vsel %vm126_vm0, %v10997_v17, 0.0 }
 0xc31   :  { %v11005_v18 = vadd.f32 %v3104_v59, %v3094_v11  ;;  %3126 = vadd.xlane.f32.xlu0 %v3125_v61 }
 0xc32   :  { %v11007_v26 = vadd.f32 %v3104_v59, %v3093_v34 }
 0xc33   :  { %12459 = vst [vmem:[#allocation4_spill] sm:$0xff] %v11005_v18  ;;  %v3134_v31 = vsel %vm126_vm0, %v11005_v18, 0.0 }
 0xc34   :  { %12460 = vst [vmem:[#allocation5_spill] sm:$0xff] %v11007_v26  ;;  %v8159_v36 = vpop.f32.mrb[66].mxu1  ;;  %3135 = vadd.xlane.f32.xlu1 %v3134_v31  ;;  %v3131_v56 = vsel %vm126_vm0, %v11007_v26, 0.0 }
 0xc35   :  { %v3096_v21 = vadd.f32 %v8159_v36, %v10696_v24  ;;  %v3060_v23 = vpop.f32.mrb[67].mxu1  ;;  %3132 = vadd.xlane.f32.xlu0 %v3131_v56 }
 0xc36   :  { %v3095_v55 = vadd.f32 %v3060_v23, %v10699_v2 }
 0xc37   :  { %v11015_v32 = vadd.f32 %v3104_v59, %v3096_v21 }
 0xc38   :  { %v11017_v30 = vadd.f32 %v3104_v59, %v3095_v55  ;;  %v8162_v44 = vpop.f32.mrb[68].mxu1 }
 0xc39   :  { %12461 = vst [vmem:[#allocation6_spill] sm:$0xff] %v11015_v32  ;;  %v3098_v37 = vadd.f32 %v8162_v44, %v10712_v8  ;;  %v3070_v60 = vpop.f32.mrb[69].mxu1  ;;  %v3140_v41 = vsel %vm126_vm0, %v11015_v32, 0.0 }
 0xc3a   :  { %12462 = vst [vmem:[#allocation7_spill] sm:$0xff] %v11017_v30  ;;  %v3097_v22 = vadd.f32 %v3070_v60, %v10715_v10  ;;  %3141 = vadd.xlane.f32.xlu1 %v3140_v41  ;;  %v3137_v24 = vsel %vm126_vm0, %v11017_v30, 0.0 }
 0xc3b   :  { %v11025_v25 = vadd.f32 %v3104_v59, %v3098_v37  ;;  %3138 = vadd.xlane.f32.xlu0 %v3137_v24 }
 0xc3c   :  { %v11027_v2 = vadd.f32 %v3104_v59, %v3097_v22  ;;  %v8165_v9 = vpop.f32.mrb[70].mxu1 }
 0xc3d   :  { %12463 = vst [vmem:[#allocation8_spill] sm:$0xff] %v11025_v25  ;;  %v3100_v13 = vadd.f32 %v8165_v9, %v10728_v47  ;;  %v3080_v54 = vpop.f32.mrb[71].mxu1  ;;  %v3146_v8 = vsel %vm126_vm0, %v11025_v25, 0.0 }
 0xc3e   :  { %12464 = vst [vmem:[#allocation9_spill] sm:$0xff] %v11027_v2  ;;  %v3099_v4 = vadd.f32 %v3080_v54, %v10731_v46  ;;  %3147 = vadd.xlane.f32.xlu1 %v3146_v8  ;;  %v3143_v10 = vsel %vm126_vm0, %v11027_v2, 0.0  ;;  %v6938_v46 = vld [vmem:[%s12423_s2 + $0xe0] sm:$0xff] }
 0xc3f   :  { %v11035_v3 = vadd.f32 %v3104_v59, %v3100_v13  ;;  %3144 = vadd.xlane.f32.xlu0 %v3143_v10  ;;  %v8877_v42 = vpack.c.bf16 %v6939_v43, %v6938_v46 }
 0xc40   :  { %v11037_v51 = vadd.f32 %v3104_v59, %v3099_v4 }
 0xc41   :  { %12465 = vst [vmem:[#allocation10_spill] sm:$0xff] %v11035_v3  ;;  %v3152_v48 = vsel %vm126_vm0, %v11035_v3, 0.0  ;;  %8878 = vmatprep.subr.bf16.mxu1 %v8877_v42 }
 0xc42   :  { %12466 = vst [vmem:[#allocation11_spill] sm:$0xff] %v11037_v51  ;;  %3153 = vadd.xlane.f32.xlu1 %v3152_v48  ;;  %v3149_v47 = vsel %vm126_vm0, %v11037_v51, 0.0  ;;  %8880 = vmatpush3.bf16.msra.mxu1 %v8877_v42 }
 0xc43   :  { %3150 = vadd.xlane.f32.xlu0 %v3149_v47 }
 0xcb9   :  { %v3124_v59 = vpop.xlane.xlu1 %3123 }
 0xcba   :  { %v3156_v40 = vmul.f32 0.03125, %v3124_v59  ;;  %v3121_v11 = vpop.xlane.xlu0 %3120 }
 0xcbb   :  { %v3155_v1 = vmul.f32 0.03125, %v3121_v11 }
 0xcbc   :  { %v11050_v35 = vsub.f32 %v10985_v53, %v3156_v40 }
 0xcbd   :  { %v11053_v34 = vsub.f32 %v10987_v20, %v3155_v1  ;;  %v3130_v61 = vpop.xlane.xlu1 %3129 }
 0xcbe   :  { %v3158_v31 = vmul.f32 0.03125, %v3130_v61  ;;  %v3127_v36 = vpop.xlane.xlu0 %3126  ;;  %v3180_v56 = vmul.f32 %v11050_v35, %v11050_v35 }
 0xcbf   :  { %v3157_v21 = vmul.f32 0.03125, %v3127_v36  ;;  %v3179_v23 = vmul.f32 %v11053_v34, %v11053_v34 }
 0xcc0   :  { %v11060_v55 = vsub.f32 %v10995_v12, %v3158_v31  ;;  %v3194_v44 = vsel %vm126_vm0, %v3180_v56, 0.0 }
 0xcc1   :  { %v11064_v37 = vsub.f32 %v10997_v17, %v3157_v21  ;;  %v3136_v60 = vpop.xlane.xlu1 %3135  ;;  %3195 = vadd.xlane.f32.xlu1 %v3194_v44  ;;  %v3191_v41 = vsel %vm126_vm0, %v3179_v23, 0.0 }
 0xcc2   :  { %v3160_v22 = vmul.f32 0.03125, %v3136_v60  ;;  %v3133_v24 = vpop.xlane.xlu0 %3132  ;;  %3192 = vadd.xlane.f32.xlu0 %v3191_v41  ;;  %v3182_v9 = vmul.f32 %v11060_v55, %v11060_v55 }
 0xcc3   :  { %v3159_v13 = vmul.f32 0.03125, %v3133_v24  ;;  %v3181_v54 = vmul.f32 %v11064_v37, %v11064_v37 }
 0xcc4   :  { %v11072_v8 = vsub.f32 %v11005_v18, %v3160_v22  ;;  %v3200_v4 = vsel %vm126_vm0, %v3182_v9, 0.0 }
 0xcc5   :  { %v11076_v10 = vsub.f32 %v11007_v26, %v3159_v13  ;;  %3201 = vadd.xlane.f32.xlu1 %v3200_v4  ;;  %v3197_v48 = vsel %vm126_vm0, %v3181_v54, 0.0 }
 0xcc6   :  { %3198 = vadd.xlane.f32.xlu0 %v3197_v48  ;;  %v3184_v47 = vmul.f32 %v11072_v8, %v11072_v8 }
 0xcc7   :  { %v3142_v46 = vpop.xlane.xlu1 %3141  ;;  %v3183_v43 = vmul.f32 %v11076_v10, %v11076_v10 }
 0xcc8   :  { %v3162_v42 = vmul.f32 0.03125, %v3142_v46  ;;  %v3139_v59 = vpop.xlane.xlu0 %3138  ;;  %v3206_v40 = vsel %vm126_vm0, %v3184_v47, 0.0 }
 0xcc9   :  { %v3161_v11 = vmul.f32 0.03125, %v3139_v59  ;;  %3207 = vadd.xlane.f32.xlu1 %v3206_v40  ;;  %v3203_v1 = vsel %vm126_vm0, %v3183_v43, 0.0 }
 0xcca   :  { %v11086_v61 = vsub.f32 %v11015_v32, %v3162_v42  ;;  %3204 = vadd.xlane.f32.xlu0 %v3203_v1 }
 0xccb   :  { %v11089_v31 = vsub.f32 %v11017_v30, %v3161_v11  ;;  %v3148_v36 = vpop.xlane.xlu1 %3147 }
 0xccc   :  { %v3164_v56 = vmul.f32 0.03125, %v3148_v36  ;;  %v3145_v21 = vpop.xlane.xlu0 %3144  ;;  %v3186_v23 = vmul.f32 %v11086_v61, %v11086_v61 }
 0xccd   :  { %v3163_v44 = vmul.f32 0.03125, %v3145_v21  ;;  %v3185_v60 = vmul.f32 %v11089_v31, %v11089_v31  ;;  %v6922_v21 = vld [vmem:[%s12423_s2 + $0xc0] sm:$0xff] }
 0xcce   :  { %v11096_v41 = vsub.f32 %v11025_v25, %v3164_v56  ;;  %v3212_v22 = vsel %vm126_vm0, %v3186_v23, 0.0  ;;  %v6923_v23 = vld [vmem:[%s12423_s2 + $0xc8] sm:$0xff] }
 0xccf   :  { %v11100_v24 = vsub.f32 %v11027_v2, %v3163_v44  ;;  %3213 = vadd.xlane.f32.xlu1 %v3212_v22  ;;  %v3154_v9 = vpop.xlane.xlu1 %3153  ;;  %v3209_v13 = vsel %vm126_vm0, %v3185_v60, 0.0  ;;  %v8869_v44 = vpack.c.bf16 %v6923_v23, %v6922_v21  ;;  %v6940_v60 = vld [vmem:[%s12423_s2 + $0xf0] sm:$0xff]  ;;  %v6941_v22 = vld [vmem:[%s12423_s2 + $0xf8] sm:$0xff] }
 0xcd0   :  { %v3166_v54 = vmul.f32 0.03125, %v3154_v9  ;;  %3210 = vadd.xlane.f32.xlu0 %v3209_v13  ;;  %v3151_v4 = vpop.xlane.xlu0 %3150  ;;  %v3188_v48 = vmul.f32 %v11096_v41, %v11096_v41  ;;  %v6924_v9 = vld [vmem:[%s12423_s2 + $0xd0] sm:$0xff]  ;;  %v8881_v13 = vpack.c.bf16 %v6941_v22, %v6940_v60 }
 0xcd1   :  { %v3165_v47 = vmul.f32 0.03125, %v3151_v4  ;;  %v3187_v46 = vmul.f32 %v11100_v24, %v11100_v24  ;;  %8870 = vmatprep.subr.bf16.mxu0 %v8869_v44 }
 0xcd2   :  { %v11108_v43 = vsub.f32 %v11035_v3, %v3166_v54  ;;  %v3218_v42 = vsel %vm126_vm0, %v3188_v48, 0.0  ;;  %8872 = vmatpush3.bf16.msra.mxu0 %v8869_v44  ;;  %v6925_v54 = vld [vmem:[%s12423_s2 + $0xd8] sm:$0xff]  ;;  %8882 = vmatprep.subr.bf16.mxu1 %v8881_v13  ;;  %v6954_v48 = vld [vmem:[%s12423_s2 + $0x100] sm:$0xff] }
 0xcd3   :  { %v11112_v59 = vsub.f32 %v11037_v51, %v3165_v47  ;;  %3219 = vadd.xlane.f32.xlu1 %v3218_v42  ;;  %v3215_v40 = vsel %vm126_vm0, %v3187_v46, 0.0  ;;  %v8873_v4 = vpack.c.bf16 %v6925_v54, %v6924_v9  ;;  %8884 = vmatpush3.bf16.msra.mxu1 %v8881_v13  ;;  %v6955_v47 = vld [vmem:[%s12423_s2 + $0x108] sm:$0xff] }
 0xcd4   :  { %3216 = vadd.xlane.f32.xlu0 %v3215_v40  ;;  %v3190_v11 = vmul.f32 %v11108_v43, %v11108_v43  ;;  %v11145_v46 = vpack.c.bf16 %v6955_v47, %v6954_v48  ;;  %v6920_v47 = vld [vmem:[%s12424_s7 + $0x8] sm:$0xff] }
 0xcd5   :  { %v3189_v1 = vmul.f32 %v11112_v59, %v11112_v59  ;;  %8874 = vmatprep.subr.bf16.mxu0 %v8873_v4 }
 0xcd6   :  { %v3224_v36 = vsel %vm126_vm0, %v3190_v11, 0.0  ;;  %8876 = vmatpush3.bf16.msra.mxu0 %v8873_v4 }
 0xcd7   :  { %3225 = vadd.xlane.f32.xlu1 %v3224_v36  ;;  %v3221_v56 = vsel %vm126_vm0, %v3189_v1, 0.0  ;;  %8886 = vmatprep.subr.bf16.mxu0 %v11145_v46 }
 0xcd8   :  { %3222 = vadd.xlane.f32.xlu0 %v3221_v56 }
 0xd4e   :  { %v3196_v42 = vpop.xlane.xlu1 %3195 }
 0xd4f   :  { %v3228_v40 = vmul.f32 0.03125, %v3196_v42  ;;  %v3193_v11 = vpop.xlane.xlu0 %3192 }
 0xd50   :  { %v3227_v1 = vmul.f32 0.03125, %v3193_v11  ;;  %v11152_v11 = vrot.slane %v6920_v47, %v9804_v58 }
 0xd51   :  { %v3240_v36 = vadd.f32 1e-05, %v3228_v40 }
 0xd52   :  { %v3239_v56 = vadd.f32 1e-05, %v3227_v1  ;;  %v3202_v21 = vpop.xlane.xlu1 %3201 }
 0xd53   :  { %9339 = vrsqrt.f32 %v3240_v36  ;;  %v3230_v23 = vmul.f32 0.03125, %v3202_v21  ;;  %v3199_v44 = vpop.xlane.xlu0 %3198 }
 0xd54   :  { %9341 = vrsqrt.f32 %v3239_v56  ;;  %v3229_v60 = vmul.f32 0.03125, %v3199_v44 }
 0xd55   :  { %v3242_v22 = vadd.f32 1e-05, %v3230_v23 }
 0xd56   :  { %v3241_v9 = vadd.f32 1e-05, %v3229_v60  ;;  %v3208_v13 = vpop.xlane.xlu1 %3207 }
 0xd57   :  { %9343 = vrsqrt.f32 %v3242_v22  ;;  %v3232_v54 = vmul.f32 0.03125, %v3208_v13  ;;  %v3205_v4 = vpop.xlane.xlu0 %3204  ;;  %v11157_v13 = vrot.slane %v6920_v47, %v9810_v0 }
 0xd58   :  { %9345 = vrsqrt.f32 %v3241_v9  ;;  %v3231_v48 = vmul.f32 0.03125, %v3205_v4 }
 0xd59   :  { %v3244_v42 = vadd.f32 1e-05, %v3232_v54 }
 0xd5a   :  { %v3243_v40 = vadd.f32 1e-05, %v3231_v48 }
 0xd5b   :  { %9347 = vrsqrt.f32 %v3244_v42 }
 0xd5c   :  { %9349 = vrsqrt.f32 %v3243_v40  ;;  %v3214_v1 = vpop.xlane.xlu1 %3213 }
 0xd5d   :  { %v9340_v36 = vpop.eup %9339  ;;  %v3234_v56 = vmul.f32 0.03125, %v3214_v1  ;;  %v3211_v21 = vpop.xlane.xlu0 %3210 }
 0xd5e   :  { %v9342_v23 = vpop.eup %9341  ;;  %v3264_v44 = vmul.f32 %v9340_v36, %v11050_v35  ;;  %v3233_v60 = vmul.f32 0.03125, %v3211_v21  ;;  %v6956_v35 = vld [vmem:[%s12423_s2 + $0x110] sm:$0xff] }
 0xd5f   :  { %v3263_v22 = vmul.f32 %v9342_v23, %v11053_v34  ;;  %v3246_v9 = vadd.f32 1e-05, %v3234_v56  ;;  %v6957_v34 = vld [vmem:[%s12423_s2 + $0x118] sm:$0xff] }
 0xd60   :  { %v3280_v54 = vmul.f32 %v11152_v11, %v3264_v44  ;;  %v3245_v4 = vadd.f32 1e-05, %v3233_v60  ;;  %v3220_v48 = vpop.xlane.xlu1 %3219  ;;  %v8889_v62 = vpack.c.bf16 %v6957_v34, %v6956_v35 }
 0xd61   :  { %v9344_v42 = vpop.eup %9343  ;;  %v3279_v40 = vmul.f32 %v11152_v11, %v3263_v22  ;;  %9351 = vrsqrt.f32 %v3246_v9  ;;  %v3236_v1 = vmul.f32 0.03125, %v3220_v48  ;;  %v3217_v5 = vpop.xlane.xlu0 %3216 }
 0xd62   :  { %v9346_v47 = vpop.eup %9345  ;;  %v3266_v36 = vmul.f32 %v9344_v42, %v11060_v55  ;;  %9353 = vrsqrt.f32 %v3245_v4  ;;  %v3235_v56 = vmul.f32 0.03125, %v3217_v5  ;;  %v11174_v48 = vadd.f32 %v11157_v13, %v3280_v54 }
 0xd63   :  { %v3265_v21 = vmul.f32 %v9346_v47, %v11064_v37  ;;  %v3248_v23 = vadd.f32 1e-05, %v3236_v1  ;;  %v11170_v44 = vadd.f32 %v11157_v13, %v3279_v40 }
 0xd64   :  { %v3282_v60 = vmul.f32 %v11152_v11, %v3266_v36  ;;  %v3247_v22 = vadd.f32 1e-05, %v3235_v56  ;;  %v3226_v9 = vpop.xlane.xlu1 %3225 }
 0xd65   :  { %v9348_v28 = vpop.eup %9347  ;;  %v3281_v39 = vmul.f32 %v11152_v11, %v3265_v21  ;;  %9355 = vrsqrt.f32 %v3248_v23  ;;  %v3238_v55 = vmul.f32 0.03125, %v3226_v9  ;;  %v3223_v5 = vpop.xlane.xlu0 %3222  ;;  %8174 = vmatprep.mubr.msk.f32.mxu0 %vm126_vm0, %v11170_v44  ;;  %8200 = vmatprep.mubr.msk.f32.mxu1 %vm126_vm0, %v11170_v44 }
 0xd66   :  { %v9350_v37 = vpop.eup %9349  ;;  %v3268_v4 = vmul.f32 %v9348_v28, %v11072_v8  ;;  %9357 = vrsqrt.f32 %v3247_v22  ;;  %v3237_v42 = vmul.f32 0.03125, %v3223_v5  ;;  %8175 = vmatmul.mubr.msk.f32.vlgmr.msra.gmra.mrb[84].mxu0 %vm126_vm0, %v11174_v48  ;;  %8201 = vmatmul.mubr.msk.f32.vlgmr.msra.gmra.mrb[72].mxu1 %vm126_vm0, %v11174_v48  ;;  %v11193_v28 = vadd.f32 %v11157_v13, %v3282_v60 }
 0xd67   :  { %v3267_v54 = vmul.f32 %v9350_v37, %v11076_v10  ;;  %v3250_v40 = vadd.f32 1e-05, %v3238_v55  ;;  %v11188_v1 = vadd.f32 %v11157_v13, %v3281_v39  ;;  %8888 = vmatpush3.bf16.msra.mxu0 %v11145_v46 }
 0xd68   :  { %v3284_v35 = vmul.f32 %v11152_v11, %v3268_v4  ;;  %v3249_v34 = vadd.f32 1e-05, %v3237_v42  ;;  %8890 = vmatprep.subr.bf16.mxu0 %v8889_v62 }
 0xd69   :  { %v3283_v8 = vmul.f32 %v11152_v11, %v3267_v54  ;;  %9359 = vrsqrt.f32 %v3250_v40  ;;  %8177 = vmatprep.mubr.msk.f32.mxu0 %vm126_vm0, %v11188_v1  ;;  %8203 = vmatprep.mubr.msk.f32.mxu1 %vm126_vm0, %v11188_v1 }
 0xd6a   :  { %9361 = vrsqrt.f32 %v3249_v34  ;;  %8178 = vmatmul.mubr.msk.f32.gmra.mrb[86].mxu0 %vm126_vm0, %v11193_v28  ;;  %8204 = vmatmul.mubr.msk.f32.gmra.mrb[74].mxu1 %vm126_vm0, %v11193_v28  ;;  %v11209_v36 = vadd.f32 %v11157_v13, %v3284_v35 }
 0xd6b   :  { %v9352_v39 = vpop.eup %9351  ;;  %v11205_v10 = vadd.f32 %v11157_v13, %v3283_v8  ;;  %8892 = vmatpush3.bf16.msra.mxu0 %v8889_v62 }
 0xd6c   :  { %v9354_v46 = vpop.eup %9353  ;;  %v3270_v47 = vmul.f32 %v9352_v39, %v11086_v61 }
 0xd6d   :  { %v3269_v56 = vmul.f32 %v9354_v46, %v11089_v31  ;;  %8180 = vmatprep.mubr.msk.f32.mxu0 %vm126_vm0, %v11205_v10  ;;  %8206 = vmatprep.mubr.msk.f32.mxu1 %vm126_vm0, %v11205_v10 }
 0xd6e   :  { %v3286_v21 = vmul.f32 %v11152_v11, %v3270_v47  ;;  %8181 = vmatmul.mubr.msk.f32.gmra.mrb[88].mxu0 %vm126_vm0, %v11209_v36  ;;  %8207 = vmatmul.mubr.msk.f32.gmra.mrb[76].mxu1 %vm126_vm0, %v11209_v36 }
 0xd6f   :  { %v9356_v62 = vpop.eup %9355  ;;  %v3285_v61 = vmul.f32 %v11152_v11, %v3269_v56 }
 0xd70   :  { %v9358_v23 = vpop.eup %9357  ;;  %v3272_v31 = vmul.f32 %v9356_v62, %v11096_v41  ;;  %v11229_v55 = vadd.f32 %v11157_v13, %v3286_v21 }
 0xd71   :  { %v3271_v60 = vmul.f32 %v9358_v23, %v11100_v24  ;;  %v11225_v22 = vadd.f32 %v11157_v13, %v3285_v61 }
 0xd72   :  { %v3288_v9 = vmul.f32 %v11152_v11, %v3272_v31 }
 0xd73   :  { %v9360_v5 = vpop.eup %9359  ;;  %v3287_v37 = vmul.f32 %v11152_v11, %v3271_v60  ;;  %8183 = vmatprep.mubr.msk.f32.mxu0 %vm126_vm0, %v11225_v22  ;;  %8209 = vmatprep.mubr.msk.f32.mxu1 %vm126_vm0, %v11225_v22 }
 0xd74   :  { %v9362_v41 = vpop.eup %9361  ;;  %v3274_v24 = vmul.f32 %v9360_v5, %v11108_v43  ;;  %8184 = vmatmul.mubr.msk.f32.gmra.mrb[90].mxu0 %vm126_vm0, %v11229_v55  ;;  %8210 = vmatmul.mubr.msk.f32.gmra.mrb[78].mxu1 %vm126_vm0, %v11229_v55  ;;  %v11247_v40 = vadd.f32 %v11157_v13, %v3288_v9 }
 0xd75   :  { %v3273_v4 = vmul.f32 %v9362_v41, %v11112_v59  ;;  %v11243_v42 = vadd.f32 %v11157_v13, %v3287_v37 }
 0xd76   :  { %v3290_v54 = vmul.f32 %v11152_v11, %v3274_v24 }
 0xd77   :  { %v3289_v35 = vmul.f32 %v11152_v11, %v3273_v4  ;;  %8186 = vmatprep.mubr.msk.f32.mxu0 %vm126_vm0, %v11243_v42  ;;  %8212 = vmatprep.mubr.msk.f32.mxu1 %vm126_vm0, %v11243_v42  ;;  %v6921_v11 = vld [vmem:[%s12425_s3 + $0x8] sm:$0x7] }
 0xd78   :  { %8187 = vmatmul.mubr.msk.f32.gmra.mrb[92].mxu0 %vm126_vm0, %v11247_v40  ;;  %8213 = vmatmul.mubr.msk.f32.gmra.mrb[80].mxu1 %vm126_vm0, %v11247_v40  ;;  %v11262_v59 = vadd.f32 %v11157_v13, %v3290_v54  ;;  %v11301_v34 = vrot.slane %v6921_v11, %v9804_v58 }
 0xd79   :  { %v11259_v43 = vadd.f32 %v11157_v13, %v3289_v35  ;;  %v3487_v13 = vrot.slane %v6921_v11, %v9810_v0 }
 0xd7b   :  { %8189 = vmatprep.mubr.msk.f32.mxu0 %vm126_vm0, %v11259_v43  ;;  %8215 = vmatprep.mubr.msk.f32.mxu1 %vm126_vm0, %v11259_v43 }
 0xd7c   :  { %8190 = vmatmul.mubr.msk.f32.gmra.mrb[94].mxu0 %vm126_vm0, %v11262_v59  ;;  %8216 = vmatmul.mubr.msk.f32.gmra.mrb[82].mxu1 %vm126_vm0, %v11262_v59 }
 0xd7d   :  { %8226 = vmatprep.mubr.msk.f32.mxu0 %vm126_vm0, %v11170_v44 }
 0xd80   :  { %8227 = vmatmul.mubr.msk.f32.vlgmr.msra.gmra.mrb[96].mxu0 %vm126_vm0, %v11174_v48 }
 0xd81   :  { %8229 = vmatprep.mubr.msk.f32.mxu0 %vm126_vm0, %v11188_v1 }
 0xd84   :  { %8230 = vmatmul.mubr.msk.f32.gmra.mrb[98].mxu0 %vm126_vm0, %v11193_v28 }
 0xd85   :  { %8232 = vmatprep.mubr.msk.f32.mxu0 %vm126_vm0, %v11205_v10 }
 0xd88   :  { %8233 = vmatmul.mubr.msk.f32.gmra.mrb[100].mxu0 %vm126_vm0, %v11209_v36 }
 0xd89   :  { %8235 = vmatprep.mubr.msk.f32.mxu0 %vm126_vm0, %v11225_v22 }
 0xd8c   :  { %8236 = vmatmul.mubr.msk.f32.gmra.mrb[102].mxu0 %vm126_vm0, %v11229_v55 }
 0xd8d   :  { %8238 = vmatprep.mubr.msk.f32.mxu0 %vm126_vm0, %v11243_v42 }
 0xd90   :  { %8239 = vmatmul.mubr.msk.f32.gmra.mrb[104].mxu0 %vm126_vm0, %v11247_v40 }
 0xd91   :  { %8241 = vmatprep.mubr.msk.f32.mxu0 %vm126_vm0, %v11259_v43 }
 0xd94   :  { %8242 = vmatmul.mubr.msk.f32.gmra.mrb[106].mxu0 %vm126_vm0, %v11262_v59 }
 0xe39   :  { %v11303_v8 = vpop.f32.mrb[84].mxu0  ;;  %v8202_v39 = vpop.f32.mrb[72].mxu1 }
 0xe3a   :  { %v3560_v46 = vadd.f32 %v8202_v39, %v3487_v13  ;;  %v3420_v47 = vpop.f32.mrb[85].mxu0  ;;  %v3554_v56 = vpop.f32.mrb[73].mxu1 }
 0xe3b   :  { %v3421_v21 = vadd.f32 %v3420_v47, %v11301_v34  ;;  %v3555_v62 = vadd.f32 %v3554_v56, %v3487_v13 }
 0xe3d   :  { %v8893_v61 = vpack.c.bf16 %v3560_v46, %v3555_v62  ;;  %v11306_v23 = vpop.f32.mrb[86].mxu0  ;;  %v8205_v31 = vpop.f32.mrb[74].mxu1  ;;  %8268 = vmatprep.mubr.msk.f32.mxu1 %vm754_vm1, %v3421_v21 }
 0xe3e   :  { %v3570_v60 = vadd.f32 %v8205_v31, %v3487_v13  ;;  %v11309_v9 = vpop.f32.mrb[87].mxu0  ;;  %v3564_v5 = vpop.f32.mrb[75].mxu1 }
 0xe3f   :  { %v3565_v37 = vadd.f32 %v3564_v5, %v3487_v13  ;;  %8895 = vmatprep.subr.msk.bf16.mxu1 %vm9969_vm2, %v8893_v61 }
 0xe40   :  { %8898 = vmatpush3.bf16.xpose.msk.msra.mxu1 %vm9969_vm2, %v8893_v61 }
 0xe41   :  { %v8899_v41 = vpack.c.bf16 %v3570_v60, %v3565_v37  ;;  %v11315_v24 = vpop.f32.mrb[88].mxu0  ;;  %v8208_v4 = vpop.f32.mrb[76].mxu1 }
 0xe42   :  { %v3580_v54 = vadd.f32 %v8208_v4, %v3487_v13  ;;  %v11317_v35 = vpop.f32.mrb[89].mxu0  ;;  %v3574_v39 = vpop.f32.mrb[77].mxu1 }
 0xe43   :  { %v3575_v46 = vadd.f32 %v3574_v39, %v3487_v13  ;;  %8901 = vmatprep.subr.msk.bf16.mxu1 %vm9969_vm2, %v8899_v41 }
 0xe45   :  { %v8905_v47 = vpack.c.bf16 %v3580_v54, %v3575_v46 }
 0xe47   :  { %v11321_v56 = vpop.f32.mrb[90].mxu0  ;;  %v8211_v21 = vpop.f32.mrb[78].mxu1 }
 0xe48   :  { %v3590_v62 = vadd.f32 %v8211_v21, %v3487_v13  ;;  %v11323_v31 = vpop.f32.mrb[91].mxu0  ;;  %v3584_v61 = vpop.f32.mrb[79].mxu1  ;;  %8904 = vmatpush3.bf16.xpose.msk.msra.mxu1 %vm9969_vm2, %v8899_v41 }
 0xe49   :  { %v3585_v60 = vadd.f32 %v3584_v61, %v3487_v13  ;;  %8907 = vmatprep.subr.msk.bf16.mxu1 %vm9969_vm2, %v8905_v47 }
 0xe4b   :  { %v8911_v5 = vpack.c.bf16 %v3590_v62, %v3585_v60  ;;  %v8188_v37 = vpop.f32.mrb[92].mxu0  ;;  %v8214_v4 = vpop.f32.mrb[80].mxu1 }
 0xe4c   :  { %v11330_v39 = vadd.f32 %v8188_v37, %v11301_v34  ;;  %v3600_v54 = vadd.f32 %v8214_v4, %v3487_v13  ;;  %v3460_v46 = vpop.f32.mrb[93].mxu0  ;;  %v3594_v19 = vpop.f32.mrb[81].mxu1  ;;  %v3621_v37 = vrot.slane %v6921_v11, %v10000_v57 }
 0xe4d   :  { %v11333_v21 = vadd.f32 %v3460_v46, %v11301_v34  ;;  %v3595_v51 = vadd.f32 %v3594_v19, %v3487_v13 }
 0xe4f   :  { %v8917_v3 = vpack.c.bf16 %v3600_v54, %v3595_v51  ;;  %v8191_v2 = vpop.f32.mrb[94].mxu0  ;;  %v8217_v41 = vpop.f32.mrb[82].mxu1 }
 0xe50   :  { %v11336_v61 = vadd.f32 %v8191_v2, %v11301_v34  ;;  %v3610_v25 = vadd.f32 %v8217_v41, %v3487_v13  ;;  %v3470_v62 = vpop.f32.mrb[95].mxu0  ;;  %v3604_v60 = vpop.f32.mrb[83].mxu1  ;;  %8910 = vmatpush3.bf16.xpose.msk.msra.mxu1 %vm9969_vm2, %v8905_v47 }
 0xe51   :  { %v11342_v4 = vadd.f32 %v3470_v62, %v11301_v34  ;;  %v3605_v46 = vadd.f32 %v3604_v60, %v3487_v13  ;;  %8913 = vmatprep.subr.msk.bf16.mxu1 %vm9969_vm2, %v8911_v5 }
 0xe53   :  { %v8923_v19 = vpack.c.bf16 %v3610_v25, %v3605_v46  ;;  %v8228_v51 = vpop.f32.mrb[96].mxu0 }
 0xe54   :  { %v3694_v54 = vadd.f32 %v8228_v51, %v3621_v37  ;;  %v3688_v2 = vpop.f32.mrb[97].mxu0 }
 0xe55   :  { %v3689_v30 = vadd.f32 %v3688_v2, %v3621_v37 }
 0xe57   :  { %v8929_v41 = vpack.c.bf16 %v3694_v54, %v3689_v30  ;;  %v8231_v32 = vpop.f32.mrb[98].mxu0 }
 0xe58   :  { %v3704_v26 = vadd.f32 %v8231_v32, %v3621_v37  ;;  %v3698_v18 = vpop.f32.mrb[99].mxu0  ;;  %8916 = vmatpush3.bf16.xpose.msk.msra.mxu1 %vm9969_vm2, %v8911_v5  ;;  %v7026_v5 = vld [vmem:[%s12423_s2 + $0x148] sm:$0xff] }
 0xe59   :  { %v3699_v11 = vadd.f32 %v3698_v18, %v3621_v37  ;;  %8930 = vmatprep.subr.bf16.mxu0 %v8929_v41  ;;  %8919 = vmatprep.subr.msk.bf16.mxu1 %vm9969_vm2, %v8917_v3 }
 0xe5a   :  { %8932 = vmatpush3.bf16.msra.mxu0 %v8929_v41 }
 0xe5b   :  { %v8933_v13 = vpack.c.bf16 %v3704_v26, %v3699_v11  ;;  %v8234_v47 = vpop.f32.mrb[100].mxu0  ;;  %v7025_v26 = vld [vmem:[%s12423_s2 + $0x140] sm:$0xff] }
 0xe5c   :  { %v3714_v25 = vadd.f32 %v8234_v47, %v3621_v37  ;;  %v3708_v62 = vpop.f32.mrb[101].mxu0 }
 0xe5d   :  { %v3709_v60 = vadd.f32 %v3708_v62, %v3621_v37  ;;  %8934 = vmatprep.subr.bf16.mxu0 %v8933_v13 }
 0xe5e   :  { %8936 = vmatpush3.bf16.msra.mxu0 %v8933_v13 }
 0xe5f   :  { %v8937_v30 = vpack.c.bf16 %v3714_v25, %v3709_v60  ;;  %v8237_v46 = vpop.f32.mrb[102].mxu0 }
 0xe60   :  { %v3724_v32 = vadd.f32 %v8237_v46, %v3621_v37  ;;  %v3718_v51 = vpop.f32.mrb[103].mxu0  ;;  %8922 = vmatpush3.bf16.xpose.msk.msra.mxu1 %vm9969_vm2, %v8917_v3  ;;  %v8961_v3 = vpack.c.bf16 %v7026_v5, %v7025_v26  ;;  %v7027_v46 = vld [vmem:[%s12423_s2 + $0x150] sm:$0xff]  ;;  %v3441_v5 = vadd.f32 %v11317_v35, %v11301_v34 }
 0xe61   :  { %v3719_v18 = vadd.f32 %v3718_v51, %v3621_v37  ;;  %8938 = vmatprep.subr.bf16.mxu0 %v8937_v30  ;;  %8925 = vmatprep.subr.msk.bf16.mxu1 %vm9969_vm2, %v8923_v19 }
 0xe62   :  { %8940 = vmatpush3.bf16.msra.mxu0 %v8937_v30 }
 0xe63   :  { %v8941_v54 = vpack.c.bf16 %v3724_v32, %v3719_v18  ;;  %v8240_v2 = vpop.f32.mrb[104].mxu0  ;;  %v7028_v32 = vld [vmem:[%s12423_s2 + $0x158] sm:$0xff]  ;;  %v3426_v18 = vadd.f32 %v11303_v8, %v11301_v34  ;;  %v3446_v8 = vadd.f32 %v11315_v24, %v11301_v34 }
 0xe64   :  { %v3734_v41 = vadd.f32 %v8240_v2, %v3621_v37  ;;  %v3728_v11 = vpop.f32.mrb[105].mxu0  ;;  %v8965_v26 = vpack.c.bf16 %v7028_v32, %v7027_v46 }
 0xe65   :  { %v3729_v13 = vadd.f32 %v3728_v11, %v3621_v37  ;;  %8942 = vmatprep.subr.bf16.mxu0 %v8941_v54 }
 0xe66   :  { %8944 = vmatpush3.bf16.msra.mxu0 %v8941_v54 }
 0xe67   :  { %v8945_v47 = vpack.c.bf16 %v3734_v41, %v3729_v13  ;;  %v8243_v25 = vpop.f32.mrb[106].mxu0 }
 0xe68   :  { %v3744_v62 = vadd.f32 %v8243_v25, %v3621_v37  ;;  %v3738_v60 = vpop.f32.mrb[107].mxu0  ;;  %8928 = vmatpush3.bf16.xpose.msk.msra.mxu1 %vm9969_vm2, %v8923_v19  ;;  %v3436_v19 = vadd.f32 %v11306_v23, %v11301_v34  ;;  %v3456_v23 = vadd.f32 %v11321_v56, %v11301_v34 }
 0xe69   :  { %v3739_v30 = vadd.f32 %v3738_v60, %v3621_v37  ;;  %8946 = vmatprep.subr.bf16.mxu0 %v8945_v47  ;;  %8962 = vmatprep.subr.bf16.mxu1 %v8961_v3  ;;  %v3431_v37 = vadd.f32 %v11309_v9, %v11301_v34  ;;  %v3451_v9 = vadd.f32 %v11323_v31, %v11301_v34 }
 0xe6a   :  { %8948 = vmatpush3.bf16.msra.mxu0 %v8945_v47 }
 0xe6b   :  { %v8949_v51 = vpack.c.bf16 %v3744_v62, %v3739_v30 }
 0xe6d   :  { %8950 = vmatprep.subr.bf16.mxu0 %v8949_v51 }
 0xe6e   :  { %8952 = vmatpush3.bf16.msra.mxu0 %v8949_v51 }
 0xe6f   :  { %8269 = vmatmul.mubr.msk.f32.vlgmr.msra.gmra.mrb[84].mxu1 %vm754_vm1, %v3426_v18 }
 0xe70   :  { %8271 = vmatprep.mubr.msk.f32.mxu1 %vm754_vm1, %v3431_v37  ;;  %8964 = vmatpush3.bf16.msra.mxu1 %v8961_v3 }
 0xe71   :  { %8966 = vmatprep.subr.bf16.mxu1 %v8965_v26 }
 0xe73   :  { %8272 = vmatmul.mubr.msk.f32.gmra.mrb[86].mxu1 %vm754_vm1, %v3436_v19 }
 0xe74   :  { %8274 = vmatprep.mubr.msk.f32.mxu1 %vm754_vm1, %v3441_v5  ;;  %8968 = vmatpush3.bf16.msra.mxu1 %v8965_v26 }
 0xe77   :  { %8275 = vmatmul.mubr.msk.f32.gmra.mrb[88].mxu1 %vm754_vm1, %v3446_v8  ;;  %v11470_v8 = vld [vmem:[%s12425_s3 + $0xc] sm:$0x7] }
 0xe78   :  { %8277 = vmatprep.mubr.msk.f32.mxu1 %vm754_vm1, %v3451_v9 }
 0xe7b   :  { %8278 = vmatmul.mubr.msk.f32.gmra.mrb[90].mxu1 %vm754_vm1, %v3456_v23 }
 0xe7c   :  { %8280 = vmatprep.mubr.msk.f32.mxu1 %vm754_vm1, %v11333_v21 }
 0xe7f   :  { %8281 = vmatmul.mubr.msk.f32.gmra.mrb[92].mxu1 %vm754_vm1, %v11330_v39 }
 0xe80   :  { %8283 = vmatprep.mubr.msk.f32.mxu1 %vm754_vm1, %v11342_v4 }
 0xe83   :  { %8284 = vmatmul.mubr.msk.f32.gmra.mrb[94].mxu1 %vm754_vm1, %v11336_v61 }
 0xe84   :  { %8362 = vmatprep.mubr.msk.f32.mxu1 %vm126_vm0, %v11170_v44 }
 0xe87   :  { %8363 = vmatmul.mubr.msk.f32.vlgmr.msra.gmra.mrb[96].mxu1 %vm126_vm0, %v11174_v48 }
 0xe88   :  { %8365 = vmatprep.mubr.msk.f32.mxu1 %vm126_vm0, %v11188_v1 }
 0xe8b   :  { %8366 = vmatmul.mubr.msk.f32.gmra.mrb[98].mxu1 %vm126_vm0, %v11193_v28 }
 0xe8c   :  { %8368 = vmatprep.mubr.msk.f32.mxu1 %vm126_vm0, %v11205_v10 }
 0xe8f   :  { %8369 = vmatmul.mubr.msk.f32.gmra.mrb[100].mxu1 %vm126_vm0, %v11209_v36 }
 0xe90   :  { %8371 = vmatprep.mubr.msk.f32.mxu1 %vm126_vm0, %v11225_v22 }
 0xe93   :  { %8372 = vmatmul.mubr.msk.f32.gmra.mrb[102].mxu1 %vm126_vm0, %v11229_v55 }
 0xe94   :  { %8374 = vmatprep.mubr.msk.f32.mxu1 %vm126_vm0, %v11243_v42 }
 0xe97   :  { %8375 = vmatmul.mubr.msk.f32.gmra.mrb[104].mxu1 %vm126_vm0, %v11247_v40 }
 0xe98   :  { %8377 = vmatprep.mubr.msk.f32.mxu1 %vm126_vm0, %v11259_v43 }
 0xe9b   :  { %8378 = vmatmul.mubr.msk.f32.gmra.mrb[106].mxu1 %vm126_vm0, %v11262_v59 }
 0xf42   :  { %v8270_v34 = vpop.f32.mrb[84].mxu1 }
 0xf43   :  { %v11422_v24 = vadd.f32 %v8270_v34, %v10118_v45  ;;  %v3885_v35 = vpop.f32.mrb[85].mxu1 }
 0xf44   :  { %v11425_v56 = vadd.f32 %v3885_v35, %v10121_v50 }
 0xf45   :  { %v3947_v31 = vsel %vm952_vm13, %v11422_v24, -inf }
 0xf46   :  { %3948 = vmax.xlane.f32.xlu1 %v3947_v31  ;;  %v8273_v39 = vpop.f32.mrb[86].mxu1  ;;  %v3944_v21 = vsel %vm952_vm13, %v11425_v56, -inf }
 0xf47   :  { %v11432_v61 = vadd.f32 %v8273_v39, %v10136_v63  ;;  %v3895_v4 = vpop.f32.mrb[87].mxu1  ;;  %3945 = vmax.xlane.f32.xlu0 %v3944_v21  ;;  %v4384_v39 = vrot.slane %v11470_v8, %v9810_v0 }
 0xf48   :  { %v11435_v54 = vadd.f32 %v3895_v4, %v10141_v6 }
 0xf49   :  { %v3953_v2 = vsel %vm952_vm13, %v11432_v61, -inf }
 0xf4a   :  { %3954 = vmax.xlane.f32.xlu1 %v3953_v2  ;;  %v8276_v41 = vpop.f32.mrb[88].mxu1  ;;  %v3950_v11 = vsel %vm952_vm13, %v11435_v54, -inf }
 0xf4b   :  { %v11442_v13 = vadd.f32 %v8276_v41, %v10172_v29  ;;  %v3905_v3 = vpop.f32.mrb[89].mxu1  ;;  %3951 = vmax.xlane.f32.xlu0 %v3950_v11 }
 0xf4c   :  { %v11445_v47 = vadd.f32 %v3905_v3, %v10177_v33 }
 0xf4d   :  { %v3959_v25 = vsel %vm952_vm13, %v11442_v13, -inf }
 0xf4e   :  { %3960 = vmax.xlane.f32.xlu1 %v3959_v25  ;;  %v8279_v62 = vpop.f32.mrb[90].mxu1  ;;  %v3956_v60 = vsel %vm952_vm13, %v11445_v47, -inf }
 0xf4f   :  { %v11452_v30 = vadd.f32 %v8279_v62, %v10198_v38  ;;  %v3915_v46 = vpop.f32.mrb[91].mxu1  ;;  %3957 = vmax.xlane.f32.xlu0 %v3956_v60 }
 0xf50   :  { %v11455_v32 = vadd.f32 %v3915_v46, %v10203_v16 }
 0xf51   :  { %v3965_v51 = vsel %vm952_vm13, %v11452_v30, -inf }
 0xf52   :  { %3966 = vmax.xlane.f32.xlu1 %v3965_v51  ;;  %v8282_v18 = vpop.f32.mrb[92].mxu1  ;;  %v3962_v26 = vsel %vm952_vm13, %v11455_v32, -inf }
 0xf53   :  { %v11462_v37 = vadd.f32 %v8282_v18, %v10216_v14  ;;  %v3925_v19 = vpop.f32.mrb[93].mxu1  ;;  %3963 = vmax.xlane.f32.xlu0 %v3962_v26 }
 0xf54   :  { %v11465_v5 = vadd.f32 %v3925_v19, %v10221_v52 }
 0xf55   :  { %v3971_v9 = vsel %vm952_vm13, %v11462_v37, -inf }
 0xf56   :  { %3972 = vmax.xlane.f32.xlu1 %v3971_v9  ;;  %v8285_v23 = vpop.f32.mrb[94].mxu1  ;;  %v3968_v34 = vsel %vm952_vm13, %v11465_v5, -inf }
 0xf57   :  { %v11477_v35 = vadd.f32 %v8285_v23, %v10232_v7  ;;  %3969 = vmax.xlane.f32.xlu0 %v3968_v34  ;;  %v3935_v31 = vpop.f32.mrb[95].mxu1 }
 0xf58   :  { %v11482_v21 = vadd.f32 %v3935_v31, %v10242_v15 }
 0xf59   :  { %v3977_v4 = vsel %vm952_vm13, %v11477_v35, -inf }
 0xf5a   :  { %3978 = vmax.xlane.f32.xlu1 %v3977_v4  ;;  %v8364_v2 = vpop.f32.mrb[96].mxu1  ;;  %v3974_v41 = vsel %vm952_vm13, %v11482_v21, -inf }
 0xf5b   :  { %v4457_v11 = vadd.f32 %v8364_v2, %v4384_v39  ;;  %v4451_v3 = vpop.f32.mrb[97].mxu1  ;;  %3975 = vmax.xlane.f32.xlu0 %v3974_v41 }
 0xf5c   :  { %v4452_v25 = vadd.f32 %v4451_v3, %v4384_v39 }
 0xf5e   :  { %v8977_v62 = vpack.c.bf16 %v4457_v11, %v4452_v25  ;;  %v8367_v60 = vpop.f32.mrb[98].mxu1 }
 0xf5f   :  { %v4467_v46 = vadd.f32 %v8367_v60, %v4384_v39  ;;  %v4461_v51 = vpop.f32.mrb[99].mxu1 }
 0xf60   :  { %v4462_v0 = vadd.f32 %v4461_v51, %v4384_v39  ;;  %8979 = vmatprep.subr.msk.bf16.mxu1 %vm9969_vm2, %v8977_v62 }
 0xf61   :  { %8982 = vmatpush3.bf16.xpose.msk.msra.mxu1 %vm9969_vm2, %v8977_v62 }
 0xf62   :  { %v8983_v18 = vpack.c.bf16 %v4467_v46, %v4462_v0  ;;  %v8370_v26 = vpop.f32.mrb[100].mxu1 }
 0xf63   :  { %v4477_v19 = vadd.f32 %v8370_v26, %v4384_v39  ;;  %v4471_v9 = vpop.f32.mrb[101].mxu1 }
 0xf64   :  { %v4472_v23 = vadd.f32 %v4471_v9, %v4384_v39  ;;  %8985 = vmatprep.subr.msk.bf16.mxu1 %vm9969_vm2, %v8983_v18 }
 0xf66   :  { %v8989_v34 = vpack.c.bf16 %v4477_v19, %v4472_v23  ;;  %v8373_v31 = vpop.f32.mrb[102].mxu1 }
 0xf67   :  { %v4487_v4 = vadd.f32 %v8373_v31, %v4384_v39  ;;  %v4481_v2 = vpop.f32.mrb[103].mxu1 }
 0xf68   :  { %v4482_v41 = vadd.f32 %v4481_v2, %v4384_v39 }
 0xf69   :  { %8988 = vmatpush3.bf16.xpose.msk.msra.mxu1 %vm9969_vm2, %v8983_v18 }
 0xf6a   :  { %v8995_v11 = vpack.c.bf16 %v4487_v4, %v4482_v41  ;;  %v8376_v3 = vpop.f32.mrb[104].mxu1  ;;  %8991 = vmatprep.subr.msk.bf16.mxu1 %vm9969_vm2, %v8989_v34 }
 0xf6b   :  { %v4497_v25 = vadd.f32 %v8376_v3, %v4384_v39  ;;  %v4491_v62 = vpop.f32.mrb[105].mxu1 }
 0xf6c   :  { %v4492_v60 = vadd.f32 %v4491_v62, %v4384_v39 }
 0xf6e   :  { %v9001_v46 = vpack.c.bf16 %v4497_v25, %v4492_v60  ;;  %v8379_v51 = vpop.f32.mrb[106].mxu1 }
 0xf6f   :  { %v4507_v0 = vadd.f32 %v8379_v51, %v4384_v39  ;;  %v4501_v26 = vpop.f32.mrb[107].mxu1 }
 0xf70   :  { %v4502_v19 = vadd.f32 %v4501_v26, %v4384_v39 }
 0xf71   :  { %8994 = vmatpush3.bf16.xpose.msk.msra.mxu1 %vm9969_vm2, %v8989_v34 }
 0xf72   :  { %v9007_v9 = vpack.c.bf16 %v4507_v0, %v4502_v19  ;;  %8997 = vmatprep.subr.msk.bf16.mxu1 %vm9969_vm2, %v8995_v11 }
 0xf79   :  { %9000 = vmatpush3.bf16.xpose.msk.msra.mxu1 %vm9969_vm2, %v8995_v11 }
 0xf7a   :  { %9003 = vmatprep.subr.msk.bf16.mxu1 %vm9969_vm2, %v9001_v46 }
 0xf81   :  { %9006 = vmatpush3.bf16.xpose.msk.msra.mxu1 %vm9969_vm2, %v9001_v46 }
 0xf82   :  { %9009 = vmatprep.subr.msk.bf16.mxu1 %vm9969_vm2, %v9007_v9 }
 0xf89   :  { %9012 = vmatpush3.bf16.xpose.msk.msra.mxu1 %vm9969_vm2, %v9007_v9  ;;  %vm6571_vm2 = vcmask 27648  }
 0xfd3   :  { %v3949_v39 = vpop.xlane.xlu1 %3948 }
 0xfd4   :  { %v3981_v18 = vsub.f32 %v11422_v24, %v3949_v39  ;;  %v3946_v23 = vpop.xlane.xlu0 %3945 }
 0xfd5   :  { %v3980_v34 = vsub.f32 %v11425_v56, %v3946_v23 }
 0xfd6   :  { %v3994_v31 = vmul.f32 1.442695, %v3981_v18 }
 0xfd7   :  { %v3992_v4 = vmul.f32 1.442695, %v3980_v34  ;;  %v3955_v2 = vpop.xlane.xlu1 %3954 }
 0xfd8   :  { %9363 = vpow2.f32 %v3994_v31  ;;  %v3983_v41 = vsub.f32 %v11432_v61, %v3955_v2  ;;  %v3952_v11 = vpop.xlane.xlu0 %3951 }
 0xfd9   :  { %9365 = vpow2.f32 %v3992_v4  ;;  %v3982_v3 = vsub.f32 %v11435_v54, %v3952_v11 }
 0xfda   :  { %v3998_v25 = vmul.f32 1.442695, %v3983_v41 }
 0xfdb   :  { %v3996_v62 = vmul.f32 1.442695, %v3982_v3  ;;  %v3961_v27 = vpop.xlane.xlu1 %3960 }
 0xfdc   :  { %9367 = vpow2.f32 %v3998_v25  ;;  %v3985_v60 = vsub.f32 %v11442_v13, %v3961_v27  ;;  %v3958_v24 = vpop.xlane.xlu0 %3957 }
 0xfdd   :  { %9369 = vpow2.f32 %v3996_v62  ;;  %v3984_v56 = vsub.f32 %v11445_v47, %v3958_v24 }
 0xfde   :  { %v4002_v46 = vmul.f32 1.442695, %v3985_v60 }
 0xfdf   :  { %v4000_v51 = vmul.f32 1.442695, %v3984_v56  ;;  %v3967_v0 = vpop.xlane.xlu1 %3966 }
 0xfe0   :  { %9371 = vpow2.f32 %v4002_v46  ;;  %v3987_v61 = vsub.f32 %v11452_v30, %v3967_v0  ;;  %v3964_v26 = vpop.xlane.xlu0 %3963 }
 0xfe1   :  { %9373 = vpow2.f32 %v4000_v51  ;;  %v3986_v54 = vsub.f32 %v11455_v32, %v3964_v26 }
 0xfe2   :  { %v11520_v19 = vpop.eup %9363  ;;  %v4006_v9 = vmul.f32 1.442695, %v3987_v61 }
 0xfe3   :  { %v11522_v39 = vpop.eup %9365  ;;  %v4004_v13 = vmul.f32 1.442695, %v3986_v54  ;;  %v3973_v18 = vpop.xlane.xlu1 %3972  ;;  %v4019_v47 = vsel %vm952_vm13, %v11520_v19, 0.0 }
 0xfe4   :  { %9375 = vpow2.f32 %v4006_v9  ;;  %v3989_v23 = vsub.f32 %v11462_v37, %v3973_v18  ;;  %v3970_v34 = vpop.xlane.xlu0 %3969  ;;  %4020 = vadd.xlane.f32.xlu1 %v4019_v47  ;;  %v4016_v30 = vsel %vm952_vm13, %v11522_v39, 0.0 }
 0xfe5   :  { %9377 = vpow2.f32 %v4004_v13  ;;  %v3988_v32 = vsub.f32 %v11465_v5, %v3970_v34  ;;  %4017 = vadd.xlane.f32.xlu0 %v4016_v30  ;;  %v7009_v30 = vld [vmem:[%s12423_s2 + $0x120] sm:$0xff] }
 0xfe6   :  { %v11530_v31 = vpop.eup %9367  ;;  %v4010_v4 = vmul.f32 1.442695, %v3989_v23 }
 0xfe7   :  { %v11532_v2 = vpop.eup %9369  ;;  %v4008_v41 = vmul.f32 1.442695, %v3988_v32  ;;  %v3979_v11 = vpop.xlane.xlu1 %3978  ;;  %v4025_v3 = vsel %vm952_vm13, %v11530_v31, 0.0  ;;  %v7010_v32 = vld [vmem:[%s12423_s2 + $0x128] sm:$0xff] }
 0xfe8   :  { %9379 = vpow2.f32 %v4010_v4  ;;  %v3991_v37 = vsub.f32 %v11477_v35, %v3979_v11  ;;  %4026 = vadd.xlane.f32.xlu1 %v4025_v3  ;;  %v3976_v25 = vpop.xlane.xlu0 %3975  ;;  %v4022_v62 = vsel %vm952_vm13, %v11532_v2, 0.0  ;;  %v8953_v4 = vpack.c.bf16 %v7010_v32, %v7009_v30  ;;  %v7042_v30 = vld [vmem:[%s12423_s2 + $0x168] sm:$0xff] }
 0xfe9   :  { %9381 = vpow2.f32 %v4008_v41  ;;  %v3990_v5 = vsub.f32 %v11482_v21, %v3976_v25  ;;  %4023 = vadd.xlane.f32.xlu0 %v4022_v62 }
 0xfea   :  { %v11540_v27 = vpop.eup %9371  ;;  %v4014_v60 = vmul.f32 1.442695, %v3991_v37  ;;  %8954 = vmatprep.subr.bf16.mxu0 %v8953_v4 }
 0xfeb   :  { %v11542_v24 = vpop.eup %9373  ;;  %v4012_v56 = vmul.f32 1.442695, %v3990_v5  ;;  %v4031_v46 = vsel %vm952_vm13, %v11540_v27, 0.0 }
 0xfec   :  { %9383 = vpow2.f32 %v4014_v60  ;;  %4032 = vadd.xlane.f32.xlu1 %v4031_v46  ;;  %v4028_v35 = vsel %vm952_vm13, %v11542_v24, 0.0  ;;  %v7011_v60 = vld [vmem:[%s12423_s2 + $0x130] sm:$0xff] }
 0xfed   :  { %9385 = vpow2.f32 %v4012_v56  ;;  %4029 = vadd.xlane.f32.xlu0 %v4028_v35  ;;  %v7012_v56 = vld [vmem:[%s12423_s2 + $0x138] sm:$0xff] }
 0xfee   :  { %v11548_v51 = vpop.eup %9375 }
 0xfef   :  { %v11550_v21 = vpop.eup %9377  ;;  %v4037_v0 = vsel %vm952_vm13, %v11548_v51, 0.0 }
 0xff0   :  { %4038 = vadd.xlane.f32.xlu1 %v4037_v0  ;;  %v4034_v61 = vsel %vm952_vm13, %v11550_v21, 0.0 }
 0xff1   :  { %4035 = vadd.xlane.f32.xlu0 %v4034_v61 }
 0xff2   :  { %v11556_v26 = vpop.eup %9379 }
 0xff3   :  { %v11558_v54 = vpop.eup %9381  ;;  %v4043_v9 = vsel %vm952_vm13, %v11556_v26, 0.0 }
 0xff4   :  { %4044 = vadd.xlane.f32.xlu1 %v4043_v9  ;;  %v4040_v13 = vsel %vm952_vm13, %v11558_v54, 0.0 }
 0xff5   :  { %4041 = vadd.xlane.f32.xlu0 %v4040_v13  ;;  %v8957_v13 = vpack.c.bf16 %v7012_v56, %v7011_v60 }
 0xff6   :  { %v11564_v18 = vpop.eup %9383 }
 0xff7   :  { %v11566_v47 = vpop.eup %9385  ;;  %v4049_v23 = vsel %vm952_vm13, %v11564_v18, 0.0 }
 0xff8   :  { %4050 = vadd.xlane.f32.xlu1 %v4049_v23  ;;  %v4046_v34 = vsel %vm952_vm13, %v11566_v47, 0.0 }
 0xff9   :  { %4047 = vadd.xlane.f32.xlu0 %v4046_v34  ;;  %v7041_v34 = vld [vmem:[%s12423_s2 + $0x160] sm:$0xff] }
0x1071   :  { %v4021_v41 = vpop.xlane.xlu1 %4020 }
0x1072   :  { %9387 = vrcp.f32 %v4021_v41  ;;  %v4018_v11 = vpop.xlane.xlu0 %4017 }
0x1073   :  { %9389 = vrcp.f32 %v4018_v11 }
0x1075   :  { %v4027_v3 = vpop.xlane.xlu1 %4026 }
0x1076   :  { %9391 = vrcp.f32 %v4027_v3  ;;  %v4024_v37 = vpop.xlane.xlu0 %4023  ;;  %v8969_v3 = vpack.c.bf16 %v7042_v30, %v7041_v34 }
0x1077   :  { %9393 = vrcp.f32 %v4024_v37 }
0x1079   :  { %v4033_v25 = vpop.xlane.xlu1 %4032 }
0x107a   :  { %9395 = vrcp.f32 %v4033_v25  ;;  %v4030_v62 = vpop.xlane.xlu0 %4029 }
0x107b   :  { %9397 = vrcp.f32 %v4030_v62 }
0x107c   :  { %v9388_v5 = vpop.eup %9387 }
0x107d   :  { %v9390_v46 = vpop.eup %9389  ;;  %v4039_v35 = vpop.xlane.xlu1 %4038  ;;  %v4065_v9 = vmul.f32 %v9388_v5, %v11520_v19 }
0x107e   :  { %9399 = vrcp.f32 %v4039_v35  ;;  %v4036_v0 = vpop.xlane.xlu0 %4035  ;;  %v4064_v61 = vmul.f32 %v9390_v46, %v11522_v39 }
0x107f   :  { %9401 = vrcp.f32 %v4036_v0 }
0x1080   :  { %v9392_v23 = vpop.eup %9391  ;;  %8310 = vmatprep.mubr.msk.f32.mxu0 %vm952_vm13, %v4064_v61 }
0x1081   :  { %v9394_v32 = vpop.eup %9393  ;;  %v4045_v41 = vpop.xlane.xlu1 %4044  ;;  %8311 = vmatmul.mubr.msk.f32.vlgmr.msra.gmra.mrb[108].mxu0 %vm952_vm13, %v4065_v9  ;;  %v4067_v11 = vmul.f32 %v9392_v23, %v11530_v31 }
0x1082   :  { %9403 = vrcp.f32 %v4045_v41  ;;  %8956 = vmatpush3.bf16.msra.mxu0 %v8953_v4  ;;  %v4042_v19 = vpop.xlane.xlu0 %4041  ;;  %v4066_v39 = vmul.f32 %v9394_v32, %v11532_v2 }
0x1083   :  { %9405 = vrcp.f32 %v4042_v19  ;;  %8958 = vmatprep.subr.bf16.mxu0 %v8957_v13 }
0x1084   :  { %v9396_v37 = vpop.eup %9395  ;;  %8313 = vmatprep.mubr.msk.f32.mxu0 %vm952_vm13, %v4066_v39 }
0x1085   :  { %v9398_v25 = vpop.eup %9397  ;;  %v4051_v62 = vpop.xlane.xlu1 %4050  ;;  %8314 = vmatmul.mubr.msk.f32.gmra.mrb[110].mxu0 %vm952_vm13, %v4067_v11  ;;  %v4069_v2 = vmul.f32 %v9396_v37, %v11540_v27 }
0x1086   :  { %9407 = vrcp.f32 %v4051_v62  ;;  %v4048_v5 = vpop.xlane.xlu0 %4047  ;;  %v4068_v60 = vmul.f32 %v9398_v25, %v11542_v24  ;;  %8960 = vmatpush3.bf16.msra.mxu0 %v8957_v13  ;;  %v7043_v13 = vld [vmem:[%s12423_s2 + $0x170] sm:$0xff] }
0x1087   :  { %9409 = vrcp.f32 %v4048_v5  ;;  %8970 = vmatprep.subr.bf16.mxu0 %v8969_v3 }
0x1088   :  { %v9400_v4 = vpop.eup %9399  ;;  %8316 = vmatprep.mubr.msk.f32.mxu0 %vm952_vm13, %v4068_v60 }
0x1089   :  { %v9402_v31 = vpop.eup %9401  ;;  %8317 = vmatmul.mubr.msk.f32.gmra.mrb[112].mxu0 %vm952_vm13, %v4069_v2  ;;  %v4071_v46 = vmul.f32 %v9400_v4, %v11548_v51 }
0x108a   :  { %v4070_v56 = vmul.f32 %v9402_v31, %v11550_v21 }
0x108c   :  { %v9404_v35 = vpop.eup %9403  ;;  %8319 = vmatprep.mubr.msk.f32.mxu0 %vm952_vm13, %v4070_v56 }
0x108d   :  { %v9406_v0 = vpop.eup %9405  ;;  %8320 = vmatmul.mubr.msk.f32.gmra.mrb[114].mxu0 %vm952_vm13, %v4071_v46  ;;  %v4073_v27 = vmul.f32 %v9404_v35, %v11556_v26  ;;  %v7044_v26 = vld [vmem:[%s12423_s2 + $0x178] sm:$0xff] }
0x108e   :  { %v4072_v24 = vmul.f32 %v9406_v0, %v11558_v54  ;;  %v8973_v54 = vpack.c.bf16 %v7044_v26, %v7043_v13  ;;  %v4518_v0 = vrot.slane %v11470_v8, %v10000_v57 }
0x1090   :  { %v9408_v61 = vpop.eup %9407  ;;  %8322 = vmatprep.mubr.msk.f32.mxu0 %vm952_vm13, %v4072_v24 }
0x1091   :  { %v9410_v9 = vpop.eup %9409  ;;  %8323 = vmatmul.mubr.msk.f32.gmra.mrb[116].mxu0 %vm952_vm13, %v4073_v27  ;;  %v4075_v51 = vmul.f32 %v9408_v61, %v11564_v18  ;;  %v4250_v18 = vrot.slane %v11470_v8, %v9804_v58 }
0x1092   :  { %v4074_v21 = vmul.f32 %v9410_v9, %v11566_v47 }
0x1094   :  { %8325 = vmatprep.mubr.msk.f32.mxu0 %vm952_vm13, %v4074_v21 }
0x1095   :  { %8326 = vmatmul.mubr.msk.f32.gmra.mrb[118].mxu0 %vm952_vm13, %v4075_v51 }
0x1096   :  { %8336 = vmatprep.mubr.msk.f32.mxu0 %vm126_vm0, %v11170_v44 }
0x1099   :  { %8337 = vmatmul.mubr.msk.f32.vlgmr.msra.gmra.mrb[120].mxu0 %vm126_vm0, %v11174_v48 }
0x109a   :  { %8339 = vmatprep.mubr.msk.f32.mxu0 %vm126_vm0, %v11188_v1  ;;  %8972 = vmatpush3.bf16.msra.mxu0 %v8969_v3 }
0x109b   :  { %8974 = vmatprep.subr.bf16.mxu0 %v8973_v54 }
0x109d   :  { %8340 = vmatmul.mubr.msk.f32.gmra.mrb[122].mxu0 %vm126_vm0, %v11193_v28 }
0x109e   :  { %8342 = vmatprep.mubr.msk.f32.mxu0 %vm126_vm0, %v11205_v10  ;;  %8976 = vmatpush3.bf16.msra.mxu0 %v8973_v54 }
0x10a1   :  { %8343 = vmatmul.mubr.msk.f32.gmra.mrb[124].mxu0 %vm126_vm0, %v11209_v36 }
0x10a2   :  { %8345 = vmatprep.mubr.msk.f32.mxu0 %vm126_vm0, %v11225_v22 }
0x10a5   :  { %8346 = vmatmul.mubr.msk.f32.gmra.mrb[126].mxu0 %vm126_vm0, %v11229_v55 }
0x10a6   :  { %8348 = vmatprep.mubr.msk.f32.mxu0 %vm126_vm0, %v11243_v42 }
0x10a9   :  { %8349 = vmatmul.mubr.msk.f32.gmra.mrb[128].mxu0 %vm126_vm0, %v11247_v40 }
0x10aa   :  { %8351 = vmatprep.mubr.msk.f32.mxu0 %vm126_vm0, %v11259_v43 }
0x10ad   :  { %8352 = vmatmul.mubr.msk.f32.gmra.mrb[130].mxu0 %vm126_vm0, %v11262_v59 }
0x10ae   :  { %8388 = vmatprep.mubr.msk.f32.mxu0 %vm126_vm0, %v11170_v44 }
0x10b1   :  { %8389 = vmatmul.mubr.msk.f32.vlgmr.msra.gmra.mrb[132].mxu0 %vm126_vm0, %v11174_v48 }
0x10b2   :  { %8391 = vmatprep.mubr.msk.f32.mxu0 %vm126_vm0, %v11188_v1 }
0x10b5   :  { %8392 = vmatmul.mubr.msk.f32.gmra.mrb[134].mxu0 %vm126_vm0, %v11193_v28 }
0x10b6   :  { %8394 = vmatprep.mubr.msk.f32.mxu0 %vm126_vm0, %v11205_v10 }
0x10b9   :  { %8395 = vmatmul.mubr.msk.f32.gmra.mrb[136].mxu0 %vm126_vm0, %v11209_v36 }
0x10ba   :  { %8397 = vmatprep.mubr.msk.f32.mxu0 %vm126_vm0, %v11225_v22 }
0x10bd   :  { %8398 = vmatmul.mubr.msk.f32.gmra.mrb[138].mxu0 %vm126_vm0, %v11229_v55 }
0x10be   :  { %8400 = vmatprep.mubr.msk.f32.mxu0 %vm126_vm0, %v11243_v42 }
0x10c1   :  { %8401 = vmatmul.mubr.msk.f32.gmra.mrb[140].mxu0 %vm126_vm0, %v11247_v40 }
0x10c2   :  { %8403 = vmatprep.mubr.msk.f32.mxu0 %vm126_vm0, %v11259_v43 }
0x10c5   :  { %8404 = vmatmul.mubr.msk.f32.gmra.mrb[142].mxu0 %vm126_vm0, %v11262_v59 }
0x1154   :  { %v11668_v44 = vpop.f32.mrb[108].mxu0 }
0x1155   :  { %v11670_v48 = vpop.f32.mrb[109].mxu0 }
0x1158   :  { %v11672_v1 = vpop.f32.mrb[110].mxu0 }
0x1159   :  { %v11674_v28 = vpop.f32.mrb[111].mxu0 }
0x115c   :  { %v11676_v10 = vpop.f32.mrb[112].mxu0 }
0x115d   :  { %v11678_v36 = vpop.f32.mrb[113].mxu0 }
0x1160   :  { %v11680_v22 = vpop.f32.mrb[114].mxu0 }
0x1161   :  { %v11682_v55 = vpop.f32.mrb[115].mxu0 }
0x1164   :  { %v11684_v42 = vpop.f32.mrb[116].mxu0 }
0x1165   :  { %v11686_v40 = vpop.f32.mrb[117].mxu0 }
0x1168   :  { %v11688_v43 = vpop.f32.mrb[118].mxu0 }
0x1169   :  { %v11690_v59 = vpop.f32.mrb[119].mxu0 }
0x116c   :  { %v8338_v47 = vpop.f32.mrb[120].mxu0 }
0x116d   :  { %v4317_v23 = vpop.f32.mrb[121].mxu0  ;;  %v4323_v30 = vadd.f32 %v8338_v47, %v4250_v18 }
0x116e   :  { %v4318_v34 = vadd.f32 %v4317_v23, %v4250_v18 }
0x1170   :  { %v8341_v32 = vpop.f32.mrb[122].mxu0  ;;  %8430 = vmatprep.mubr.msk.f32.mxu1 %vm754_vm1, %v4318_v34 }
0x1171   :  { %v4327_v41 = vpop.f32.mrb[123].mxu0  ;;  %8431 = vmatmul.mubr.msk.f32.vlgmr.msra.gmra.mrb[108].mxu1 %vm754_vm1, %v4323_v30  ;;  %v4333_v39 = vadd.f32 %v8341_v32, %v4250_v18 }
0x1172   :  { %v4328_v19 = vadd.f32 %v4327_v41, %v4250_v18 }
0x1174   :  { %v8344_v11 = vpop.f32.mrb[124].mxu0  ;;  %8433 = vmatprep.mubr.msk.f32.mxu1 %vm754_vm1, %v4328_v19 }
0x1175   :  { %v4337_v3 = vpop.f32.mrb[125].mxu0  ;;  %8434 = vmatmul.mubr.msk.f32.gmra.mrb[110].mxu1 %vm754_vm1, %v4333_v39  ;;  %v4343_v58 = vadd.f32 %v8344_v11, %v4250_v18 }
0x1176   :  { %v4338_v37 = vadd.f32 %v4337_v3, %v4250_v18 }
0x1178   :  { %v8347_v25 = vpop.f32.mrb[126].mxu0  ;;  %8436 = vmatprep.mubr.msk.f32.mxu1 %vm754_vm1, %v4338_v37 }
0x1179   :  { %v4347_v62 = vpop.f32.mrb[127].mxu0  ;;  %8437 = vmatmul.mubr.msk.f32.gmra.mrb[112].mxu1 %vm754_vm1, %v4343_v58  ;;  %v4353_v60 = vadd.f32 %v8347_v25, %v4250_v18 }
0x117a   :  { %v4348_v5 = vadd.f32 %v4347_v62, %v4250_v18 }
0x117c   :  { %v8350_v2 = vpop.f32.mrb[128].mxu0  ;;  %8439 = vmatprep.mubr.msk.f32.mxu1 %vm754_vm1, %v4348_v5 }
0x117d   :  { %v4357_v4 = vpop.f32.mrb[129].mxu0  ;;  %8440 = vmatmul.mubr.msk.f32.gmra.mrb[114].mxu1 %vm754_vm1, %v4353_v60  ;;  %v4363_v56 = vadd.f32 %v8350_v2, %v4250_v18 }
0x117e   :  { %v4358_v31 = vadd.f32 %v4357_v4, %v4250_v18 }
0x1180   :  { %v8353_v46 = vpop.f32.mrb[130].mxu0  ;;  %8442 = vmatprep.mubr.msk.f32.mxu1 %vm754_vm1, %v4358_v31 }
0x1181   :  { %v4367_v35 = vpop.f32.mrb[131].mxu0  ;;  %8443 = vmatmul.mubr.msk.f32.gmra.mrb[116].mxu1 %vm754_vm1, %v4363_v56  ;;  %v4373_v27 = vadd.f32 %v8353_v46, %v4250_v18 }
0x1182   :  { %v4368_v24 = vadd.f32 %v4367_v35, %v4250_v18 }
0x1184   :  { %v8390_v61 = vpop.f32.mrb[132].mxu0  ;;  %8445 = vmatprep.mubr.msk.f32.mxu1 %vm754_vm1, %v4368_v24 }
0x1185   :  { %v4591_v9 = vadd.f32 %v8390_v61, %v4518_v0  ;;  %v4585_v21 = vpop.f32.mrb[133].mxu0  ;;  %8446 = vmatmul.mubr.msk.f32.gmra.mrb[118].mxu1 %vm754_vm1, %v4373_v27 }
0x1186   :  { %v4586_v51 = vadd.f32 %v4585_v21, %v4518_v0 }
0x1188   :  { %v9013_v13 = vpack.c.bf16 %v4591_v9, %v4586_v51  ;;  %v8393_v26 = vpop.f32.mrb[134].mxu0 }
0x1189   :  { %v4601_v54 = vadd.f32 %v8393_v26, %v4518_v0  ;;  %v4595_v47 = vpop.f32.mrb[135].mxu0 }
0x118a   :  { %v4596_v23 = vadd.f32 %v4595_v47, %v4518_v0  ;;  %9014 = vmatprep.subr.bf16.mxu0 %v9013_v13 }
0x118b   :  { %9016 = vmatpush3.bf16.msra.mxu0 %v9013_v13 }
0x118c   :  { %v9017_v34 = vpack.c.bf16 %v4601_v54, %v4596_v23  ;;  %v8396_v30 = vpop.f32.mrb[136].mxu0 }
0x118d   :  { %v4611_v8 = vadd.f32 %v8396_v30, %v4518_v0  ;;  %v4605_v32 = vpop.f32.mrb[137].mxu0 }
0x118e   :  { %v4606_v18 = vadd.f32 %v4605_v32, %v4518_v0  ;;  %9018 = vmatprep.subr.bf16.mxu0 %v9017_v34 }
0x118f   :  { %9020 = vmatpush3.bf16.msra.mxu0 %v9017_v34 }
0x1190   :  { %v9021_v41 = vpack.c.bf16 %v4611_v8, %v4606_v18  ;;  %v8399_v19 = vpop.f32.mrb[138].mxu0 }
0x1191   :  { %v4621_v39 = vadd.f32 %v8399_v19, %v4518_v0  ;;  %v4615_v11 = vpop.f32.mrb[139].mxu0 }
0x1192   :  { %v4616_v3 = vadd.f32 %v4615_v11, %v4518_v0  ;;  %9022 = vmatprep.subr.bf16.mxu0 %v9021_v41 }
0x1193   :  { %9024 = vmatpush3.bf16.msra.mxu0 %v9021_v41 }
0x1194   :  { %v9025_v37 = vpack.c.bf16 %v4621_v39, %v4616_v3  ;;  %v8402_v58 = vpop.f32.mrb[140].mxu0 }
0x1195   :  { %v4631_v25 = vadd.f32 %v8402_v58, %v4518_v0  ;;  %v4625_v62 = vpop.f32.mrb[141].mxu0 }
0x1196   :  { %v4626_v5 = vadd.f32 %v4625_v62, %v4518_v0  ;;  %9026 = vmatprep.subr.bf16.mxu0 %v9025_v37 }
0x1197   :  { %9028 = vmatpush3.bf16.msra.mxu0 %v9025_v37 }
0x1198   :  { %v9029_v60 = vpack.c.bf16 %v4631_v25, %v4626_v5  ;;  %v8405_v2 = vpop.f32.mrb[142].mxu0 }
0x1199   :  { %v4641_v4 = vadd.f32 %v8405_v2, %v4518_v0  ;;  %v4635_v31 = vpop.f32.mrb[143].mxu0 }
0x119a   :  { %v4636_v56 = vadd.f32 %v4635_v31, %v4518_v0  ;;  %9030 = vmatprep.subr.bf16.mxu0 %v9029_v60 }
0x119b   :  { %9032 = vmatpush3.bf16.msra.mxu0 %v9029_v60 }
0x119c   :  { %v9033_v46 = vpack.c.bf16 %v4641_v4, %v4636_v56 }
0x119e   :  { %9034 = vmatprep.subr.bf16.mxu0 %v9033_v46 }
0x119f   :  { %9036 = vmatpush3.bf16.msra.mxu0 %v9033_v46 }
0x1244   :  { %v8432_v35 = vpop.f32.mrb[108].mxu1 }
0x1245   :  { %v4788_v24 = vadd.f32 %v8432_v35, %v10118_v45  ;;  %v4782_v27 = vpop.f32.mrb[109].mxu1 }
0x1246   :  { %v4783_v61 = vadd.f32 %v4782_v27, %v10121_v50 }
0x1247   :  { %v4844_v9 = vsel %vm952_vm13, %v4788_v24, -inf }
0x1248   :  { %4845 = vmax.xlane.f32.xlu1 %v4844_v9  ;;  %v8435_v21 = vpop.f32.mrb[110].mxu1  ;;  %v4841_v51 = vsel %vm952_vm13, %v4783_v61, -inf }
0x1249   :  { %v4798_v13 = vadd.f32 %v8435_v21, %v10136_v63  ;;  %v4792_v0 = vpop.f32.mrb[111].mxu1  ;;  %4842 = vmax.xlane.f32.xlu0 %v4841_v51 }
0x124a   :  { %v4793_v26 = vadd.f32 %v4792_v0, %v10141_v6 }
0x124b   :  { %v4850_v54 = vsel %vm952_vm13, %v4798_v13, -inf }
0x124c   :  { %4851 = vmax.xlane.f32.xlu1 %v4850_v54  ;;  %v8438_v47 = vpop.f32.mrb[112].mxu1  ;;  %v4847_v45 = vsel %vm952_vm13, %v4793_v26, -inf }
0x124d   :  { %v4808_v50 = vadd.f32 %v8438_v47, %v10172_v29  ;;  %v4802_v23 = vpop.f32.mrb[113].mxu1  ;;  %4848 = vmax.xlane.f32.xlu0 %v4847_v45 }
0x124e   :  { %v4803_v34 = vadd.f32 %v4802_v23, %v10177_v33 }
0x124f   :  { %v4856_v30 = vsel %vm952_vm13, %v4808_v50, -inf }
0x1250   :  { %4857 = vmax.xlane.f32.xlu1 %v4856_v30  ;;  %v8441_v63 = vpop.f32.mrb[114].mxu1  ;;  %v4853_v8 = vsel %vm952_vm13, %v4803_v34, -inf }
0x1251   :  { %v4818_v6 = vadd.f32 %v8441_v63, %v10198_v38  ;;  %v4812_v32 = vpop.f32.mrb[115].mxu1  ;;  %4854 = vmax.xlane.f32.xlu0 %v4853_v8 }
0x1252   :  { %v4813_v18 = vadd.f32 %v4812_v32, %v10203_v16 }
0x1253   :  { %v4862_v41 = vsel %vm952_vm13, %v4818_v6, -inf }
0x1254   :  { %4863 = vmax.xlane.f32.xlu1 %v4862_v41  ;;  %v8444_v29 = vpop.f32.mrb[116].mxu1  ;;  %v4859_v19 = vsel %vm952_vm13, %v4813_v18, -inf }
0x1255   :  { %v4828_v33 = vadd.f32 %v8444_v29, %v10216_v14  ;;  %v4822_v39 = vpop.f32.mrb[117].mxu1  ;;  %4860 = vmax.xlane.f32.xlu0 %v4859_v19 }
0x1256   :  { %v4823_v11 = vadd.f32 %v4822_v39, %v10221_v52 }
0x1257   :  { %v4868_v3 = vsel %vm952_vm13, %v4828_v33, -inf }
0x1258   :  { %4869 = vmax.xlane.f32.xlu1 %v4868_v3  ;;  %v8447_v38 = vpop.f32.mrb[118].mxu1  ;;  %v4865_v37 = vsel %vm952_vm13, %v4823_v11, -inf }
0x1259   :  { %v11729_v16 = vadd.f32 %v8447_v38, %v10232_v7  ;;  %v4832_v58 = vpop.f32.mrb[119].mxu1  ;;  %4866 = vmax.xlane.f32.xlu0 %v4865_v37 }
0x125a   :  { %v11732_v25 = vadd.f32 %v4832_v58, %v10242_v15 }
0x125b   :  { %v4874_v14 = vsel %vm952_vm13, %v11729_v16, -inf }
0x125c   :  { %4875 = vmax.xlane.f32.xlu1 %v4874_v14  ;;  %v4871_v52 = vsel %vm952_vm13, %v11732_v25, -inf }
0x125d   :  { %4872 = vmax.xlane.f32.xlu0 %v4871_v52 }
0x12d5   :  { %v4846_v62 = vpop.xlane.xlu1 %4845 }
0x12d6   :  { %v4878_v5 = vsub.f32 %v4788_v24, %v4846_v62  ;;  %v4843_v60 = vpop.xlane.xlu0 %4842 }
0x12d7   :  { %v4877_v2 = vsub.f32 %v4783_v61, %v4843_v60 }
0x12d8   :  { %v4891_v4 = vmul.f32 1.442695, %v4878_v5 }
0x12d9   :  { %v4889_v7 = vmul.f32 1.442695, %v4877_v2  ;;  %v4852_v31 = vpop.xlane.xlu1 %4851 }
0x12da   :  { %9411 = vpow2.f32 %v4891_v4  ;;  %v4880_v56 = vsub.f32 %v4798_v13, %v4852_v31  ;;  %v4849_v46 = vpop.xlane.xlu0 %4848 }
0x12db   :  { %9413 = vpow2.f32 %v4889_v7  ;;  %v4879_v15 = vsub.f32 %v4793_v26, %v4849_v46 }
0x12dc   :  { %v4895_v35 = vmul.f32 1.442695, %v4880_v56 }
0x12dd   :  { %v4893_v27 = vmul.f32 1.442695, %v4879_v15  ;;  %v4858_v9 = vpop.xlane.xlu1 %4857 }
0x12de   :  { %9415 = vpow2.f32 %v4895_v35  ;;  %v4882_v21 = vsub.f32 %v4808_v50, %v4858_v9  ;;  %v4855_v51 = vpop.xlane.xlu0 %4854 }
0x12df   :  { %9417 = vpow2.f32 %v4893_v27  ;;  %v4881_v0 = vsub.f32 %v4803_v34, %v4855_v51  ;;  %v7093_v51 = vld [vmem:[%s12426_s4 + $0x30] sm:$0xff] }
0x12e0   :  { %v4899_v54 = vmul.f32 1.442695, %v4882_v21 }
0x12e1   :  { %v4897_v24 = vmul.f32 1.442695, %v4881_v0  ;;  %v4864_v47 = vpop.xlane.xlu1 %4863  ;;  %v7094_v0 = vld [vmem:[%s12426_s4 + $0x38] sm:$0xff] }
0x12e2   :  { %9419 = vpow2.f32 %v4899_v54  ;;  %v4884_v61 = vsub.f32 %v4818_v6, %v4864_v47  ;;  %v4861_v45 = vpop.xlane.xlu0 %4860  ;;  %v9037_v54 = vpack.c.bf16 %v7094_v0, %v7093_v51 }
0x12e3   :  { %9421 = vpow2.f32 %v4897_v24  ;;  %v4883_v23 = vsub.f32 %v4813_v18, %v4861_v45 }
0x12e4   :  { %v11738_v13 = vpop.eup %9411  ;;  %v4903_v30 = vmul.f32 1.442695, %v4884_v61  ;;  %9038 = vmatprep.subr.bf16.mxu0 %v9037_v54 }
0x12e5   :  { %v11740_v26 = vpop.eup %9413  ;;  %v4901_v63 = vmul.f32 1.442695, %v4883_v23  ;;  %v4870_v8 = vpop.xlane.xlu1 %4869  ;;  %v4916_v50 = vsel %vm952_vm13, %v11738_v13, 0.0 }
0x12e6   :  { %9423 = vpow2.f32 %v4903_v30  ;;  %v4886_v34 = vsub.f32 %v4828_v33, %v4870_v8  ;;  %4917 = vadd.xlane.f32.xlu1 %v4916_v50  ;;  %v4867_v32 = vpop.xlane.xlu0 %4866  ;;  %v4913_v6 = vsel %vm952_vm13, %v11740_v26, 0.0 }
0x12e7   :  { %9425 = vpow2.f32 %v4901_v63  ;;  %v4885_v41 = vsub.f32 %v4823_v11, %v4867_v32  ;;  %4914 = vadd.xlane.f32.xlu0 %v4913_v6 }
0x12e8   :  { %v11746_v18 = vpop.eup %9415  ;;  %v4907_v29 = vmul.f32 1.442695, %v4886_v34 }
0x12e9   :  { %v11748_v19 = vpop.eup %9417  ;;  %v4905_v39 = vmul.f32 1.442695, %v4885_v41  ;;  %v4876_v3 = vpop.xlane.xlu1 %4875  ;;  %v4922_v38 = vsel %vm952_vm13, %v11746_v18, 0.0 }
0x12ea   :  { %9427 = vpow2.f32 %v4907_v29  ;;  %v4888_v33 = vsub.f32 %v11729_v16, %v4876_v3  ;;  %4923 = vadd.xlane.f32.xlu1 %v4922_v38  ;;  %v4873_v37 = vpop.xlane.xlu0 %4872  ;;  %v4919_v58 = vsel %vm952_vm13, %v11748_v19, 0.0 }
0x12eb   :  { %9429 = vpow2.f32 %v4905_v39  ;;  %v4887_v11 = vsub.f32 %v11732_v25, %v4873_v37  ;;  %4920 = vadd.xlane.f32.xlu0 %v4919_v58 }
0x12ec   :  { %v11756_v14 = vpop.eup %9419  ;;  %v4911_v52 = vmul.f32 1.442695, %v4888_v33 }
0x12ed   :  { %v11758_v62 = vpop.eup %9421  ;;  %v4909_v5 = vmul.f32 1.442695, %v4887_v11  ;;  %v4928_v60 = vsel %vm952_vm13, %v11756_v14, 0.0 }
0x12ee   :  { %9431 = vpow2.f32 %v4911_v52  ;;  %4929 = vadd.xlane.f32.xlu1 %v4928_v60  ;;  %v4925_v16 = vsel %vm952_vm13, %v11758_v62, 0.0 }
0x12ef   :  { %9433 = vpow2.f32 %v4909_v5  ;;  %4926 = vadd.xlane.f32.xlu0 %v4925_v16 }
0x12f0   :  { %v11764_v2 = vpop.eup %9423 }
0x12f1   :  { %v11766_v25 = vpop.eup %9425  ;;  %v4934_v4 = vsel %vm952_vm13, %v11764_v2, 0.0 }
0x12f2   :  { %4935 = vadd.xlane.f32.xlu1 %v4934_v4  ;;  %v4931_v7 = vsel %vm952_vm13, %v11766_v25, 0.0 }
0x12f3   :  { %4932 = vadd.xlane.f32.xlu0 %v4931_v7 }
0x12f4   :  { %v11772_v31 = vpop.eup %9427 }
0x12f5   :  { %v11774_v56 = vpop.eup %9429  ;;  %v4940_v46 = vsel %vm952_vm13, %v11772_v31, 0.0 }
0x12f6   :  { %4941 = vadd.xlane.f32.xlu1 %v4940_v46  ;;  %v4937_v15 = vsel %vm952_vm13, %v11774_v56, 0.0 }
0x12f7   :  { %4938 = vadd.xlane.f32.xlu0 %v4937_v15 }
0x12f8   :  { %v11780_v35 = vpop.eup %9431 }
0x12f9   :  { %v11782_v27 = vpop.eup %9433  ;;  %v4946_v9 = vsel %vm952_vm13, %v11780_v35, 0.0 }
0x12fa   :  { %4947 = vadd.xlane.f32.xlu1 %v4946_v9  ;;  %v4943_v21 = vsel %vm952_vm13, %v11782_v27, 0.0 }
0x12fb   :  { %4944 = vadd.xlane.f32.xlu0 %v4943_v21 }
0x1373   :  { %v4918_v24 = vpop.xlane.xlu1 %4917 }
0x1374   :  { %9435 = vrcp.f32 %v4918_v24  ;;  %v4915_v47 = vpop.xlane.xlu0 %4914 }
0x1375   :  { %9437 = vrcp.f32 %v4915_v47 }
0x1377   :  { %v4924_v61 = vpop.xlane.xlu1 %4923 }
0x1378   :  { %9439 = vrcp.f32 %v4924_v61  ;;  %v4921_v45 = vpop.xlane.xlu0 %4920 }
0x1379   :  { %9441 = vrcp.f32 %v4921_v45 }
0x137b   :  { %v4930_v23 = vpop.xlane.xlu1 %4929 }
0x137c   :  { %9443 = vrcp.f32 %v4930_v23  ;;  %v4927_v30 = vpop.xlane.xlu0 %4926 }
0x137d   :  { %9445 = vrcp.f32 %v4927_v30 }
0x137e   :  { %v9436_v63 = vpop.eup %9435 }
0x137f   :  { %v9438_v8 = vpop.eup %9437  ;;  %v4936_v50 = vpop.xlane.xlu1 %4935  ;;  %v4962_v6 = vmul.f32 %v9436_v63, %v11738_v13 }
0x1380   :  { %9447 = vrcp.f32 %v4936_v50  ;;  %v4933_v34 = vpop.xlane.xlu0 %4932  ;;  %v4961_v32 = vmul.f32 %v9438_v8, %v11740_v26 }
0x1381   :  { %9449 = vrcp.f32 %v4933_v34  ;;  %v12468_v34 = vld [vmem:[#allocation4_spill] sm:$0xff] }
0x1382   :  { %v9440_v41 = vpop.eup %9439  ;;  %8472 = vmatprep.mubr.msk.f32.mxu0 %vm952_vm13, %v4961_v32 }
0x1383   :  { %v9442_v29 = vpop.eup %9441  ;;  %v4942_v39 = vpop.xlane.xlu1 %4941  ;;  %8473 = vmatmul.mubr.msk.f32.vlgmr.msra.gmra.mrb[144].mxu0 %vm952_vm13, %v4962_v6  ;;  %v4964_v33 = vmul.f32 %v9440_v41, %v11746_v18  ;;  %v12469_v41 = vld [vmem:[#allocation5_spill] sm:$0xff] }
0x1384   :  { %9451 = vrcp.f32 %v4942_v39  ;;  %v4939_v3 = vpop.xlane.xlu0 %4938  ;;  %v4963_v38 = vmul.f32 %v9442_v29, %v11748_v19  ;;  %9040 = vmatpush3.bf16.msra.mxu0 %v9037_v54 }
0x1385   :  { %9453 = vrcp.f32 %v4939_v3 }
0x1386   :  { %v9444_v37 = vpop.eup %9443  ;;  %8475 = vmatprep.mubr.msk.f32.mxu0 %vm952_vm13, %v4963_v38 }
0x1387   :  { %v9446_v13 = vpop.eup %9445  ;;  %v4948_v26 = vpop.xlane.xlu1 %4947  ;;  %8476 = vmatmul.mubr.msk.f32.gmra.mrb[146].mxu0 %vm952_vm13, %v4964_v33  ;;  %v4966_v52 = vmul.f32 %v9444_v37, %v11756_v14  ;;  %v12470_v33 = vld [vmem:[#allocation6_spill] sm:$0xff] }
0x1388   :  { %9455 = vrcp.f32 %v4948_v26  ;;  %v4945_v58 = vpop.xlane.xlu0 %4944  ;;  %v4965_v11 = vmul.f32 %v9446_v13, %v11758_v62 }
0x1389   :  { %9457 = vrcp.f32 %v4945_v58  ;;  %v12471_v58 = vld [vmem:[#allocation7_spill] sm:$0xff] }
0x138a   :  { %v9448_v5 = vpop.eup %9447  ;;  %8478 = vmatprep.mubr.msk.f32.mxu0 %vm952_vm13, %v4965_v11 }
0x138b   :  { %v9450_v19 = vpop.eup %9449  ;;  %8479 = vmatmul.mubr.msk.f32.gmra.mrb[148].mxu0 %vm952_vm13, %v4966_v52  ;;  %v4968_v60 = vmul.f32 %v9448_v5, %v11764_v2 }
0x138c   :  { %v4967_v18 = vmul.f32 %v9450_v19, %v11766_v25 }
0x138e   :  { %v9452_v16 = vpop.eup %9451  ;;  %8481 = vmatprep.mubr.msk.f32.mxu0 %vm952_vm13, %v4967_v18 }
0x138f   :  { %v9454_v4 = vpop.eup %9453  ;;  %8482 = vmatmul.mubr.msk.f32.gmra.mrb[150].mxu0 %vm952_vm13, %v4968_v60  ;;  %v4970_v14 = vmul.f32 %v9452_v16, %v11772_v31  ;;  %v7007_v31 = vld [vmem:[%s12426_s4 + $0x28] sm:$0xff]  ;;  %v12472_v60 = vld [vmem:[#allocation8_spill] sm:$0xff] }
0x1390   :  { %v4969_v62 = vmul.f32 %v9454_v4, %v11774_v56  ;;  %v7006_v56 = vld [vmem:[%s12426_s4 + $0x20] sm:$0xff] }
0x1391   :  { %v9041_v15 = vpack.c.bf16 %v7007_v31, %v7006_v56  ;;  %v12474_v31 = vld [vmem:[#allocation10_spill] sm:$0xff] }
0x1392   :  { %v9456_v7 = vpop.eup %9455  ;;  %8484 = vmatprep.mubr.msk.f32.mxu0 %vm952_vm13, %v4969_v62 }
0x1393   :  { %v9458_v46 = vpop.eup %9457  ;;  %8485 = vmatmul.mubr.msk.f32.gmra.mrb[152].mxu0 %vm952_vm13, %v4970_v14  ;;  %v4972_v2 = vmul.f32 %v9456_v7, %v11780_v35  ;;  %9042 = vmatprep.subr.bf16.mxu0 %v9041_v15  ;;  %v12473_v14 = vld [vmem:[#allocation9_spill] sm:$0xff] }
0x1394   :  { %v4971_v25 = vmul.f32 %v9458_v46, %v11782_v27 }
0x1396   :  { %8487 = vmatprep.mubr.msk.f32.mxu0 %vm952_vm13, %v4971_v25 }
0x1397   :  { %8488 = vmatmul.mubr.msk.f32.gmra.mrb[154].mxu0 %vm952_vm13, %v4972_v2 }
0x1456   :  { %v8474_v9 = vpop.f32.mrb[144].mxu0 }
0x1457   :  { %v5075_v21 = vpop.f32.mrb[145].mxu0 }
0x1458   :  { %8494 = vmatprep.mubr.msk.f32.mxu0 %vm754_vm1, %v5075_v21 }
0x1459   :  { %8495 = vmatmul.mubr.msk.f32.vlgmr.msra.gmra.mrb[156].mxu0 %vm754_vm1, %v8474_v9 }
0x145a   :  { %v8477_v35 = vpop.f32.mrb[146].mxu0  ;;  %9044 = vmatpush3.bf16.msra.mxu0 %v9041_v15 }
0x145b   :  { %v5085_v27 = vpop.f32.mrb[147].mxu0 }
0x145c   :  { %8497 = vmatprep.mubr.msk.f32.mxu0 %vm754_vm1, %v5085_v27 }
0x145d   :  { %8498 = vmatmul.mubr.msk.f32.gmra.mrb[158].mxu0 %vm754_vm1, %v8477_v35  ;;  %v12475_v35 = vld [vmem:[#allocation11_spill] sm:$0xff] }
0x145e   :  { %v8480_v51 = vpop.f32.mrb[148].mxu0 }
0x145f   :  { %v5095_v0 = vpop.f32.mrb[149].mxu0 }
0x1460   :  { %8500 = vmatprep.mubr.msk.f32.mxu0 %vm754_vm1, %v5095_v0 }
0x1461   :  { %8501 = vmatmul.mubr.msk.f32.gmra.mrb[160].mxu0 %vm754_vm1, %v8480_v51 }
0x1462   :  { %v8483_v54 = vpop.f32.mrb[150].mxu0 }
0x1463   :  { %v5105_v24 = vpop.f32.mrb[151].mxu0 }
0x1464   :  { %8503 = vmatprep.mubr.msk.f32.mxu0 %vm754_vm1, %v5105_v24 }
0x1465   :  { %8504 = vmatmul.mubr.msk.f32.gmra.mrb[162].mxu0 %vm754_vm1, %v8483_v54 }
0x1466   :  { %v8486_v47 = vpop.f32.mrb[152].mxu0 }
0x1467   :  { %v5115_v61 = vpop.f32.mrb[153].mxu0 }
0x1468   :  { %8506 = vmatprep.mubr.msk.f32.mxu0 %vm754_vm1, %v5115_v61  ;;  %v7119_v61 = vld [vmem:[%s12427_s5 + $0x20] sm:$0xff] }
0x1469   :  { %8507 = vmatmul.mubr.msk.f32.gmra.mrb[164].mxu0 %vm754_vm1, %v8486_v47 }
0x146a   :  { %v8489_v45 = vpop.f32.mrb[154].mxu0 }
0x146b   :  { %v5125_v23 = vpop.f32.mrb[155].mxu0 }
0x146c   :  { %8509 = vmatprep.mubr.msk.f32.mxu0 %vm754_vm1, %v5125_v23 }
0x146d   :  { %8510 = vmatmul.mubr.msk.f32.gmra.mrb[166].mxu0 %vm754_vm1, %v8489_v45  ;;  %v7120_v45 = vld [vmem:[%s12427_s5 + $0x28] sm:$0xff] }
0x146e   :  { %8516 = vmatprep.mubr.msk.f32.mxu0 %vm754_vm1, %v11670_v48  ;;  %v12467_v48 = vsub.s32 4, %v9801_v49  ;;  %v9045_v23 = vpack.c.bf16 %v7120_v45, %v7119_v61 }
0x1470   :  { %9046 = vmatprep.subr.bf16.mxu1 %v9045_v23 }
0x1471   :  { %8517 = vmatmul.mubr.msk.f32.vlgmr.msra.gmra.mrb[156].mxu0 %vm754_vm1, %v11668_v44  ;;  %v11863_v44 = vld [vmem:[%s12424_s7 + $0x8] sm:$0xff]  ;;  %9048 = vmatpush3.bf16.msra.mxu1 %v9045_v23 }
0x1472   :  { %8519 = vmatprep.mubr.msk.f32.mxu0 %vm754_vm1, %v11674_v28 }
0x1475   :  { %8520 = vmatmul.mubr.msk.f32.gmra.mrb[158].mxu0 %vm754_vm1, %v11672_v1  ;;  %v5474_v1 = vrot.slane %v11863_v44, %v12467_v48 }
0x1476   :  { %8522 = vmatprep.mubr.msk.f32.mxu0 %vm754_vm1, %v11678_v36 }
0x1479   :  { %8523 = vmatmul.mubr.msk.f32.gmra.mrb[160].mxu0 %vm754_vm1, %v11676_v10 }
0x147a   :  { %8525 = vmatprep.mubr.msk.f32.mxu0 %vm754_vm1, %v11682_v55 }
0x147d   :  { %8526 = vmatmul.mubr.msk.f32.gmra.mrb[162].mxu0 %vm754_vm1, %v11680_v22 }
0x147e   :  { %8528 = vmatprep.mubr.msk.f32.mxu0 %vm754_vm1, %v11686_v40 }
0x1481   :  { %8529 = vmatmul.mubr.msk.f32.gmra.mrb[164].mxu0 %vm754_vm1, %v11684_v42 }
0x1482   :  { %8531 = vmatprep.mubr.msk.f32.mxu0 %vm754_vm1, %v11690_v59 }
0x1485   :  { %8532 = vmatmul.mubr.msk.f32.gmra.mrb[166].mxu0 %vm754_vm1, %v11688_v43  ;;  %vm6472_vm1 = vcmask 257024  }
0x1544   :  { %v8518_v28 = vpop.f32.mrb[156].mxu0 }
0x1545   :  { %v5460_v10 = vadd.f32 %v8518_v28, %v10985_v53  ;;  %v5400_v36 = vpop.f32.mrb[157].mxu0 }
0x1546   :  { %v5459_v22 = vadd.f32 %v5400_v36, %v10987_v20 }
0x1547   :  { %v11870_v55 = vadd.f32 %v5474_v1, %v5460_v10 }
0x1548   :  { %v11872_v42 = vadd.f32 %v5474_v1, %v5459_v22  ;;  %v8521_v40 = vpop.f32.mrb[158].mxu0 }
0x1549   :  { %v5462_v43 = vadd.f32 %v8521_v40, %v10995_v12  ;;  %v5410_v59 = vpop.f32.mrb[159].mxu0  ;;  %v5490_v30 = vsel %vm126_vm0, %v11870_v55, 0.0 }
0x154a   :  { %v5461_v63 = vadd.f32 %v5410_v59, %v10997_v17  ;;  %5491 = vadd.xlane.f32.xlu1 %v5490_v30  ;;  %v5487_v53 = vsel %vm126_vm0, %v11872_v42, 0.0 }
0x154b   :  { %v11880_v8 = vadd.f32 %v5474_v1, %v5462_v43  ;;  %5488 = vadd.xlane.f32.xlu0 %v5487_v53 }
0x154c   :  { %v11882_v20 = vadd.f32 %v5474_v1, %v5461_v63  ;;  %v8524_v50 = vpop.f32.mrb[160].mxu0 }
0x154d   :  { %v5464_v32 = vadd.f32 %v8524_v50, %v12468_v34  ;;  %v5420_v6 = vpop.f32.mrb[161].mxu0  ;;  %v5496_v12 = vsel %vm126_vm0, %v11880_v8, 0.0 }
0x154e   :  { %v5463_v29 = vadd.f32 %v5420_v6, %v12469_v41  ;;  %5497 = vadd.xlane.f32.xlu1 %v5496_v12  ;;  %v5493_v17 = vsel %vm126_vm0, %v11882_v20, 0.0 }
0x154f   :  { %v11890_v39 = vadd.f32 %v5474_v1, %v5464_v32  ;;  %5494 = vadd.xlane.f32.xlu0 %v5493_v17 }
0x1550   :  { %v11892_v3 = vadd.f32 %v5474_v1, %v5463_v29  ;;  %v8527_v38 = vpop.f32.mrb[162].mxu0 }
0x1551   :  { %v5466_v37 = vadd.f32 %v8527_v38, %v12470_v33  ;;  %v5430_v13 = vpop.f32.mrb[163].mxu0  ;;  %v5502_v26 = vsel %vm126_vm0, %v11890_v39, 0.0 }
0x1552   :  { %v5465_v11 = vadd.f32 %v5430_v13, %v12471_v58  ;;  %5503 = vadd.xlane.f32.xlu1 %v5502_v26  ;;  %v5499_v52 = vsel %vm126_vm0, %v11892_v3, 0.0 }
0x1553   :  { %v11900_v5 = vadd.f32 %v5474_v1, %v5466_v37  ;;  %5500 = vadd.xlane.f32.xlu0 %v5499_v52 }
0x1554   :  { %v11902_v19 = vadd.f32 %v5474_v1, %v5465_v11  ;;  %v8530_v18 = vpop.f32.mrb[164].mxu0 }
0x1555   :  { %v5468_v16 = vadd.f32 %v8530_v18, %v12472_v60  ;;  %v5440_v4 = vpop.f32.mrb[165].mxu0  ;;  %v5508_v62 = vsel %vm126_vm0, %v11900_v5, 0.0 }
0x1556   :  { %v5467_v7 = vadd.f32 %v5440_v4, %v12473_v14  ;;  %5509 = vadd.xlane.f32.xlu1 %v5508_v62  ;;  %v5505_v46 = vsel %vm126_vm0, %v11902_v19, 0.0 }
0x1557   :  { %v11910_v25 = vadd.f32 %v5474_v1, %v5468_v16  ;;  %5506 = vadd.xlane.f32.xlu0 %v5505_v46 }
0x1558   :  { %v11912_v2 = vadd.f32 %v5474_v1, %v5467_v7  ;;  %v8533_v56 = vpop.f32.mrb[166].mxu0 }
0x1559   :  { %v5470_v15 = vadd.f32 %v8533_v56, %v12474_v31  ;;  %v5450_v9 = vpop.f32.mrb[167].mxu0  ;;  %v5514_v21 = vsel %vm126_vm0, %v11910_v25, 0.0 }
0x155a   :  { %v5469_v27 = vadd.f32 %v5450_v9, %v12475_v35  ;;  %5515 = vadd.xlane.f32.xlu1 %v5514_v21  ;;  %v5511_v51 = vsel %vm126_vm0, %v11912_v2, 0.0 }
0x155b   :  { %v11920_v0 = vadd.f32 %v5474_v1, %v5470_v15  ;;  %5512 = vadd.xlane.f32.xlu0 %v5511_v51 }
0x155c   :  { %v11922_v54 = vadd.f32 %v5474_v1, %v5469_v27 }
0x155d   :  { %v5520_v24 = vsel %vm126_vm0, %v11920_v0, 0.0 }
0x155e   :  { %5521 = vadd.xlane.f32.xlu1 %v5520_v24  ;;  %v5517_v47 = vsel %vm126_vm0, %v11922_v54, 0.0 }
0x155f   :  { %5518 = vadd.xlane.f32.xlu0 %v5517_v47 }
0x15d7   :  { %v5492_v48 = vpop.xlane.xlu1 %5491 }
0x15d8   :  { %v5524_v1 = vmul.f32 0.03125, %v5492_v48  ;;  %v5489_v28 = vpop.xlane.xlu0 %5488 }
0x15d9   :  { %v5523_v10 = vmul.f32 0.03125, %v5489_v28 }
0x15da   :  { %v11935_v36 = vsub.f32 %v11870_v55, %v5524_v1 }
0x15db   :  { %v11938_v22 = vsub.f32 %v11872_v42, %v5523_v10  ;;  %v5498_v40 = vpop.xlane.xlu1 %5497 }
0x15dc   :  { %v5526_v43 = vmul.f32 0.03125, %v5498_v40  ;;  %v5495_v59 = vpop.xlane.xlu0 %5494  ;;  %v5548_v30 = vmul.f32 %v11935_v36, %v11935_v36 }
0x15dd   :  { %v5525_v63 = vmul.f32 0.03125, %v5495_v59  ;;  %v5547_v53 = vmul.f32 %v11938_v22, %v11938_v22 }
0x15de   :  { %v11945_v50 = vsub.f32 %v11880_v8, %v5526_v43  ;;  %v5562_v34 = vsel %vm126_vm0, %v5548_v30, 0.0 }
0x15df   :  { %v11949_v32 = vsub.f32 %v11882_v20, %v5525_v63  ;;  %v5504_v6 = vpop.xlane.xlu1 %5503  ;;  %5563 = vadd.xlane.f32.xlu1 %v5562_v34  ;;  %v5559_v12 = vsel %vm126_vm0, %v5547_v53, 0.0 }
0x15e0   :  { %v5528_v41 = vmul.f32 0.03125, %v5504_v6  ;;  %v5501_v29 = vpop.xlane.xlu0 %5500  ;;  %5560 = vadd.xlane.f32.xlu0 %v5559_v12  ;;  %v5550_v17 = vmul.f32 %v11945_v50, %v11945_v50  ;;  %v7121_v6 = vld [vmem:[%s12427_s5 + $0x30] sm:$0xff]  ;;  %v7122_v12 = vld [vmem:[%s12427_s5 + $0x38] sm:$0xff] }
0x15e1   :  { %v5527_v38 = vmul.f32 0.03125, %v5501_v29  ;;  %v5549_v33 = vmul.f32 %v11949_v32, %v11949_v32 }
0x15e2   :  { %v11957_v37 = vsub.f32 %v11890_v39, %v5528_v41  ;;  %v5568_v13 = vsel %vm126_vm0, %v5550_v17, 0.0  ;;  %v9049_v41 = vpack.c.bf16 %v7122_v12, %v7121_v6 }
0x15e3   :  { %v11961_v26 = vsub.f32 %v11892_v3, %v5527_v38  ;;  %v5510_v58 = vpop.xlane.xlu1 %5509  ;;  %5569 = vadd.xlane.f32.xlu1 %v5568_v13  ;;  %v5565_v11 = vsel %vm126_vm0, %v5549_v33, 0.0 }
0x15e4   :  { %v5530_v52 = vmul.f32 0.03125, %v5510_v58  ;;  %v5507_v18 = vpop.xlane.xlu0 %5506  ;;  %5566 = vadd.xlane.f32.xlu0 %v5565_v11  ;;  %v5552_v60 = vmul.f32 %v11957_v37, %v11957_v37  ;;  %9050 = vmatprep.subr.bf16.mxu1 %v9049_v41 }
0x15e5   :  { %v5529_v16 = vmul.f32 0.03125, %v5507_v18  ;;  %v5551_v4 = vmul.f32 %v11961_v26, %v11961_v26  ;;  %9052 = vmatpush3.bf16.msra.mxu1 %v9049_v41 }
0x15e6   :  { %v11969_v62 = vsub.f32 %v11900_v5, %v5530_v52  ;;  %v5574_v14 = vsel %vm126_vm0, %v5552_v60, 0.0 }
0x15e7   :  { %v11973_v7 = vsub.f32 %v11902_v19, %v5529_v16  ;;  %v5516_v46 = vpop.xlane.xlu1 %5515  ;;  %5575 = vadd.xlane.f32.xlu1 %v5574_v14  ;;  %v5571_v56 = vsel %vm126_vm0, %v5551_v4, 0.0 }
0x15e8   :  { %v5532_v31 = vmul.f32 0.03125, %v5516_v46  ;;  %v5513_v15 = vpop.xlane.xlu0 %5512  ;;  %5572 = vadd.xlane.f32.xlu0 %v5571_v56  ;;  %v5554_v9 = vmul.f32 %v11969_v62, %v11969_v62 }
0x15e9   :  { %v5531_v21 = vmul.f32 0.03125, %v5513_v15  ;;  %v5553_v35 = vmul.f32 %v11973_v7, %v11973_v7 }
0x15ea   :  { %v11981_v27 = vsub.f32 %v11910_v25, %v5532_v31  ;;  %v5580_v51 = vsel %vm126_vm0, %v5554_v9, 0.0 }
0x15eb   :  { %v11985_v24 = vsub.f32 %v11912_v2, %v5531_v21  ;;  %5581 = vadd.xlane.f32.xlu1 %v5580_v51  ;;  %v5522_v47 = vpop.xlane.xlu1 %5521  ;;  %v5577_v61 = vsel %vm126_vm0, %v5553_v35, 0.0 }
0x15ec   :  { %v5534_v45 = vmul.f32 0.03125, %v5522_v47  ;;  %5578 = vadd.xlane.f32.xlu0 %v5577_v61  ;;  %v5519_v23 = vpop.xlane.xlu0 %5518  ;;  %v5556_v48 = vmul.f32 %v11981_v27, %v11981_v27  ;;  %v12014_v47 = vrot.slane %v11863_v44, %v10000_v57 }
0x15ed   :  { %v5533_v1 = vmul.f32 0.03125, %v5519_v23  ;;  %v5555_v28 = vmul.f32 %v11985_v24, %v11985_v24 }
0x15ee   :  { %v11993_v10 = vsub.f32 %v11920_v0, %v5534_v45  ;;  %v5586_v40 = vsel %vm126_vm0, %v5556_v48, 0.0 }
0x15ef   :  { %v11997_v43 = vsub.f32 %v11922_v54, %v5533_v1  ;;  %5587 = vadd.xlane.f32.xlu1 %v5586_v40  ;;  %v5583_v59 = vsel %vm126_vm0, %v5555_v28, 0.0 }
0x15f0   :  { %5584 = vadd.xlane.f32.xlu0 %v5583_v59  ;;  %v5558_v30 = vmul.f32 %v11993_v10, %v11993_v10  ;;  %v12476_v59 = vsub.s32 3, %v9801_v49 }
0x15f1   :  { %v5557_v63 = vmul.f32 %v11997_v43, %v11997_v43 }
0x15f2   :  { %v5592_v53 = vsel %vm126_vm0, %v5558_v30, 0.0  ;;  %v12020_v30 = vrot.slane %v11863_v44, %v12476_v59 }
0x15f3   :  { %5593 = vadd.xlane.f32.xlu1 %v5592_v53  ;;  %v5589_v34 = vsel %vm126_vm0, %v5557_v63, 0.0 }
0x15f4   :  { %5590 = vadd.xlane.f32.xlu0 %v5589_v34 }
0x166c   :  { %v5564_v29 = vpop.xlane.xlu1 %5563 }
0x166d   :  { %v5596_v17 = vmul.f32 0.03125, %v5564_v29  ;;  %v5561_v38 = vpop.xlane.xlu0 %5560 }
0x166e   :  { %v5595_v33 = vmul.f32 0.03125, %v5561_v38 }
0x166f   :  { %v5608_v13 = vadd.f32 1e-05, %v5596_v17 }
0x1670   :  { %v5607_v58 = vadd.f32 1e-05, %v5595_v33  ;;  %v5570_v11 = vpop.xlane.xlu1 %5569 }
0x1671   :  { %9459 = vrsqrt.f32 %v5608_v13  ;;  %v5598_v52 = vmul.f32 0.03125, %v5570_v11  ;;  %v5567_v18 = vpop.xlane.xlu0 %5566 }
0x1672   :  { %9461 = vrsqrt.f32 %v5607_v58  ;;  %v5597_v60 = vmul.f32 0.03125, %v5567_v18 }
0x1673   :  { %v5610_v16 = vadd.f32 1e-05, %v5598_v52 }
0x1674   :  { %v5609_v4 = vadd.f32 1e-05, %v5597_v60  ;;  %v5576_v14 = vpop.xlane.xlu1 %5575 }
0x1675   :  { %9463 = vrsqrt.f32 %v5610_v16  ;;  %v5600_v46 = vmul.f32 0.03125, %v5576_v14  ;;  %v5573_v56 = vpop.xlane.xlu0 %5572 }
0x1676   :  { %9465 = vrsqrt.f32 %v5609_v4  ;;  %v5599_v31 = vmul.f32 0.03125, %v5573_v56 }
0x1677   :  { %v5612_v15 = vadd.f32 1e-05, %v5600_v46 }
0x1678   :  { %v5611_v9 = vadd.f32 1e-05, %v5599_v31  ;;  %v5582_v21 = vpop.xlane.xlu1 %5581 }
0x1679   :  { %9467 = vrsqrt.f32 %v5612_v15  ;;  %v5602_v35 = vmul.f32 0.03125, %v5582_v21  ;;  %v5579_v51 = vpop.xlane.xlu0 %5578 }
0x167a   :  { %9469 = vrsqrt.f32 %v5611_v9  ;;  %v5601_v61 = vmul.f32 0.03125, %v5579_v51 }
0x167b   :  { %v9460_v45 = vpop.eup %9459  ;;  %v5614_v23 = vadd.f32 1e-05, %v5602_v35 }
0x167c   :  { %v9462_v48 = vpop.eup %9461  ;;  %v5632_v1 = vmul.f32 %v9460_v45, %v11935_v36  ;;  %v5613_v28 = vadd.f32 1e-05, %v5601_v61  ;;  %v5588_v40 = vpop.xlane.xlu1 %5587 }
0x167d   :  { %9471 = vrsqrt.f32 %v5614_v23  ;;  %v5604_v63 = vmul.f32 0.03125, %v5588_v40  ;;  %v5585_v53 = vpop.xlane.xlu0 %5584  ;;  %v5631_v57 = vmul.f32 %v9462_v48, %v11938_v22 }
0x167e   :  { %v5648_v34 = vmul.f32 %v12014_v47, %v5632_v1  ;;  %9473 = vrsqrt.f32 %v5613_v28  ;;  %v5603_v6 = vmul.f32 0.03125, %v5585_v53 }
0x167f   :  { %v9464_v12 = vpop.eup %9463  ;;  %v5616_v41 = vadd.f32 1e-05, %v5604_v63  ;;  %v5647_v36 = vmul.f32 %v12014_v47, %v5631_v57 }
0x1680   :  { %v9466_v29 = vpop.eup %9465  ;;  %v5615_v17 = vadd.f32 1e-05, %v5603_v6  ;;  %v5594_v38 = vpop.xlane.xlu1 %5593  ;;  %v5634_v33 = vmul.f32 %v9464_v12, %v11945_v50  ;;  %v5664_v52 = vadd.f32 %v12020_v30, %v5648_v34 }
0x1681   :  { %9475 = vrsqrt.f32 %v5616_v41  ;;  %v5606_v13 = vmul.f32 0.03125, %v5594_v38  ;;  %v5591_v58 = vpop.xlane.xlu0 %5590  ;;  %v5663_v11 = vadd.f32 %v12020_v30, %v5647_v36  ;;  %v5633_v22 = vmul.f32 %v9466_v29, %v11949_v32 }
0x1682   :  { %9477 = vrsqrt.f32 %v5615_v17  ;;  %v5605_v18 = vmul.f32 0.03125, %v5591_v58  ;;  %v5650_v60 = vmul.f32 %v12014_v47, %v5634_v33  ;;  %v7152_v58 = vld [vmem:[%s12428_s6 + $0xa8] sm:$0xff] }
0x1683   :  { %v9468_v16 = vpop.eup %9467  ;;  %v5618_v4 = vadd.f32 1e-05, %v5606_v13  ;;  %8542 = vmatprep.mubr.msk.f32.mxu1 %vm126_vm0, %v5663_v11  ;;  %v5649_v14 = vmul.f32 %v12014_v47, %v5633_v22  ;;  %v7151_v13 = vld [vmem:[%s12428_s6 + $0xa0] sm:$0xff]  ;;  %v7153_v22 = vld [vmem:[%s12428_s6 + $0xb0] sm:$0xff] }
0x1684   :  { %v9470_v50 = vpop.eup %9469  ;;  %v5617_v46 = vadd.f32 1e-05, %v5605_v18  ;;  %8543 = vmatmul.mubr.msk.f32.vlgmr.msra.gmra.mrb[120].mxu1 %vm126_vm0, %v5664_v52  ;;  %v5636_v56 = vmul.f32 %v9468_v16, %v11957_v37  ;;  %v5666_v15 = vadd.f32 %v12020_v30, %v5650_v60  ;;  %v9061_v11 = vpack.c.bf16 %v7152_v58, %v7151_v13  ;;  %v7154_v52 = vld [vmem:[%s12428_s6 + $0xb8] sm:$0xff]  ;;  %v7155_v60 = vld [vmem:[%s12428_s6 + $0xc0] sm:$0xff]  ;;  %v7156_v16 = vld [vmem:[%s12428_s6 + $0xc8] sm:$0xff] }
0x1685   :  { %9479 = vrsqrt.f32 %v5618_v4  ;;  %v5665_v32 = vadd.f32 %v12020_v30, %v5649_v14  ;;  %v5635_v31 = vmul.f32 %v9470_v50, %v11961_v26  ;;  %v9065_v18 = vpack.c.bf16 %v7154_v52, %v7153_v22  ;;  %v7157_v14 = vld [vmem:[%s12428_s6 + $0xd0] sm:$0xff]  ;;  %v7158_v50 = vld [vmem:[%s12428_s6 + $0xd8] sm:$0xff] }
0x1686   :  { %9481 = vrsqrt.f32 %v5617_v46  ;;  %v5652_v9 = vmul.f32 %v12014_v47, %v5636_v56  ;;  %v9069_v4 = vpack.c.bf16 %v7156_v16, %v7155_v60  ;;  %v9073_v46 = vpack.c.bf16 %v7158_v50, %v7157_v14  ;;  %v7159_v56 = vld [vmem:[%s12428_s6 + $0xe0] sm:$0xff] }
0x1687   :  { %v9472_v21 = vpop.eup %9471  ;;  %8545 = vmatprep.mubr.msk.f32.mxu1 %vm126_vm0, %v5665_v32  ;;  %v5651_v35 = vmul.f32 %v12014_v47, %v5635_v31  ;;  %v7160_v32 = vld [vmem:[%s12428_s6 + $0xe8] sm:$0xff] }
0x1688   :  { %v9474_v51 = vpop.eup %9473  ;;  %8546 = vmatmul.mubr.msk.f32.gmra.mrb[122].mxu1 %vm126_vm0, %v5666_v15  ;;  %v5638_v37 = vmul.f32 %v9472_v21, %v11969_v62  ;;  %v5668_v26 = vadd.f32 %v12020_v30, %v5652_v9  ;;  %v9077_v31 = vpack.c.bf16 %v7160_v32, %v7159_v56  ;;  %v7161_v15 = vld [vmem:[%s12428_s6 + $0xf0] sm:$0xff]  ;;  %v7162_v9 = vld [vmem:[%s12428_s6 + $0xf8] sm:$0xff] }
0x1689   :  { %v5667_v61 = vadd.f32 %v12020_v30, %v5651_v35  ;;  %v5637_v45 = vmul.f32 %v9474_v51, %v11973_v7  ;;  %v9081_v21 = vpack.c.bf16 %v7162_v9, %v7161_v15  ;;  %v12477_v35 = vsub.s32 5, %v9801_v49 }
0x168a   :  { %v5654_v23 = vmul.f32 %v12014_v47, %v5638_v37 }
0x168b   :  { %v9476_v48 = vpop.eup %9475  ;;  %8548 = vmatprep.mubr.msk.f32.mxu1 %vm126_vm0, %v5667_v61  ;;  %v5653_v1 = vmul.f32 %v12014_v47, %v5637_v45  ;;  %v5683_v51 = vrot.slane %v11863_v44, %v12477_v35 }
0x168c   :  { %v9478_v28 = vpop.eup %9477  ;;  %8549 = vmatmul.mubr.msk.f32.gmra.mrb[124].mxu1 %vm126_vm0, %v5668_v26  ;;  %v5640_v40 = vmul.f32 %v9476_v48, %v11981_v27  ;;  %v5670_v7 = vadd.f32 %v12020_v30, %v5654_v23 }
0x168d   :  { %v5669_v62 = vadd.f32 %v12020_v30, %v5653_v1  ;;  %v5639_v59 = vmul.f32 %v9478_v28, %v11985_v24 }
0x168e   :  { %v5656_v63 = vmul.f32 %v12014_v47, %v5640_v40 }
0x168f   :  { %v9480_v53 = vpop.eup %9479  ;;  %8551 = vmatprep.mubr.msk.f32.mxu1 %vm126_vm0, %v5669_v62  ;;  %v5655_v57 = vmul.f32 %v12014_v47, %v5639_v59 }
0x1690   :  { %v9482_v34 = vpop.eup %9481  ;;  %8552 = vmatmul.mubr.msk.f32.gmra.mrb[126].mxu1 %vm126_vm0, %v5670_v7  ;;  %v5642_v6 = vmul.f32 %v9480_v53, %v11993_v10  ;;  %v5672_v24 = vadd.f32 %v12020_v30, %v5656_v63  ;;  %v7147_v10 = vld [vmem:[%s12428_s6 + $0x80] sm:$0xff] }
0x1691   :  { %v5671_v27 = vadd.f32 %v12020_v30, %v5655_v57  ;;  %v5641_v12 = vmul.f32 %v9482_v34, %v11997_v43  ;;  %v7148_v43 = vld [vmem:[%s12428_s6 + $0x88] sm:$0xff] }
0x1692   :  { %v5658_v41 = vmul.f32 %v12014_v47, %v5642_v6  ;;  %v9053_v38 = vpack.c.bf16 %v7148_v43, %v7147_v10 }
0x1693   :  { %8554 = vmatprep.mubr.msk.f32.mxu1 %vm126_vm0, %v5671_v27  ;;  %v5657_v36 = vmul.f32 %v12014_v47, %v5641_v12  ;;  %v7149_v47 = vld [vmem:[%s12428_s6 + $0x90] sm:$0xff] }
0x1694   :  { %8555 = vmatmul.mubr.msk.f32.gmra.mrb[128].mxu1 %vm126_vm0, %v5672_v24  ;;  %v5674_v17 = vadd.f32 %v12020_v30, %v5658_v41  ;;  %9054 = vmatprep.subr.bf16.mxu1 %v9053_v38 }
0x1695   :  { %v5673_v29 = vadd.f32 %v12020_v30, %v5657_v36  ;;  %9056 = vmatpush3.bf16.msra.mxu1 %v9053_v38  ;;  %v7150_v30 = vld [vmem:[%s12428_s6 + $0x98] sm:$0xff] }
0x1696   :  { %v9057_v33 = vpack.c.bf16 %v7150_v30, %v7149_v47 }
0x1697   :  { %8557 = vmatprep.mubr.msk.f32.mxu1 %vm126_vm0, %v5673_v29 }
0x1698   :  { %8558 = vmatmul.mubr.msk.f32.gmra.mrb[130].mxu1 %vm126_vm0, %v5674_v17  ;;  %9058 = vmatprep.subr.bf16.mxu1 %v9057_v33 }
0x1699   :  { %9060 = vmatpush3.bf16.msra.mxu1 %v9057_v33 }
0x169a   :  { %9062 = vmatprep.subr.bf16.mxu1 %v9061_v11 }
0x169d   :  { %9064 = vmatpush3.bf16.msra.mxu1 %v9061_v11 }
0x169e   :  { %9066 = vmatprep.subr.bf16.mxu1 %v9065_v18 }
0x16a1   :  { %9068 = vmatpush3.bf16.msra.mxu1 %v9065_v18 }
0x16a2   :  { %9070 = vmatprep.subr.bf16.mxu1 %v9069_v4 }
0x16a5   :  { %9072 = vmatpush3.bf16.msra.mxu1 %v9069_v4 }
0x16a6   :  { %9074 = vmatprep.subr.bf16.mxu1 %v9073_v46 }
0x16a9   :  { %9076 = vmatpush3.bf16.msra.mxu1 %v9073_v46 }
0x16aa   :  { %9078 = vmatprep.subr.bf16.mxu1 %v9077_v31 }
0x16ad   :  { %9080 = vmatpush3.bf16.msra.mxu1 %v9077_v31 }
0x16ae   :  { %9082 = vmatprep.subr.bf16.mxu1 %v9081_v21 }
0x16b1   :  { %9084 = vmatpush3.bf16.msra.mxu1 %v9081_v21 }
0x1757   :  { %v8544_v37 = vpop.f32.mrb[120].mxu1 }
0x1758   :  { %v12120_v61 = vadd.f32 %v8544_v37, %v5683_v51  ;;  %v5786_v45 = vpop.f32.mrb[121].mxu1 }
0x1759   :  { %v12122_v26 = vadd.f32 %v5786_v45, %v5683_v51 }
0x175a   :  { %v7136_v23 = vmul.f32 -1.702, %v12120_v61 }
0x175b   :  { %v7135_v48 = vmul.f32 -1.702, %v12122_v26  ;;  %v8547_v1 = vpop.f32.mrb[122].mxu1 }
0x175c   :  { %v5871_v28 = vmul.f32 1.442695, %v7136_v23  ;;  %v12126_v40 = vadd.f32 %v8547_v1, %v5683_v51  ;;  %v5796_v62 = vpop.f32.mrb[123].mxu1 }
0x175d   :  { %v5869_v59 = vmul.f32 1.442695, %v7135_v48  ;;  %v12128_v7 = vadd.f32 %v5796_v62, %v5683_v51 }
0x175e   :  { %9483 = vpow2.f32 %v5871_v28  ;;  %v7138_v63 = vmul.f32 -1.702, %v12126_v40 }
0x175f   :  { %9485 = vpow2.f32 %v5869_v59  ;;  %v7137_v53 = vmul.f32 -1.702, %v12128_v7  ;;  %v8550_v57 = vpop.f32.mrb[124].mxu1 }
0x1760   :  { %v5875_v34 = vmul.f32 1.442695, %v7138_v63  ;;  %v12132_v6 = vadd.f32 %v8550_v57, %v5683_v51  ;;  %v5806_v27 = vpop.f32.mrb[125].mxu1 }
0x1761   :  { %v5873_v12 = vmul.f32 1.442695, %v7137_v53  ;;  %v12134_v24 = vadd.f32 %v5806_v27, %v5683_v51 }
0x1762   :  { %9487 = vpow2.f32 %v5875_v34  ;;  %v7140_v41 = vmul.f32 -1.702, %v12132_v6 }
0x1763   :  { %9489 = vpow2.f32 %v5873_v12  ;;  %v7139_v36 = vmul.f32 -1.702, %v12134_v24  ;;  %v8553_v29 = vpop.f32.mrb[126].mxu1 }
0x1764   :  { %v5879_v17 = vmul.f32 1.442695, %v7140_v41  ;;  %v12138_v10 = vadd.f32 %v8553_v29, %v5683_v51  ;;  %v5816_v43 = vpop.f32.mrb[127].mxu1 }
0x1765   :  { %v5877_v38 = vmul.f32 1.442695, %v7139_v36  ;;  %v12140_v47 = vadd.f32 %v5816_v43, %v5683_v51 }
0x1766   :  { %9491 = vpow2.f32 %v5879_v17  ;;  %v7142_v30 = vmul.f32 -1.702, %v12138_v10 }
0x1767   :  { %9493 = vpow2.f32 %v5877_v38  ;;  %v7141_v33 = vmul.f32 -1.702, %v12140_v47  ;;  %v8556_v13 = vpop.f32.mrb[128].mxu1 }
0x1768   :  { %v9484_v58 = vpop.eup %9483  ;;  %v5883_v11 = vmul.f32 1.442695, %v7142_v30  ;;  %v12144_v22 = vadd.f32 %v8556_v13, %v5683_v51  ;;  %v5826_v52 = vpop.f32.mrb[129].mxu1 }
0x1769   :  { %v9486_v18 = vpop.eup %9485  ;;  %v5894_v60 = vadd.f32 1.0, %v9484_v58  ;;  %v5881_v16 = vmul.f32 1.442695, %v7141_v33  ;;  %v12146_v4 = vadd.f32 %v5826_v52, %v5683_v51 }
0x176a   :  { %v5893_v14 = vadd.f32 1.0, %v9486_v18  ;;  %9495 = vpow2.f32 %v5883_v11  ;;  %v7144_v50 = vmul.f32 -1.702, %v12144_v22 }
0x176b   :  { %9497 = vrcp.f32 %v5894_v60  ;;  %v7143_v46 = vmul.f32 -1.702, %v12146_v4  ;;  %v8559_v56 = vpop.f32.mrb[130].mxu1 }
0x176c   :  { %v9488_v32 = vpop.eup %9487  ;;  %9499 = vrcp.f32 %v5893_v14  ;;  %v5887_v31 = vmul.f32 1.442695, %v7144_v50  ;;  %v12150_v15 = vadd.f32 %v8559_v56, %v5683_v51  ;;  %v5836_v9 = vpop.f32.mrb[131].mxu1 }
0x176d   :  { %v9490_v21 = vpop.eup %9489  ;;  %v5896_v35 = vadd.f32 1.0, %v9488_v32  ;;  %9501 = vpow2.f32 %v5881_v16  ;;  %v5885_v37 = vmul.f32 1.442695, %v7143_v46  ;;  %v12152_v45 = vadd.f32 %v5836_v9, %v5683_v51 }
0x176e   :  { %v5895_v23 = vadd.f32 1.0, %v9490_v21  ;;  %9503 = vpow2.f32 %v5887_v31  ;;  %v7146_v48 = vmul.f32 -1.702, %v12150_v15 }
0x176f   :  { %9505 = vrcp.f32 %v5896_v35  ;;  %v7145_v1 = vmul.f32 -1.702, %v12152_v45 }
0x1770   :  { %v9492_v28 = vpop.eup %9491  ;;  %9507 = vrcp.f32 %v5895_v23  ;;  %v5891_v62 = vmul.f32 1.442695, %v7146_v48 }
0x1771   :  { %v9494_v59 = vpop.eup %9493  ;;  %v5898_v63 = vadd.f32 1.0, %v9492_v28  ;;  %9509 = vpow2.f32 %v5885_v37  ;;  %v5889_v53 = vmul.f32 1.442695, %v7145_v1 }
0x1772   :  { %v5897_v57 = vadd.f32 1.0, %v9494_v59  ;;  %9511 = vpow2.f32 %v5891_v62 }
0x1773   :  { %9513 = vrcp.f32 %v5898_v63 }
0x1774   :  { %v9496_v34 = vpop.eup %9495  ;;  %9515 = vrcp.f32 %v5897_v57 }
0x1775   :  { %v9498_v51 = vpop.eup %9497  ;;  %v5900_v27 = vadd.f32 1.0, %v9496_v34  ;;  %9517 = vpow2.f32 %v5889_v53 }
0x1776   :  { %v9500_v12 = vpop.eup %9499  ;;  %v5930_v17 = vmul.f32 %v9498_v51, %v12120_v61 }
0x1777   :  { %v9502_v41 = vpop.eup %9501  ;;  %v5929_v36 = vmul.f32 %v9500_v12, %v12122_v26  ;;  %9519 = vrcp.f32 %v5900_v27 }
0x1778   :  { %v9504_v29 = vpop.eup %9503  ;;  %v5899_v43 = vadd.f32 1.0, %v9502_v41 }
0x1779   :  { %v9506_v38 = vpop.eup %9505  ;;  %v5902_v30 = vadd.f32 1.0, %v9504_v29  ;;  %8592 = vmatprep.mubr.f32.mxu1 %v5929_v36 }
0x177a   :  { %v9508_v33 = vpop.eup %9507  ;;  %9521 = vrcp.f32 %v5899_v43  ;;  %8593 = vmatmul.mubr.f32.vlgmr.msra.gmra.mrb[132].mxu1 %v5930_v17  ;;  %v5932_v52 = vmul.f32 %v9506_v38, %v12126_v40 }
0x177b   :  { %v9510_v13 = vpop.eup %9509  ;;  %v5931_v58 = vmul.f32 %v9508_v33, %v12128_v7  ;;  %9523 = vrcp.f32 %v5902_v30 }
0x177c   :  { %v9512_v11 = vpop.eup %9511  ;;  %v5901_v18 = vadd.f32 1.0, %v9510_v13 }
0x177d   :  { %v9514_v60 = vpop.eup %9513  ;;  %v5904_v26 = vadd.f32 1.0, %v9512_v11  ;;  %8595 = vmatprep.mubr.f32.mxu1 %v5931_v58 }
0x177e   :  { %v9516_v61 = vpop.eup %9515  ;;  %9525 = vrcp.f32 %v5901_v18  ;;  %8596 = vmatmul.mubr.f32.gmra.mrb[134].mxu1 %v5932_v52  ;;  %v5934_v50 = vmul.f32 %v9514_v60, %v12132_v6 }
0x177f   :  { %v9518_v16 = vpop.eup %9517  ;;  %v5933_v14 = vmul.f32 %v9516_v61, %v12134_v24  ;;  %9527 = vrcp.f32 %v5904_v26 }
0x1780   :  { %v5903_v46 = vadd.f32 1.0, %v9518_v16 }
0x1781   :  { %8598 = vmatprep.mubr.f32.mxu1 %v5933_v14  ;;  %v9520_v7 = vpop.eup %9519 }
0x1782   :  { %9529 = vrcp.f32 %v5903_v46  ;;  %8599 = vmatmul.mubr.f32.gmra.mrb[136].mxu1 %v5934_v50  ;;  %v5936_v32 = vmul.f32 %v9520_v7, %v12138_v10  ;;  %v12478_v10 = vsub.s32 6, %v9801_v49 }
0x1784   :  { %v9522_v40 = vpop.eup %9521 }
0x1785   :  { %v5935_v56 = vmul.f32 %v9522_v40, %v12140_v47  ;;  %v9524_v31 = vpop.eup %9523  ;;  %v6098_v47 = vrot.slane %v11863_v44, %v12478_v10 }
0x1786   :  { %v5938_v24 = vmul.f32 %v9524_v31, %v12144_v22 }
0x1787   :  { %8601 = vmatprep.mubr.f32.mxu1 %v5935_v56 }
0x1788   :  { %v9526_v9 = vpop.eup %9525  ;;  %8602 = vmatmul.mubr.f32.gmra.mrb[138].mxu1 %v5936_v32 }
0x1789   :  { %v5937_v21 = vmul.f32 %v9526_v9, %v12146_v4  ;;  %v9528_v6 = vpop.eup %9527 }
0x178a   :  { %v5940_v23 = vmul.f32 %v9528_v6, %v12150_v15 }
0x178b   :  { %8604 = vmatprep.mubr.f32.mxu1 %v5937_v21 }
0x178c   :  { %v9530_v35 = vpop.eup %9529  ;;  %8605 = vmatmul.mubr.f32.gmra.mrb[140].mxu1 %v5938_v24 }
0x178d   :  { %v5939_v37 = vmul.f32 %v9530_v35, %v12152_v45 }
0x178f   :  { %8607 = vmatprep.mubr.f32.mxu1 %v5939_v37 }
0x1790   :  { %8608 = vmatmul.mubr.f32.gmra.mrb[142].mxu1 %v5940_v23 }
0x184d   :  { %v8594_v48 = vpop.f32.mrb[132].mxu1 }
0x184e   :  { %v6084_v1 = vadd.f32 %v8594_v48, %v11870_v55  ;;  %v6024_v4 = vpop.f32.mrb[133].mxu1 }
0x184f   :  { %v6083_v22 = vadd.f32 %v6024_v4, %v11872_v42 }
0x1850   :  { %v6100_v28 = vadd.f32 %v6098_v47, %v6084_v1 }
0x1851   :  { %v6099_v62 = vadd.f32 %v6098_v47, %v6083_v22  ;;  %v8597_v59 = vpop.f32.mrb[134].mxu1 }
0x1852   :  { %v6086_v63 = vadd.f32 %v8597_v59, %v11880_v8  ;;  %v6034_v45 = vpop.f32.mrb[135].mxu1  ;;  %v6114_v15 = vsel %vm126_vm0, %v6100_v28, 0.0 }
0x1853   :  { %v6085_v53 = vadd.f32 %v6034_v45, %v11882_v20  ;;  %6115 = vadd.xlane.f32.xlu1 %v6114_v15  ;;  %v6111_v57 = vsel %vm126_vm0, %v6099_v62, 0.0 }
0x1854   :  { %v6102_v44 = vadd.f32 %v6098_v47, %v6086_v63  ;;  %6112 = vadd.xlane.f32.xlu0 %v6111_v57 }
0x1855   :  { %v6101_v34 = vadd.f32 %v6098_v47, %v6085_v53  ;;  %v8600_v55 = vpop.f32.mrb[136].mxu1 }
0x1856   :  { %v6088_v51 = vadd.f32 %v8600_v55, %v11890_v39  ;;  %v6044_v42 = vpop.f32.mrb[137].mxu1  ;;  %v6120_v27 = vsel %vm126_vm0, %v6102_v44, 0.0 }
0x1857   :  { %v6087_v12 = vadd.f32 %v6044_v42, %v11892_v3  ;;  %6121 = vadd.xlane.f32.xlu1 %v6120_v27  ;;  %v6117_v8 = vsel %vm126_vm0, %v6101_v34, 0.0 }
0x1858   :  { %v6104_v41 = vadd.f32 %v6098_v47, %v6088_v51  ;;  %6118 = vadd.xlane.f32.xlu0 %v6117_v8 }
0x1859   :  { %v6103_v20 = vadd.f32 %v6098_v47, %v6087_v12 }
0x185a   :  { %v6126_v36 = vsel %vm126_vm0, %v6104_v41, 0.0 }
0x185b   :  { %v8603_v29 = vpop.f32.mrb[138].mxu1  ;;  %6127 = vadd.xlane.f32.xlu1 %v6126_v36  ;;  %v6123_v17 = vsel %vm126_vm0, %v6103_v20, 0.0 }
0x185c   :  { %v6090_v43 = vadd.f32 %v8603_v29, %v11900_v5  ;;  %v6054_v39 = vpop.f32.mrb[139].mxu1  ;;  %6124 = vadd.xlane.f32.xlu0 %v6123_v17 }
0x185d   :  { %v6089_v38 = vadd.f32 %v6054_v39, %v11902_v19 }
0x185e   :  { %v12185_v30 = vadd.f32 %v6098_v47, %v6090_v43 }
0x185f   :  { %v12187_v3 = vadd.f32 %v6098_v47, %v6089_v38  ;;  %v8606_v33 = vpop.f32.mrb[140].mxu1 }
0x1860   :  { %v6092_v13 = vadd.f32 %v8606_v33, %v11910_v25  ;;  %v6064_v58 = vpop.f32.mrb[141].mxu1  ;;  %v6132_v11 = vsel %vm126_vm0, %v12185_v30, 0.0 }
0x1861   :  { %v6091_v52 = vadd.f32 %v6064_v58, %v11912_v2  ;;  %6133 = vadd.xlane.f32.xlu1 %v6132_v11  ;;  %v6129_v5 = vsel %vm126_vm0, %v12187_v3, 0.0 }
0x1862   :  { %v12195_v18 = vadd.f32 %v6098_v47, %v6092_v13  ;;  %6130 = vadd.xlane.f32.xlu0 %v6129_v5 }
0x1863   :  { %v12197_v19 = vadd.f32 %v6098_v47, %v6091_v52  ;;  %v8609_v60 = vpop.f32.mrb[142].mxu1 }
0x1864   :  { %v6094_v26 = vadd.f32 %v8609_v60, %v11920_v0  ;;  %v6074_v61 = vpop.f32.mrb[143].mxu1  ;;  %v6138_v25 = vsel %vm126_vm0, %v12195_v18, 0.0 }
0x1865   :  { %v6093_v16 = vadd.f32 %v6074_v61, %v11922_v54  ;;  %6139 = vadd.xlane.f32.xlu1 %v6138_v25  ;;  %v6135_v2 = vsel %vm126_vm0, %v12197_v19, 0.0 }
0x1866   :  { %v12205_v14 = vadd.f32 %v6098_v47, %v6094_v26  ;;  %6136 = vadd.xlane.f32.xlu0 %v6135_v2 }
0x1867   :  { %v12207_v50 = vadd.f32 %v6098_v47, %v6093_v16 }
0x1868   :  { %v6144_v46 = vsel %vm126_vm0, %v12205_v14, 0.0 }
0x1869   :  { %6145 = vadd.xlane.f32.xlu1 %v6144_v46  ;;  %v6141_v0 = vsel %vm126_vm0, %v12207_v50, 0.0 }
0x186a   :  { %6142 = vadd.xlane.f32.xlu0 %v6141_v0 }
0x18e0   :  { %v6116_v7 = vpop.xlane.xlu1 %6115 }
0x18e1   :  { %v6148_v40 = vmul.f32 0.03125, %v6116_v7  ;;  %v6113_v54 = vpop.xlane.xlu0 %6112 }
0x18e2   :  { %v6147_v56 = vmul.f32 0.03125, %v6113_v54 }
0x18e3   :  { %v12213_v32 = vsub.f32 %v6100_v28, %v6148_v40 }
0x18e4   :  { %v12215_v31 = vsub.f32 %v6099_v62, %v6147_v56  ;;  %v6122_v9 = vpop.xlane.xlu1 %6121 }
0x18e5   :  { %v6150_v21 = vmul.f32 0.03125, %v6122_v9  ;;  %v6119_v24 = vpop.xlane.xlu0 %6118  ;;  %v6172_v6 = vmul.f32 %v12213_v32, %v12213_v32 }
0x18e6   :  { %v6149_v35 = vmul.f32 0.03125, %v6119_v24  ;;  %v6171_v37 = vmul.f32 %v12215_v31, %v12215_v31 }
0x18e7   :  { %v12221_v23 = vsub.f32 %v6102_v44, %v6150_v21  ;;  %v6186_v10 = vsel %vm126_vm0, %v6172_v6, 0.0 }
0x18e8   :  { %v12224_v47 = vsub.f32 %v6101_v34, %v6149_v35  ;;  %v6128_v48 = vpop.xlane.xlu1 %6127  ;;  %6187 = vadd.xlane.f32.xlu1 %v6186_v10  ;;  %v6183_v1 = vsel %vm126_vm0, %v6171_v37, 0.0 }
0x18e9   :  { %v6152_v4 = vmul.f32 0.03125, %v6128_v48  ;;  %v6125_v22 = vpop.xlane.xlu0 %6124  ;;  %6184 = vadd.xlane.f32.xlu0 %v6183_v1  ;;  %v6174_v28 = vmul.f32 %v12221_v23, %v12221_v23 }
0x18ea   :  { %v6151_v62 = vmul.f32 0.03125, %v6125_v22  ;;  %v6173_v59 = vmul.f32 %v12224_v47, %v12224_v47  ;;  %v6269_v22 = vsub.s32 7, %v9801_v49 }
0x18eb   :  { %v12231_v63 = vsub.f32 %v6104_v41, %v6152_v4  ;;  %v6192_v45 = vsel %vm126_vm0, %v6174_v28, 0.0 }
0x18ec   :  { %v12234_v15 = vsub.f32 %v6103_v20, %v6151_v62  ;;  %6193 = vadd.xlane.f32.xlu1 %v6192_v45  ;;  %v6189_v53 = vsel %vm126_vm0, %v6173_v59, 0.0  ;;  %v9587_v45 = vld [vmem:[%s12424_s7] sm:$0xff] }
0x18ed   :  { %6190 = vadd.xlane.f32.xlu0 %v6189_v53  ;;  %v6176_v57 = vmul.f32 %v12231_v63, %v12231_v63  ;;  %v12287_v53 = vrot.slane %v9587_v45, %v6269_v22 }
0x18ee   :  { %v6134_v44 = vpop.xlane.xlu1 %6133  ;;  %v6175_v34 = vmul.f32 %v12234_v15, %v12234_v15 }
0x18ef   :  { %v6154_v55 = vmul.f32 0.03125, %v6134_v44  ;;  %v6131_v51 = vpop.xlane.xlu0 %6130  ;;  %v6198_v42 = vsel %vm126_vm0, %v6176_v57, 0.0 }
0x18f0   :  { %v6153_v27 = vmul.f32 0.03125, %v6131_v51  ;;  %6199 = vadd.xlane.f32.xlu1 %v6198_v42  ;;  %v6195_v12 = vsel %vm126_vm0, %v6175_v34, 0.0 }
0x18f1   :  { %v12244_v8 = vsub.f32 %v12185_v30, %v6154_v55  ;;  %6196 = vadd.xlane.f32.xlu0 %v6195_v12 }
0x18f2   :  { %v12247_v41 = vsub.f32 %v12187_v3, %v6153_v27  ;;  %v6140_v20 = vpop.xlane.xlu1 %6139  ;;  %v9588_v27 = vld [vmem:[%s12424_s7 + $0x8] sm:$0xff] }
0x18f3   :  { %v6156_v36 = vmul.f32 0.03125, %v6140_v20  ;;  %v6137_v29 = vpop.xlane.xlu0 %6136  ;;  %v6178_v17 = vmul.f32 %v12244_v8, %v12244_v8  ;;  %v12293_v12 = vrot.slane %v9588_v27, %v6269_v22 }
0x18f4   :  { %v6155_v43 = vmul.f32 0.03125, %v6137_v29  ;;  %v6177_v39 = vmul.f32 %v12247_v41, %v12247_v41 }
0x18f5   :  { %v12254_v38 = vsub.f32 %v12195_v18, %v6156_v36  ;;  %v6204_v30 = vsel %vm126_vm0, %v6178_v17, 0.0 }
0x18f6   :  { %v12258_v33 = vsub.f32 %v12197_v19, %v6155_v43  ;;  %6205 = vadd.xlane.f32.xlu1 %v6204_v30  ;;  %v6146_v3 = vpop.xlane.xlu1 %6145  ;;  %v6201_v13 = vsel %vm126_vm0, %v6177_v39, 0.0 }
0x18f7   :  { %v6158_v58 = vmul.f32 0.03125, %v6146_v3  ;;  %6202 = vadd.xlane.f32.xlu0 %v6201_v13  ;;  %v6143_v11 = vpop.xlane.xlu0 %6142  ;;  %v6180_v52 = vmul.f32 %v12254_v38, %v12254_v38 }
0x18f8   :  { %v6157_v5 = vmul.f32 0.03125, %v6143_v11  ;;  %v6179_v18 = vmul.f32 %v12258_v33, %v12258_v33 }
0x18f9   :  { %v12266_v60 = vsub.f32 %v12205_v14, %v6158_v58  ;;  %v6210_v19 = vsel %vm126_vm0, %v6180_v52, 0.0 }
0x18fa   :  { %v12270_v26 = vsub.f32 %v12207_v50, %v6157_v5  ;;  %6211 = vadd.xlane.f32.xlu1 %v6210_v19  ;;  %v6207_v61 = vsel %vm126_vm0, %v6179_v18, 0.0  ;;  %v6299_v50 = vld [vmem:[%s12429_s1] sm:$0xff] }
0x18fb   :  { %6208 = vadd.xlane.f32.xlu0 %v6207_v61  ;;  %v6182_v25 = vmul.f32 %v12266_v60, %v12266_v60  ;;  %8634 = vmatprep.mubr.msk.f32.mxu0 %vm952_vm13, %v6299_v50 }
0x18fc   :  { %v6181_v16 = vmul.f32 %v12270_v26, %v12270_v26 }
0x18fd   :  { %v6216_v2 = vsel %vm126_vm0, %v6182_v25, 0.0 }
0x18fe   :  { %6217 = vadd.xlane.f32.xlu1 %v6216_v2  ;;  %v6213_v14 = vsel %vm126_vm0, %v6181_v16, 0.0 }
0x18ff   :  { %6214 = vadd.xlane.f32.xlu0 %v6213_v14 }
0x1975   :  { %v6188_v46 = vpop.xlane.xlu1 %6187 }
0x1976   :  { %v6220_v0 = vmul.f32 0.03125, %v6188_v46  ;;  %v6185_v7 = vpop.xlane.xlu0 %6184 }
0x1977   :  { %v6219_v40 = vmul.f32 0.03125, %v6185_v7 }
0x1978   :  { %v6232_v54 = vadd.f32 1e-05, %v6220_v0 }
0x1979   :  { %v6231_v56 = vadd.f32 1e-05, %v6219_v40  ;;  %v6194_v9 = vpop.xlane.xlu1 %6193 }
0x197a   :  { %9531 = vrsqrt.f32 %v6232_v54  ;;  %v6222_v21 = vmul.f32 0.03125, %v6194_v9  ;;  %v6191_v24 = vpop.xlane.xlu0 %6190 }
0x197b   :  { %9533 = vrsqrt.f32 %v6231_v56  ;;  %v6221_v6 = vmul.f32 0.03125, %v6191_v24 }
0x197c   :  { %v6234_v35 = vadd.f32 1e-05, %v6222_v21 }
0x197d   :  { %v6233_v37 = vadd.f32 1e-05, %v6221_v6  ;;  %v6200_v10 = vpop.xlane.xlu1 %6199 }
0x197e   :  { %9535 = vrsqrt.f32 %v6234_v35  ;;  %v6224_v48 = vmul.f32 0.03125, %v6200_v10  ;;  %v6197_v1 = vpop.xlane.xlu0 %6196 }
0x197f   :  { %9537 = vrsqrt.f32 %v6233_v37  ;;  %v6223_v4 = vmul.f32 0.03125, %v6197_v1 }
0x1980   :  { %v6236_v28 = vadd.f32 1e-05, %v6224_v48 }
0x1981   :  { %v6235_v62 = vadd.f32 1e-05, %v6223_v4 }
0x1982   :  { %9539 = vrsqrt.f32 %v6236_v28 }
0x1983   :  { %9541 = vrsqrt.f32 %v6235_v62  ;;  %v6206_v59 = vpop.xlane.xlu1 %6205 }
0x1984   :  { %v9532_v57 = vpop.eup %9531  ;;  %v6226_v44 = vmul.f32 0.03125, %v6206_v59  ;;  %v6203_v34 = vpop.xlane.xlu0 %6202 }
0x1985   :  { %v9534_v55 = vpop.eup %9533  ;;  %v6225_v51 = vmul.f32 0.03125, %v6203_v34  ;;  %v6256_v42 = vmul.f32 %v9532_v57, %v12213_v32 }
0x1986   :  { %v6238_v20 = vadd.f32 1e-05, %v6226_v44  ;;  %v6255_v36 = vmul.f32 %v9534_v55, %v12215_v31 }
0x1987   :  { %v6237_v29 = vadd.f32 1e-05, %v6225_v51  ;;  %v6212_v17 = vpop.xlane.xlu1 %6211  ;;  %v6272_v43 = vmul.f32 %v12287_v53, %v6256_v42 }
0x1988   :  { %v9536_v39 = vpop.eup %9535  ;;  %9543 = vrsqrt.f32 %v6238_v20  ;;  %v6228_v30 = vmul.f32 0.03125, %v6212_v17  ;;  %v6209_v3 = vpop.xlane.xlu0 %6208  ;;  %v6271_v13 = vmul.f32 %v12287_v53, %v6255_v36 }
0x1989   :  { %v9538_v32 = vpop.eup %9537  ;;  %9545 = vrsqrt.f32 %v6237_v29  ;;  %v6227_v58 = vmul.f32 0.03125, %v6209_v3  ;;  %v6288_v11 = vadd.f32 %v12293_v12, %v6272_v43  ;;  %v6258_v52 = vmul.f32 %v9536_v39, %v12221_v23  ;;  %v6382_v43 = vld [vmem:[%s12430_s8] sm:$0xff]  ;;  %v6385_v3 = vld [vmem:[%s12430_s8 + $0x18] sm:$0xff] }
0x198a   :  { %v6240_v5 = vadd.f32 1e-05, %v6228_v30  ;;  %v6287_v31 = vadd.f32 %v12293_v12, %v6271_v13  ;;  %v6257_v18 = vmul.f32 %v9538_v32, %v12224_v47  ;;  %v6300_v13 = vld [vmem:[%s12429_s1 + $0x8] sm:$0xf] }
0x198b   :  { %v6239_v19 = vadd.f32 1e-05, %v6227_v58  ;;  %v6218_v61 = vpop.xlane.xlu1 %6217  ;;  %v6274_v25 = vmul.f32 %v12287_v53, %v6258_v52 }
0x198c   :  { %v9540_v16 = vpop.eup %9539  ;;  %9547 = vrsqrt.f32 %v6240_v5  ;;  %v6230_v2 = vmul.f32 0.03125, %v6218_v61  ;;  %v6215_v14 = vpop.xlane.xlu0 %6214  ;;  %v9085_v50 = vpack.c.bf16 %v6288_v11, %v6287_v31  ;;  %v6273_v46 = vmul.f32 %v12287_v53, %v6257_v18 }
0x198d   :  { %v9542_v0 = vpop.eup %9541  ;;  %9549 = vrsqrt.f32 %v6239_v19  ;;  %v6229_v7 = vmul.f32 0.03125, %v6215_v14  ;;  %v6290_v23 = vadd.f32 %v12293_v12, %v6274_v25  ;;  %v6260_v40 = vmul.f32 %v9540_v16, %v12231_v63  ;;  %v6482_v25 = vld [vmem:[%s12432_s9] sm:$0xf] }
0x198e   :  { %v6242_v54 = vadd.f32 1e-05, %v6230_v2  ;;  %9086 = vmatprep.subr.bf16.mxu0 %v9085_v50  ;;  %v6289_v47 = vadd.f32 %v12293_v12, %v6273_v46  ;;  %v6259_v56 = vmul.f32 %v9542_v0, %v12234_v15  ;;  %v9590_v11 = vmov 0.0  }
0x198f   :  { %v6241_v9 = vadd.f32 1e-05, %v6229_v7  ;;  %9088 = vmatpush3.bf16.msra.mxu0 %v9085_v50  ;;  %v6276_v21 = vmul.f32 %v12287_v53, %v6260_v40  ;;  %6690 = vst [vmem:[%s12431_s11] sm:$0xff] %v9590_v11  ;;  %6692 = vst [vmem:[%s12431_s11 + $0x10] sm:$0xff] %v9590_v11 }
0x1990   :  { %9551 = vrsqrt.f32 %v6242_v54  ;;  %v9089_v24 = vpack.c.bf16 %v6290_v23, %v6289_v47  ;;  %v6275_v6 = vmul.f32 %v12287_v53, %v6259_v56  ;;  %6691 = vst [vmem:[%s12431_s11 + $0x8] sm:$0xff] %v9590_v11  ;;  %6693 = vst [vmem:[%s12431_s11 + $0x18] sm:$0xff] %v9590_v11 }
0x1991   :  { %9553 = vrsqrt.f32 %v6241_v9  ;;  %v6292_v35 = vadd.f32 %v12293_v12, %v6276_v21 }
0x1992   :  { %v9544_v37 = vpop.eup %9543  ;;  %9090 = vmatprep.subr.bf16.mxu0 %v9089_v24  ;;  %v6291_v63 = vadd.f32 %v12293_v12, %v6275_v6 }
0x1993   :  { %v9546_v10 = vpop.eup %9545  ;;  %9092 = vmatpush3.bf16.msra.mxu0 %v9089_v24  ;;  %v6262_v48 = vmul.f32 %v9544_v37, %v12244_v8 }
0x1994   :  { %v9093_v15 = vpack.c.bf16 %v6292_v35, %v6291_v63  ;;  %v6261_v1 = vmul.f32 %v9546_v10, %v12247_v41 }
0x1995   :  { %v6278_v4 = vmul.f32 %v12287_v53, %v6262_v48 }
0x1996   :  { %v9548_v22 = vpop.eup %9547  ;;  %9094 = vmatprep.subr.bf16.mxu0 %v9093_v15  ;;  %v6277_v28 = vmul.f32 %v12287_v53, %v6261_v1 }
0x1997   :  { %v9550_v62 = vpop.eup %9549  ;;  %9096 = vmatpush3.bf16.msra.mxu0 %v9093_v15  ;;  %v6294_v59 = vadd.f32 %v12293_v12, %v6278_v4  ;;  %v6264_v45 = vmul.f32 %v9548_v22, %v12254_v38 }
0x1998   :  { %v6293_v57 = vadd.f32 %v12293_v12, %v6277_v28  ;;  %v6263_v44 = vmul.f32 %v9550_v62, %v12258_v33 }
0x1999   :  { %v6280_v8 = vmul.f32 %v12287_v53, %v6264_v45 }
0x199a   :  { %v9552_v34 = vpop.eup %9551  ;;  %v9097_v41 = vpack.c.bf16 %v6294_v59, %v6293_v57  ;;  %v6279_v55 = vmul.f32 %v12287_v53, %v6263_v44 }
0x199b   :  { %v9554_v51 = vpop.eup %9553  ;;  %v6296_v42 = vadd.f32 %v12293_v12, %v6280_v8  ;;  %v6266_v27 = vmul.f32 %v9552_v34, %v12266_v60  ;;  %v6383_v60 = vld [vmem:[%s12430_s8 + $0x8] sm:$0xff]  ;;  %v7170_v34 = vld [vmem:[%s12433_s10] ss:$0 sm:$0xff] }
0x199c   :  { %9098 = vmatprep.subr.bf16.mxu0 %v9097_v41  ;;  %v6295_v20 = vadd.f32 %v12293_v12, %v6279_v55  ;;  %v6265_v38 = vmul.f32 %v9554_v51, %v12270_v26  ;;  %v9109_v30 = vpack.c.bf16 %v6383_v60, %v6382_v43  ;;  %v12479_v55 = vld [vmem:[#allocation2_spill] sm:$0xff] }
0x199d   :  { %9100 = vmatpush3.bf16.msra.mxu0 %v9097_v41  ;;  %v6282_v36 = vmul.f32 %v12287_v53, %v6266_v27  ;;  %vm6604_vm3 = vcmp.eq.s32.totalorder %v12479_v55, %v7170_v34 }
0x199e   :  { %v9101_v33 = vpack.c.bf16 %v6296_v42, %v6295_v20  ;;  %v6281_v29 = vmul.f32 %v12287_v53, %v6265_v38  ;;  %v6384_v53 = vld [vmem:[%s12430_s8 + $0x10] sm:$0xff] }
0x199f   :  { %v6298_v17 = vadd.f32 %v12293_v12, %v6282_v36  ;;  %v9113_v32 = vpack.c.bf16 %v6385_v3, %v6384_v53  ;;  %v12480_v53 = vld [vmem:[#allocation3_spill] sm:$0xff] }
0x19a0   :  { %9102 = vmatprep.subr.bf16.mxu0 %v9101_v33  ;;  %v6297_v39 = vadd.f32 %v12293_v12, %v6281_v29  ;;  %v6653_v3 = vmul.u32 3, %v12480_v53 }
0x19a1   :  { %9104 = vmatpush3.bf16.msra.mxu0 %v9101_v33 }
0x19a2   :  { %v9105_v26 = vpack.c.bf16 %v6298_v17, %v6297_v39  ;;  %vm6655_vm4 = vcmp.ge.s32.totalorder %v12479_v55, %v6653_v3  ;;  %vm6654_vm6 = vcmp.ge.s32.totalorder %v9801_v49, %v6653_v3 }
0x19a4   :  { %9106 = vmatprep.subr.bf16.mxu0 %v9105_v26 }
0x19a5   :  { %9108 = vmatpush3.bf16.msra.mxu0 %v9105_v26 }
0x19a6   :  { %9110 = vmatprep.subr.bf16.mxu0 %v9109_v30 }
0x19a8   :  { %8635 = vmatmul.mubr.msk.f32.vlgmr.msra.gmra.mrb[168].mxu0 %vm952_vm13, %v6300_v13  ;;  %vm6569_vm13 = vcmask 31744  }
0x19a9   :  { %9112 = vmatpush3.bf16.msra.mxu0 %v9109_v30 }
0x19aa   :  { %9114 = vmatprep.subr.bf16.mxu0 %v9113_v32 }
0x19ad   :  { %9116 = vmatpush3.bf16.msra.mxu0 %v9113_v32 }
0x19ae   :  { %8648 = vmatprep.subr.msk.mxu0 %vm126_vm0, %v6482_v25 }
0x1a7b   :  { %v8636_v12 = vpop.f32.mrb[168].mxu0 }
0x1a7c   :  { %v6373_v58 = vpop.f32.mrb[169].mxu0 }
0x1a7d   :  { %8645 = vmatprep.mubr.msk.f32.mxu0 %vm126_vm0, %v6373_v58 }
0x1a7e   :  { %8646 = vmatmul.mubr.msk.f32.vlgmr.msra.gmra.mrb[170].mxu0 %vm126_vm0, %v8636_v12  ;;  %v6656_v12 = vadd.s32 3, %v6653_v3 }
0x1a7f   :  { %8649 = vmatpush3.xpose.msk.msra.mxu0 %vm126_vm0, %v6482_v25 }
0x1a80   :  { %vm6658_vm5 = vcmp.lt.s32.totalorder %v12479_v55, %v6656_v12  ;;  %vm6657_vm7 = vcmp.lt.s32.totalorder %v9801_v49, %v6656_v12 }
0x1a81   :  { %vm6660_vm8 = vmand %vm6655_vm4, %vm6658_vm5 }
0x1a82   :  { %vm6659_vm9 = vmand %vm6654_vm6, %vm6657_vm7 }
0x1b51   :  { %v8647_v52 = vpop.f32.mrb[170].mxu0 }
0x1b52   :  { %v6468_v5 = vmul.f32 %v8647_v52, %v8647_v52  ;;  %v6458_v31 = vpop.f32.mrb[171].mxu0  ;;  %6695 = vst.msk [vmem:[%s12431_s11 + $0x8] sm:$0xf] %vm6472_vm1, %v8647_v52 }
0x1b53   :  { %v6467_v18 = vmul.f32 %v6458_v31, %v6458_v31  ;;  %6694 = vst.msk [vmem:[%s12431_s11] sm:$0xff] %vm126_vm0, %v6458_v31 }
0x1b54   :  { %v6473_v19 = vsel %vm6472_vm1, %v6468_v5, 0.0 }
0x1b55   :  { %6474 = vadd.xlane.f32.xlu1 %v6473_v19  ;;  %v6469_v61 = vsel %vm126_vm0, %v6467_v18, 0.0 }
0x1b56   :  { %6470 = vadd.xlane.f32.xlu0 %v6469_v61 }
0x1be2   :  { %v6475_v16 = vpop.xlane.xlu1 %6474 }
0x1be3   :  { %v6477_v2 = vmax.f32 %v6475_v16, 1e-24  ;;  %v6471_v14 = vpop.xlane.xlu0 %6470 }
0x1be4   :  { %v6476_v50 = vmax.f32 %v6471_v14, 1e-24 }
0x1be5   :  { %9555 = vrsqrt.f32 %v6477_v2 }
0x1be6   :  { %9557 = vrsqrt.f32 %v6476_v50 }
0x1bef   :  { %v9556_v46 = vpop.eup %9555 }
0x1bf0   :  { %v9558_v0 = vpop.eup %9557  ;;  %v6481_v23 = vmul.f32 %v9556_v46, %v8647_v52 }
0x1bf1   :  { %v6480_v7 = vmul.f32 %v9558_v0, %v6458_v31 }
0x1bf3   :  { %8650 = vmatprep.mubr.msk.f32.mxu0 %vm126_vm0, %v6480_v7 }
0x1bf4   :  { %8651 = vmatmul.mubr.msk.f32.vlgmr.msra.gmra.mrb[172].mxu0 %vm126_vm0, %v6481_v23  ;;  %vm6603_vm0 = vcmp.eq.s32.totalorder %v9801_v49, %v7170_v34 }
0x1cc7   :  { %v8652_v40 = vpop.f32.mrb[172].mxu0 }
0x1cc8   :  { %v12375_v54 = vmul.f32 14.285714, %v8652_v40  ;;  %v6558_v47 = vpop.f32.mrb[173].mxu0 }
0x1cc9   :  { %v12377_v56 = vmul.f32 14.285714, %v6558_v47 }
0x1cca   :  { %v6572_v9 = vsel %vm6571_vm2, %v12375_v54, -inf  ;;  %6697 = vst.msk [vmem:[%s12431_s11 + $0x18] sm:$0xf] %vm6571_vm2, %v12375_v54  ;;  %v6606_v27 = vsel %vm6604_vm3, %v12375_v54, 0.0  ;;  %v6662_v16 = vsel %vm6660_vm8, %v12375_v54, 0.0 }
0x1ccb   :  { %6633 = vmax.xlane.f32.xlu1 %v6572_v9  ;;  %v6570_v21 = vsel %vm6569_vm13, %v12377_v56, -inf  ;;  %6696 = vst.msk [vmem:[%s12431_s11 + $0x10] sm:$0xff] %vm6569_vm13, %v12377_v56  ;;  %v6605_v42 = vsel %vm6603_vm0, %v12377_v56, 0.0  ;;  %v6608_v36 = vsel %vm6571_vm2, %v6606_v27, 0.0  ;;  %v6661_v14 = vsel %vm6659_vm9, %v12377_v56, 0.0 }
0x1ccc   :  { %6631 = vmax.xlane.f32.xlu0 %v6570_v21  ;;  %v6573_v24 = vmax.f32 %v6570_v21, %v6572_v9  ;;  %v6607_v38 = vsel %vm6569_vm13, %v6605_v42, 0.0  ;;  %v6666_v49 = vsel %vm6571_vm2, %v6662_v16, 0.0  ;;  %v6663_v46 = vsel %vm6569_vm13, %v6661_v14, 0.0 }
0x1ccd   :  { %v6609_v33 = vadd.f32 %v6608_v36, %v6607_v38 }
0x1cce   :  { %v6574_v6 = vrot.slane %v6573_v24, 4 }
0x1ccf   :  { %v6610_v17 = vrot.slane %v6609_v33, 4 }
0x1cd0   :  { %v6575_v35 = vmax.f32 %v6573_v24, %v6574_v6 }
0x1cd1   :  { %v6611_v13 = vadd.f32 %v6610_v17, %v6609_v33 }
0x1cd2   :  { %v6576_v37 = vrot.slane %v6575_v35, 2 }
0x1cd3   :  { %v6612_v58 = vrot.slane %v6611_v13, 2 }
0x1cd4   :  { %v6577_v63 = vmax.f32 %v6575_v35, %v6576_v37 }
0x1cd5   :  { %v6613_v52 = vadd.f32 %v6612_v58, %v6611_v13 }
0x1cd6   :  { %v6578_v10 = vrot.slane %v6577_v63, 1 }
0x1cd7   :  { %v6614_v18 = vrot.slane %v6613_v52, 1 }
0x1cd8   :  { %v6579_v48 = vmax.f32 %v6577_v63, %v6578_v10 }
0x1cd9   :  { %v6615_v50 = vadd.f32 %v6614_v18, %v6613_v52 }
0x1cda   :  { %v6580_v15 = vsub.f32 %v12377_v56, %v6579_v48  ;;  %v6581_v1 = vsub.f32 %v12375_v54, %v6579_v48 }
0x1cdc   :  { %v6582_v4 = vmul.f32 1.442695, %v6580_v15  ;;  %v6584_v22 = vmul.f32 1.442695, %v6581_v1 }
0x1cde   :  { %9559 = vpow2.f32 %v6582_v4 }
0x1cdf   :  { %9561 = vpow2.f32 %v6584_v22 }
0x1ce8   :  { %v9560_v28 = vpop.eup %9559 }
0x1ce9   :  { %v9562_v62 = vpop.eup %9561  ;;  %v6586_v59 = vsel %vm6569_vm13, %v9560_v28, 0.0 }
0x1cea   :  { %v6587_v45 = vsel %vm6571_vm2, %v9562_v62, 0.0 }
0x1ceb   :  { %v6588_v57 = vadd.f32 %v6587_v45, %v6586_v59 }
0x1ced   :  { %v6589_v44 = vrot.slane %v6588_v57, 4 }
0x1cef   :  { %v6590_v8 = vadd.f32 %v6589_v44, %v6588_v57 }
0x1cf1   :  { %v6591_v41 = vrot.slane %v6590_v8, 2 }
0x1cf3   :  { %v6592_v51 = vadd.f32 %v6591_v41, %v6590_v8 }
0x1cf5   :  { %v6593_v20 = vrot.slane %v6592_v51, 1 }
0x1cf7   :  { %v6594_v29 = vadd.f32 %v6593_v20, %v6592_v51 }
0x1cf9   :  { %9563 = vlog2.f32 %v6594_v29 }
0x1d03   :  { %v9564_v11 = vpop.eup %9563 }
0x1d04   :  { %v6596_v5 = vmul.f32 0.6931472, %v9564_v11 }
0x1d06   :  { %v6597_v2 = vadd.f32 %v6596_v5, %v6579_v48 }
0x1d08   :  { %v6616_v0 = vsub.f32 %v6597_v2, %v6615_v50 }
0x1d0a   :  { %v6618_v7 = vsel %vm6617_vm10, %v6616_v0, 0.0 }
0x1d58   :  { %v6634_v43 = vpop.xlane.xlu1 %6633 }
0x1d59   :  { %v6636_v60 = vsub.f32 %v12375_v54, %v6634_v43  ;;  %v6632_v39 = vpop.xlane.xlu0 %6631 }
0x1d5a   :  { %v6635_v26 = vsub.f32 %v12377_v56, %v6632_v39 }
0x1d5b   :  { %v6639_v30 = vmul.f32 1.442695, %v6636_v60 }
0x1d5c   :  { %v6637_v32 = vmul.f32 1.442695, %v6635_v26 }
0x1d5d   :  { %9565 = vpow2.f32 %v6639_v30 }
0x1d5e   :  { %9567 = vpow2.f32 %v6637_v32 }
0x1d67   :  { %v9566_v31 = vpop.eup %9565 }
0x1d68   :  { %v9568_v19 = vpop.eup %9567  ;;  %v6644_v61 = vsel %vm6571_vm2, %v9566_v31, 0.0 }
0x1d69   :  { %6645 = vadd.xlane.f32.xlu1 %v6644_v61  ;;  %v6641_v25 = vsel %vm6569_vm13, %v9568_v19, 0.0 }
0x1d6a   :  { %6642 = vadd.xlane.f32.xlu0 %v6641_v25 }
0x1d6d   :  { %6667 = vadd.xlane.f32.xlu1 %v6666_v49 }
0x1d6e   :  { %6664 = vadd.xlane.f32.xlu0 %v6663_v46 }
0x1d72   :  { %6619 = vadd.xlane.f32.xlu0 %v6618_v7 }
0x1df6   :  { %v6646_v23 = vpop.xlane.xlu1 %6645 }
0x1df7   :  { %9569 = vlog2.f32 %v6646_v23  ;;  %v6643_v40 = vpop.xlane.xlu0 %6642 }
0x1df8   :  { %9571 = vlog2.f32 %v6643_v40 }
0x1dfa   :  { %v6668_v10 = vpop.xlane.xlu1 %6667 }
0x1dfb   :  { %v6665_v54 = vpop.xlane.xlu0 %6664 }
0x1dff   :  { %v6620_v47 = vpop.xlane.xlu0 %6619 }
0x1e00   :  { %v6621_v9 = vrot.slane %v6620_v47, 4 }
0x1e01   :  { %v9570_v21 = vpop.eup %9569 }
0x1e02   :  { %v9572_v56 = vpop.eup %9571  ;;  %v6650_v24 = vmul.f32 0.6931472, %v9570_v21  ;;  %v6622_v6 = vadd.f32 %v6621_v9, %v6620_v47 }
0x1e03   :  { %v6648_v35 = vmul.f32 0.6931472, %v9572_v56 }
0x1e04   :  { %v6652_v37 = vadd.f32 %v6650_v24, %v6634_v43  ;;  %v6623_v63 = vrot.slane %v6622_v6, 2 }
0x1e05   :  { %v6651_v48 = vadd.f32 %v6648_v35, %v6632_v39 }
0x1e06   :  { %v6670_v15 = vsub.f32 %v6652_v37, %v6668_v10  ;;  %v6624_v1 = vadd.f32 %v6623_v63, %v6622_v6 }
0x1e07   :  { %v6669_v4 = vsub.f32 %v6651_v48, %v6665_v54 }
0x1e08   :  { %v6674_v22 = vsel %vm6673_vm11, %v6670_v15, 0.0  ;;  %v6625_v28 = vrot.slane %v6624_v1, 1 }
0x1e09   :  { %v6672_v62 = vsel %vm6671_vm12, %v6669_v4, 0.0 }
0x1e0a   :  { %v6675_v59 = vadd.f32 %v6674_v22, %v6672_v62  ;;  %v6626_v45 = vadd.f32 %v6625_v28, %v6624_v1 }
0x1e0c   :  { %6676 = vadd.xlane.f32.xlu1 %v6675_v59  ;;  %9141 = vpush %v6626_v45 }
0x1e3d   :  { %s9142_s10 = spop %9141 }
0x1e3e   :  { %s6630_s13 = smul.f32 0.25, %s9142_s10 }
0x1e99   :  { %v6677_v57 = vpop.xlane.xlu1 %6676 }
0x1e9a   :  { %v6678_v44 = vrot.slane %v6677_v57, 4 }
0x1e9c   :  { %v6679_v8 = vadd.f32 %v6678_v44, %v6677_v57 }
0x1e9e   :  { %v6680_v34 = vrot.slane %v6679_v8, 2 }
0x1ea0   :  { %v6681_v41 = vadd.f32 %v6680_v34, %v6679_v8 }
0x1ea2   :  { %v6682_v55 = vrot.slane %v6681_v41, 1 }
0x1ea4   :  { %v6683_v51 = vadd.f32 %v6682_v55, %v6681_v41 }
0x1ea6   :  { %9143 = vpush %v6683_v51 }
0x1ed7   :  { %s9144_s4 = spop %9143 }
0x1ed8   :  { %s6687_s14 = smul.f32 0.083333336, %s9144_s4 }
0x1eda   :  { %s6688_s0 = sadd.f32 %s6687_s14, %s6630_s13 }
0x1edc   :  { %s6689_s15 = smul.f32 0.5, %s6688_s0 }
0x1ede   :  { %v6698_v42 = vstv %s6689_s15 }
0x1edf   :  { %6700 = vst.msk [vmem:[%s12431_s11 + $0x1c] sm:$0x1] %vm6699_vm14, %v6698_v42 }

</bundles_post_ra>
